<compile_context>
chip_gen: v7x
topology: tpu7x:2x2x1
jax: 0.10.0
libtpu: 0.0.40
codegen_flags: <defaults>
</compile_context>

<pallas_src>
from functools import partial

import jax
import jax.numpy as jnp
from jax.experimental import pallas as pl
from jax.experimental.pallas import tpu as pltpu

FEATS = 128          # args.feats
NUM_CLASSES = 64     # args.num_classes
N_CH = 2
CHS = 512 // N_CH    # 256
K1 = 32              # im2col K (3*3*3 = 27) zero-padded to 32


def _round_up(x, m):
    return ((x + m - 1) // m) * m


# ------------------------------ the fused kernel ------------------------------

def _lmbn_kernel(B, TS,
                 p_ref, pm_ref,
                 w1_ref, b1_ref, w2_ref, b2_ref, w3_ref, b3_ref,
                 wg_ref, bg_ref, wd_ref, bd_ref,
                 wn_ref, ns_ref, nb_ref, wsh_ref, hb_ref,
                 c0s_ref, c0b_ref, c1s_ref, c1b_ref,
                 wcls_ref, wccls_ref,
                 eval_ref, sc_ref,
                 accg_ref, accpc_ref):
    step = pl.program_id(0)

    @pl.when(step == 0)
    def _init():
        accg_ref[...] = jnp.zeros_like(accg_ref)
        accpc_ref[...] = jnp.zeros_like(accpc_ref)

    # --- backbone: conv1(3x3 s2)+BN+ReLU -> conv2(1x1)+BN+ReLU.
    # quad (the 4 maxpool taps) and batch are folded into the matmul M dim;
    # the 2x2 maxpool becomes an elementwise max over the quad axis.
    xq = p_ref[...].reshape(4 * B * TS, K1)                       # bf16, M4 = 4*B*TS
    h = jnp.dot(xq, w1_ref[...], preferred_element_type=jnp.float32)
    h = jnp.maximum(h + b1_ref[...], 0.0)
    h = jnp.dot(h.astype(jnp.bfloat16), w2_ref[...],
                preferred_element_type=jnp.float32)
    h = jnp.maximum(h + b2_ref[...], 0.0)                         # (M4, 64) f32
    h4 = h.reshape(4, B * TS, 64)
    f = jnp.maximum(jnp.maximum(h4[0], h4[1]),
                    jnp.maximum(h4[2], h4[3]))                    # (B*TS, 64)

    # --- shared osnet.conv3 substitute (the 3 branch copies share weights)
    y = jnp.dot(f.astype(jnp.bfloat16), w3_ref[...],
                preferred_element_type=jnp.float32)
    y = jnp.maximum(y + b3_ref[...], 0.0)                         # (M, 96)

    # --- the three grouped 1x1 branch convs batched into one matmul
    y = jnp.dot(y.astype(jnp.bfloat16), wg_ref[...],
                preferred_element_type=jnp.float32)
    y = jnp.maximum(y + bg_ref[...], 0.0)                         # (M, 1536) [glo|par|cha]

    # --- BatchFeatureErase_Top bottleneck on the global branch (pre-pooling)
    glo = jnp.dot(y[:, 0:512].astype(jnp.bfloat16), wd_ref[...],
                  preferred_element_type=jnp.float32)
    glo = jnp.maximum(glo + bd_ref[...], 0.0)                     # (M, 512)

    # --- all adaptive average poolings, accumulated in f32 across spatial tiles.
    # pm rows (per batch): [full mean, top half, bottom half]; block-diagonal per batch.
    pm = pm_ref[0]                                                # (3B, B*TS) f32
    accg_ref[...] += jnp.dot(pm[0:B], glo,
                             preferred_element_type=jnp.float32)          # (B, 512)
    accpc_ref[...] += jnp.dot(pm, y[:, 512:1536],
                              preferred_element_type=jnp.float32)         # (3B, 1024)

    # --- fused head on the last spatial tile
    @pl.when(step == pl.num_programs(0) - 1)
    def _head():
        glo_p = accg_ref[...]                                     # (B, 512) glo/glo_drop pooled
        pc = accpc_ref[...]                                       # (3B, 1024) [par|cha]
        gpar = pc[0:B, 0:512]                                     # global pool of partial branch
        p0 = pc[B:2 * B, 0:512]                                   # top-half pool
        p1 = pc[2 * B:3 * B, 0:512]                               # bottom-half pool
        cha = pc[0:B, 512:1024]                                   # channel branch pooled

        # 5 BNNeck3 necks are deepcopies -> one shared-weight matmul ('before'),
        # plus the shared BN affine ('after').  Eval embedding uses 'before'
        # exactly as the PyTorch code stacks the *_before tensors.
        xn = jnp.concatenate([glo_p, gpar, p0, p1], axis=0)       # (4B, 512)
        before = jnp.dot(xn.astype(jnp.bfloat16), wn_ref[...],
                         preferred_element_type=jnp.float32)      # (4B, FEATS)
        after = before * ns_ref[...] + nb_ref[...]

        # shared channel head (Conv+BN+ReLU, BN folded into wsh) + two BNNeck affines
        xc = jnp.concatenate([cha[:, 0:CHS], cha[:, CHS:2 * CHS]], axis=0)  # (2B, 256)
        bc = jnp.dot(xc.astype(jnp.bfloat16), wsh_ref[...],
                     preferred_element_type=jnp.float32)
        bc = jnp.maximum(bc + hb_ref[...], 0.0)                   # (2B, FEATS) = c 'before'
        c0_after = bc[0:B] * c0s_ref[...] + c0b_ref[...]
        c1_after = bc[B:2 * B] * c1s_ref[...] + c1b_ref[...]

        # feature averaging as direct row adds (glo_avg == f_glo_after: drop path dup)
        p_avg = (after[B:2 * B] + after[2 * B:3 * B] + after[3 * B:4 * B]) * (1.0 / 3.0)
        glo_avg = after[0:B]
        c_avg = 0.5 * (c0_after + c1_after)

        # classifiers (reduction_0/1 classifiers are deepcopies -> shared weight)
        pg = jnp.concatenate([p_avg, glo_avg], axis=0)            # (2B, FEATS)
        s_pg = jnp.dot(pg.astype(jnp.bfloat16), wcls_ref[...],
                       preferred_element_type=jnp.float32)
        s_c = jnp.dot(c_avg.astype(jnp.bfloat16), wccls_ref[...],
                      preferred_element_type=jnp.float32)
        sc_ref[...] = jnp.concatenate([s_pg, s_c], axis=0)        # (3B, NUM_CLASSES)

        # eval stack rows: [glo, glo_drop(=glo), p0, p1, p2, c0, c1] 'before' features
        eval_ref[...] = jnp.concatenate(
            [before[0:B], before[0:B], before[B:4 * B], bc], axis=0)       # (7B, FEATS)


# ------------------------------ pallas wrapper ------------------------------

def lmbn_forward_call(patches, pool_mat, P, *, B, TS):
    n_tiles = patches.shape[2] // TS

    def fixed(arr):
        nd = arr.ndim
        return pl.BlockSpec(arr.shape, lambda j: (0,) * nd)

    weights = (P['w1'], P['b1'], P['w2'], P['b2'], P['w3'], P['b3'],
               P['wg'], P['bg'], P['wd'], P['bd'],
               P['wn'], P['ns'], P['nb'], P['wsh'], P['hb'],
               P['c0s'], P['c0b'], P['c1s'], P['c1b'],
               P['wcls'], P['wccls'])

    in_specs = ([pl.BlockSpec((4, B, TS, K1), lambda j: (0, 0, j, 0)),
                 pl.BlockSpec((1, 3 * B, B * TS), lambda j: (j, 0, 0))]
                + [fixed(w) for w in weights])
    out_specs = (pl.BlockSpec((7 * B, FEATS), lambda j: (0, 0)),
                 pl.BlockSpec((3 * B, NUM_CLASSES), lambda j: (0, 0)))
    out_shape = (jax.ShapeDtypeStruct((7 * B, FEATS), jnp.float32),
                 jax.ShapeDtypeStruct((3 * B, NUM_CLASSES), jnp.float32))
    scratch = [pltpu.VMEM((B, 512), jnp.float32),          # pooled glo (post-bottleneck)
               pltpu.VMEM((3 * B, 1024), jnp.float32)]     # pooled [par | cha]

    return pl.pallas_call(
        partial(_lmbn_kernel, B, TS),
        out_shape=out_shape,
        grid=(n_tiles,),
        in_specs=in_specs,
        out_specs=out_specs,
        scratch_shapes=scratch,
        compiler_params=pltpu.CompilerParams(
            dimension_semantics=("arbitrary",)),
    )(patches, pool_mat, *weights)


# ------------------------------ parameter setup ------------------------------

def fuse_bn(p, eps=1e-5):
    gamma, beta, mean, var = p
    scale = gamma / jnp.sqrt(var + eps)
    bias = beta - mean * scale
    return scale.reshape(1, -1), bias.reshape(1, -1)


def init_bn(key, c):
    k1, k2, k3, k4 = jax.random.split(key, 4)
    gamma = 1.0 + 0.1 * jax.random.normal(k1, (c,), jnp.float32)
    beta = 0.1 * jax.random.normal(k2, (c,), jnp.float32)
    mean = 0.1 * jax.random.normal(k3, (c,), jnp.float32)
    var = jnp.abs(1.0 + 0.1 * jax.random.normal(k4, (c,), jnp.float32))
    return (gamma, beta, mean, var)


def init_conv(key, cin, cout, k=1):
    fan_in = cin * k * k
    std = (2.0 / fan_in) ** 0.5
    return std * jax.random.normal(key, (cout, cin, k, k), jnp.float32)


def grouped_to_dense(w, groups):
    # (Cout, Cin/groups, 1, 1) grouped 1x1 conv -> block-diagonal (Cin, Cout) matrix.
    cout, cin_g = w.shape[0], w.shape[1]
    cin = cin_g * groups
    cout_g = cout // groups
    dense = jnp.zeros((cin, cout), jnp.float32)
    for g in range(groups):
        blk = w[g * cout_g:(g + 1) * cout_g, :, 0, 0]             # (cout_g, cin_g)
        dense = dense.at[g * cin_g:(g + 1) * cin_g,
                         g * cout_g:(g + 1) * cout_g].set(blk.T)
    return dense


def make_params(key):
    ks = iter(jax.random.split(key, 64))
    P = {}
    # conv1 3x3 s2 + BN (scale folded into weight columns)
    w1 = init_conv(next(ks), 3, 16, 3)
    w1 = jnp.transpose(w1, (2, 3, 1, 0)).reshape(27, 16)          # (kh,kw,cin)-major
    s1, b1 = fuse_bn(init_bn(next(ks), 16))
    P['w1'] = jnp.pad(w1 * s1, ((0, K1 - 27), (0, 0))).astype(jnp.bfloat16)
    P['b1'] = b1
    # conv2 1x1 + BN
    w2 = init_conv(next(ks), 16, 64)[:, :, 0, 0].T
    s2, b2 = fuse_bn(init_bn(next(ks), 64))
    P['w2'] = (w2 * s2).astype(jnp.bfloat16)
    P['b2'] = b2
    # osnet.conv3 substitute (deepcopies of one module -> shared by the 3 branches)
    w3 = init_conv(next(ks), 64, 96)[:, :, 0, 0].T
    s3, b3 = fuse_bn(init_bn(next(ks), 96))
    P['w3'] = (w3 * s3).astype(jnp.bfloat16)
    P['b3'] = b3
    # per-branch grouped 1x1 convs (96 -> 512, groups=16) + BN, batched to (96, 1536)
    wgs, bgs = [], []
    for _ in range(3):                                            # global, partial, channel
        wg = init_conv(next(ks), 96 // 16, 512)                   # (512, 6, 1, 1)
        s, b = fuse_bn(init_bn(next(ks), 512))
        wgs.append(grouped_to_dense(wg, 16) * s)
        bgs.append(b)
    P['wg'] = jnp.concatenate(wgs, axis=1).astype(jnp.bfloat16)   # (96, 1536)
    P['bg'] = jnp.concatenate(bgs, axis=1)
    # BatchFeatureErase_Top bottleneck (OSBlock substitute: 1x1 conv + BN + ReLU)
    wd = init_conv(next(ks), 512, 512)[:, :, 0, 0].T
    sd, bd = fuse_bn(init_bn(next(ks), 512))
    P['wd'] = (wd * sd).astype(jnp.bfloat16)
    P['bd'] = bd
    # BNNeck3_neck(512, feats) deepcopied 5x -> shared; BN kept separate
    # (the pre-BN 'before' output is the eval embedding).
    P['wn'] = init_conv(next(ks), 512, FEATS)[:, :, 0, 0].T.astype(jnp.bfloat16)
    P['ns'], P['nb'] = fuse_bn(init_bn(next(ks), FEATS))
    # shared channel head: Conv2d(256, feats, 1, bias=False) + BN + ReLU (BN folded)
    wsh = init_conv(next(ks), CHS, FEATS)[:, :, 0, 0].T
    hs, hb = fuse_bn(init_bn(next(ks), FEATS))
    P['wsh'] = (wsh * hs).astype(jnp.bfloat16)
    P['hb'] = hb
    # BNNeck_neck(feats) x2 (separate instances)
    P['c0s'], P['c0b'] = fuse_bn(init_bn(next(ks), FEATS))
    P['c1s'], P['c1b'] = fuse_bn(init_bn(next(ks), FEATS))
    # classifiers: reduction_0/1_classifier are deepcopies -> shared weight
    std = (2.0 / FEATS) ** 0.5
    P['wcls'] = (std * jax.random.normal(next(ks), (FEATS, NUM_CLASSES))).astype(jnp.bfloat16)
    P['wccls'] = (std * jax.random.normal(next(ks), (FEATS, NUM_CLASSES))).astype(jnp.bfloat16)
    return P


# -------------------------------- forward pass --------------------------------

def im2col_quads(x_nhwc):
    """im2col for conv1 (3x3, stride 2, pad 1), output pixels grouped into the four
    2x2 max-pool taps: returns (4, B, H2*W2, 27) with the quad axis leading."""
    B, H, W, C = x_nhwc.shape
    H2, W2 = H // 4, W // 4
    xp = jnp.pad(x_nhwc, ((0, 0), (1, 1), (1, 1), (0, 0)))
    quads = []
    for di in range(2):
        for dj in range(2):
            taps = []
            for dh in range(3):
                for dw in range(3):
                    h0 = 2 * di + dh
                    w0 = 2 * dj + dw
                    taps.append(xp[:, h0:h0 + 4 * H2 - 3:4,
                                   w0:w0 + 4 * W2 - 3:4, :])      # (B,H2,W2,C)
            q = jnp.concatenate(taps, axis=-1)                    # (B,H2,W2,27)
            quads.append(q.reshape(B, H2 * W2, 9 * C))
    return jnp.stack(quads, axis=0)                               # (4,B,S,27)


def make_pool_mat(H2, W2, S, S_pad, TS, B):
    """Per-tile block-diagonal pooling matrix (n_tiles, 3B, B*TS).
    Row r*B + b pools batch b: r=0 full mean, r=1 top half, r=2 bottom half.
    Padded spatial rows get zero weight.  (Assumes even H2, like AdaptiveAvgPool2d((2,1)).)"""
    n_tiles = S_pad // TS
    idx = jnp.arange(S_pad)
    h_idx = idx // W2
    valid = idx < S
    full = jnp.where(valid, 1.0 / S, 0.0).astype(jnp.float32)
    top = jnp.where(valid & (h_idx < H2 // 2), 2.0 / S, 0.0).astype(jnp.float32)
    bot = jnp.where(valid & (h_idx >= H2 // 2), 2.0 / S, 0.0).astype(jnp.float32)
    pm = jnp.stack([full, top, bot], axis=0)                      # (3, S_pad)
    eyeB = jnp.eye(B, dtype=jnp.float32)
    big = pm[:, None, None, :] * eyeB[None, :, :, None]           # (3, Brow, Bcol, S_pad)
    big = big.reshape(3 * B, B, n_tiles, TS)
    return jnp.transpose(big, (2, 0, 1, 3)).reshape(n_tiles, 3 * B, B * TS)


def forward(x_nchw, P):
    x = jnp.transpose(x_nchw, (0, 2, 3, 1)).astype(jnp.float32)   # NCHW -> NHWC
    B, H, W, _ = x.shape
    H2, W2 = H // 4, W // 4                                       # spatial after backbone
    S = H2 * W2

    patches = im2col_quads(x)                                     # (4,B,S,27)
    patches = jnp.pad(patches, ((0, 0), (0, 0), (0, 0), (0, K1 - patches.shape[-1])))
    TS = min(512, _round_up(S, 16))                               # spatial tile (bf16-friendly)
    S_pad = _round_up(S, TS)
    if S_pad != S:
        patches = jnp.pad(patches, ((0, 0), (0, 0), (0, S_pad - S), (0, 0)))
    patches = patches.astype(jnp.bfloat16)
    pool_mat = make_pool_mat(H2, W2, S, S_pad, TS, B)             # (n_tiles, 3B, B*TS)

    eval_flat, scores = lmbn_forward_call(patches, pool_mat, P, B=B, TS=TS)

    # (7B, FEATS) -> (B, FEATS, 7), matching torch.stack([...], dim=2) in eval mode.
    eval_out = jnp.transpose(eval_flat.reshape(7, B, FEATS), (1, 2, 0))
    p_avg_score = scores[0:B]
    glo_avg_score = scores[B:2 * B]
    c_avg_score = scores[2 * B:3 * B]
    return eval_out, (p_avg_score, glo_avg_score, c_avg_score)


# ------------------------------------ main ------------------------------------

if __name__ == "__main__":
    key = jax.random.PRNGKey(0)
    kx, kp = jax.random.split(key)
    P = make_params(kp)
    x = jax.random.normal(kx, (2, 3, 32, 16), jnp.float32)        # NCHW, H/W divisible by 4
    eval_out, scores = jax.jit(forward)(x, P)
    jax.block_until_ready(eval_out)
    jax.block_until_ready(scores)
    assert eval_out.shape == (2, FEATS, 7), eval_out.shape
    assert scores[0].shape == (2, NUM_CLASSES)
    assert scores[1].shape == (2, NUM_CLASSES)
    assert scores[2].shape == (2, NUM_CLASSES)
    print("KERNEL_OK")
</pallas_src>

<mosaic_0001>
module attributes {stable_mosaic.version = 11 : i64} {
  func.func @_lmbn_kernel(%arg0: i32, %arg1: memref<4x2x32x32xbf16, #tpu.memory_space<vmem>>, %arg2: memref<1x6x64xf32, #tpu.memory_space<vmem>>, %arg3: memref<32x16xbf16, #tpu.memory_space<vmem>>, %arg4: memref<1x16xf32, #tpu.memory_space<vmem>>, %arg5: memref<16x64xbf16, #tpu.memory_space<vmem>>, %arg6: memref<1x64xf32, #tpu.memory_space<vmem>>, %arg7: memref<64x96xbf16, #tpu.memory_space<vmem>>, %arg8: memref<1x96xf32, #tpu.memory_space<vmem>>, %arg9: memref<96x1536xbf16, #tpu.memory_space<vmem>>, %arg10: memref<1x1536xf32, #tpu.memory_space<vmem>>, %arg11: memref<512x512xbf16, #tpu.memory_space<vmem>>, %arg12: memref<1x512xf32, #tpu.memory_space<vmem>>, %arg13: memref<512x128xbf16, #tpu.memory_space<vmem>>, %arg14: memref<1x128xf32, #tpu.memory_space<vmem>>, %arg15: memref<1x128xf32, #tpu.memory_space<vmem>>, %arg16: memref<256x128xbf16, #tpu.memory_space<vmem>>, %arg17: memref<1x128xf32, #tpu.memory_space<vmem>>, %arg18: memref<1x128xf32, #tpu.memory_space<vmem>>, %arg19: memref<1x128xf32, #tpu.memory_space<vmem>>, %arg20: memref<1x128xf32, #tpu.memory_space<vmem>>, %arg21: memref<1x128xf32, #tpu.memory_space<vmem>>, %arg22: memref<128x64xbf16, #tpu.memory_space<vmem>>, %arg23: memref<128x64xbf16, #tpu.memory_space<vmem>>, %arg24: memref<14x128xf32, #tpu.memory_space<vmem>>, %arg25: memref<6x64xf32, #tpu.memory_space<vmem>>, %arg26: memref<2x512xf32, #tpu.memory_space<vmem>>, %arg27: memref<6x1024xf32, #tpu.memory_space<vmem>>) attributes {dimension_semantics = [#tpu.dimension_semantics<arbitrary>], iteration_bounds = array<i64: 1>, scalar_prefetch = 0 : i64, scratch_operands = 2 : i64, tpu.core_type = #tpu.core_type<tc>, window_params = [{transform_indices = @transform_0, window_bounds = array<i64: 4, 2, 32, 32>}, {transform_indices = @transform_1, window_bounds = array<i64: 1, 6, 64>}, {pipeline_mode = #tpu.pipeline_mode<synchronous>, transform_indices = @transform_2, window_bounds = array<i64: 32, 16>}, {pipeline_mode = #tpu.pipeline_mode<synchronous>, transform_indices = @transform_3, window_bounds = array<i64: 1, 16>}, {pipeline_mode = #tpu.pipeline_mode<synchronous>, transform_indices = @transform_4, window_bounds = array<i64: 16, 64>}, {pipeline_mode = #tpu.pipeline_mode<synchronous>, transform_indices = @transform_5, window_bounds = array<i64: 1, 64>}, {pipeline_mode = #tpu.pipeline_mode<synchronous>, transform_indices = @transform_6, window_bounds = array<i64: 64, 96>}, {pipeline_mode = #tpu.pipeline_mode<synchronous>, transform_indices = @transform_7, window_bounds = array<i64: 1, 96>}, {pipeline_mode = #tpu.pipeline_mode<synchronous>, transform_indices = @transform_8, window_bounds = array<i64: 96, 1536>}, {pipeline_mode = #tpu.pipeline_mode<synchronous>, transform_indices = @transform_9, window_bounds = array<i64: 1, 1536>}, {pipeline_mode = #tpu.pipeline_mode<synchronous>, transform_indices = @transform_10, window_bounds = array<i64: 512, 512>}, {pipeline_mode = #tpu.pipeline_mode<synchronous>, transform_indices = @transform_11, window_bounds = array<i64: 1, 512>}, {pipeline_mode = #tpu.pipeline_mode<synchronous>, transform_indices = @transform_12, window_bounds = array<i64: 512, 128>}, {pipeline_mode = #tpu.pipeline_mode<synchronous>, transform_indices = @transform_13, window_bounds = array<i64: 1, 128>}, {pipeline_mode = #tpu.pipeline_mode<synchronous>, transform_indices = @transform_14, window_bounds = array<i64: 1, 128>}, {pipeline_mode = #tpu.pipeline_mode<synchronous>, transform_indices = @transform_15, window_bounds = array<i64: 256, 128>}, {pipeline_mode = #tpu.pipeline_mode<synchronous>, transform_indices = @transform_16, window_bounds = array<i64: 1, 128>}, {pipeline_mode = #tpu.pipeline_mode<synchronous>, transform_indices = @transform_17, window_bounds = array<i64: 1, 128>}, {pipeline_mode = #tpu.pipeline_mode<synchronous>, transform_indices = @transform_18, window_bounds = array<i64: 1, 128>}, {pipeline_mode = #tpu.pipeline_mode<synchronous>, transform_indices = @transform_19, window_bounds = array<i64: 1, 128>}, {pipeline_mode = #tpu.pipeline_mode<synchronous>, transform_indices = @transform_20, window_bounds = array<i64: 1, 128>}, {pipeline_mode = #tpu.pipeline_mode<synchronous>, transform_indices = @transform_21, window_bounds = array<i64: 128, 64>}, {pipeline_mode = #tpu.pipeline_mode<synchronous>, transform_indices = @transform_22, window_bounds = array<i64: 128, 64>}, {pipeline_mode = #tpu.pipeline_mode<synchronous>, transform_indices = @transform_23, window_bounds = array<i64: 14, 128>}, {pipeline_mode = #tpu.pipeline_mode<synchronous>, transform_indices = @transform_24, window_bounds = array<i64: 6, 64>}]} {
    %c0_i32 = arith.constant 0 : i32
    %0 = arith.cmpi eq, %arg0, %c0_i32 : i32
    %1 = arith.extui %0 : i1 to i32
    %c0_i32_0 = arith.constant 0 : i32
    %2 = arith.cmpi ne, %1, %c0_i32_0 : i32
    scf.if %2 {
      %cst_48 = arith.constant 0.000000e+00 : f32
      %72 = vector.broadcast %cst_48 : f32 to vector<2x512xf32>
      %c0_49 = arith.constant 0 : index
      %c0_50 = arith.constant 0 : index
      %73 = vector.load %arg26[%c0_49, %c0_50] : memref<2x512xf32, #tpu.memory_space<vmem>>, vector<2x512xf32>
      tpu.vector_store %arg26[%c0_49, %c0_50], %72 {strides = array<i32>} : memref<2x512xf32, #tpu.memory_space<vmem>>, vector<2x512xf32>,
      %cst_51 = arith.constant 0.000000e+00 : f32
      %74 = vector.broadcast %cst_51 : f32 to vector<6x1024xf32>
      %c0_52 = arith.constant 0 : index
      %c0_53 = arith.constant 0 : index
      %75 = vector.load %arg27[%c0_52, %c0_53] : memref<6x1024xf32, #tpu.memory_space<vmem>>, vector<6x1024xf32>
      tpu.vector_store %arg27[%c0_52, %c0_53], %74 {strides = array<i32>} : memref<6x1024xf32, #tpu.memory_space<vmem>>, vector<6x1024xf32>,
    } else {
    }
    %c0 = arith.constant 0 : index
    %c0_1 = arith.constant 0 : index
    %c0_2 = arith.constant 0 : index
    %c0_3 = arith.constant 0 : index
    %3 = vector.load %arg1[%c0, %c0_1, %c0_2, %c0_3] : memref<4x2x32x32xbf16, #tpu.memory_space<vmem>>, vector<4x2x32x32xbf16>
    %4 = vector.shape_cast %3 : vector<4x2x32x32xbf16> to vector<256x32xbf16>
    %c0_4 = arith.constant 0 : index
    %c0_5 = arith.constant 0 : index
    %5 = vector.load %arg3[%c0_4, %c0_5] : memref<32x16xbf16, #tpu.memory_space<vmem>>, vector<32x16xbf16>
    %cst = arith.constant dense<0.000000e+00> : vector<256x16xf32>
    %6 = tpu.matmul %4, %5, %cst {dimension_numbers = #tpu.dot_dimension_numbers<[1], [0], [0], [1], [0, 0, 1, 1], [], []>} : vector<256x32xbf16>, vector<32x16xbf16>, vector<256x16xf32> -> vector<256x16xf32>
    %c0_6 = arith.constant 0 : index
    %c0_7 = arith.constant 0 : index
    %7 = vector.load %arg4[%c0_6, %c0_7] : memref<1x16xf32, #tpu.memory_space<vmem>>, vector<1x16xf32>
    %8 = vector.broadcast %7 : vector<1x16xf32> to vector<256x16xf32>
    %9 = arith.addf %6, %8 : vector<256x16xf32>
    %cst_8 = arith.constant 0.000000e+00 : f32
    %10 = vector.broadcast %cst_8 : f32 to vector<256x16xf32>
    %11 = arith.maximumf %9, %10 : vector<256x16xf32>
    %12 = arith.truncf %11 : vector<256x16xf32> to vector<256x16xbf16>
    %c0_9 = arith.constant 0 : index
    %c0_10 = arith.constant 0 : index
    %13 = vector.load %arg5[%c0_9, %c0_10] : memref<16x64xbf16, #tpu.memory_space<vmem>>, vector<16x64xbf16>
    %cst_11 = arith.constant dense<0.000000e+00> : vector<256x64xf32>
    %14 = tpu.matmul %12, %13, %cst_11 {dimension_numbers = #tpu.dot_dimension_numbers<[1], [0], [0], [1], [0, 0, 1, 1], [], []>} : vector<256x16xbf16>, vector<16x64xbf16>, vector<256x64xf32> -> vector<256x64xf32>
    %c0_12 = arith.constant 0 : index
    %c0_13 = arith.constant 0 : index
    %15 = vector.load %arg6[%c0_12, %c0_13] : memref<1x64xf32, #tpu.memory_space<vmem>>, vector<1x64xf32>
    %16 = vector.broadcast %15 : vector<1x64xf32> to vector<256x64xf32>
    %17 = arith.addf %14, %16 : vector<256x64xf32>
    %cst_14 = arith.constant 0.000000e+00 : f32
    %18 = vector.broadcast %cst_14 : f32 to vector<256x64xf32>
    %19 = arith.maximumf %17, %18 : vector<256x64xf32>
    %20 = vector.shape_cast %19 : vector<256x64xf32> to vector<4x64x64xf32>
    %21 = vector.extract_strided_slice %20 {offsets = [0, 0, 0], sizes = [1, 64, 64], strides = [1, 1, 1]} : vector<4x64x64xf32> to vector<1x64x64xf32>
    %22 = vector.shape_cast %21 : vector<1x64x64xf32> to vector<64x64xf32>
    %23 = vector.extract_strided_slice %20 {offsets = [1, 0, 0], sizes = [1, 64, 64], strides = [1, 1, 1]} : vector<4x64x64xf32> to vector<1x64x64xf32>
    %24 = vector.shape_cast %23 : vector<1x64x64xf32> to vector<64x64xf32>
    %25 = arith.maximumf %22, %24 : vector<64x64xf32>
    %26 = vector.extract_strided_slice %20 {offsets = [2, 0, 0], sizes = [1, 64, 64], strides = [1, 1, 1]} : vector<4x64x64xf32> to vector<1x64x64xf32>
    %27 = vector.shape_cast %26 : vector<1x64x64xf32> to vector<64x64xf32>
    %28 = vector.extract_strided_slice %20 {offsets = [3, 0, 0], sizes = [1, 64, 64], strides = [1, 1, 1]} : vector<4x64x64xf32> to vector<1x64x64xf32>
    %29 = vector.shape_cast %28 : vector<1x64x64xf32> to vector<64x64xf32>
    %30 = arith.maximumf %27, %29 : vector<64x64xf32>
    %31 = arith.maximumf %25, %30 : vector<64x64xf32>
    %32 = arith.truncf %31 : vector<64x64xf32> to vector<64x64xbf16>
    %c0_15 = arith.constant 0 : index
    %c0_16 = arith.constant 0 : index
    %33 = vector.load %arg7[%c0_15, %c0_16] : memref<64x96xbf16, #tpu.memory_space<vmem>>, vector<64x96xbf16>
    %cst_17 = arith.constant dense<0.000000e+00> : vector<64x96xf32>
    %34 = tpu.matmul %32, %33, %cst_17 {dimension_numbers = #tpu.dot_dimension_numbers<[1], [0], [0], [1], [0, 0, 1, 1], [], []>} : vector<64x64xbf16>, vector<64x96xbf16>, vector<64x96xf32> -> vector<64x96xf32>
    %c0_18 = arith.constant 0 : index
    %c0_19 = arith.constant 0 : index
    %35 = vector.load %arg8[%c0_18, %c0_19] : memref<1x96xf32, #tpu.memory_space<vmem>>, vector<1x96xf32>
    %36 = vector.broadcast %35 : vector<1x96xf32> to vector<64x96xf32>
    %37 = arith.addf %34, %36 : vector<64x96xf32>
    %cst_20 = arith.constant 0.000000e+00 : f32
    %38 = vector.broadcast %cst_20 : f32 to vector<64x96xf32>
    %39 = arith.maximumf %37, %38 : vector<64x96xf32>
    %40 = arith.truncf %39 : vector<64x96xf32> to vector<64x96xbf16>
    %c0_21 = arith.constant 0 : index
    %c0_22 = arith.constant 0 : index
    %41 = vector.load %arg9[%c0_21, %c0_22] : memref<96x1536xbf16, #tpu.memory_space<vmem>>, vector<96x1536xbf16>
    %cst_23 = arith.constant dense<0.000000e+00> : vector<64x1536xf32>
    %42 = tpu.matmul %40, %41, %cst_23 {dimension_numbers = #tpu.dot_dimension_numbers<[1], [0], [0], [1], [0, 0, 1, 1], [], []>} : vector<64x96xbf16>, vector<96x1536xbf16>, vector<64x1536xf32> -> vector<64x1536xf32>
    %c0_24 = arith.constant 0 : index
    %c0_25 = arith.constant 0 : index
    %43 = vector.load %arg10[%c0_24, %c0_25] : memref<1x1536xf32, #tpu.memory_space<vmem>>, vector<1x1536xf32>
    %44 = vector.broadcast %43 : vector<1x1536xf32> to vector<64x1536xf32>
    %45 = arith.addf %42, %44 : vector<64x1536xf32>
    %cst_26 = arith.constant 0.000000e+00 : f32
    %46 = vector.broadcast %cst_26 : f32 to vector<64x1536xf32>
    %47 = arith.maximumf %45, %46 : vector<64x1536xf32>
    %48 = vector.extract_strided_slice %47 {offsets = [0, 0], sizes = [64, 512], strides = [1, 1]} : vector<64x1536xf32> to vector<64x512xf32>
    %49 = arith.truncf %48 : vector<64x512xf32> to vector<64x512xbf16>
    %c0_27 = arith.constant 0 : index
    %c0_28 = arith.constant 0 : index
    %50 = vector.load %arg11[%c0_27, %c0_28] : memref<512x512xbf16, #tpu.memory_space<vmem>>, vector<512x512xbf16>
    %cst_29 = arith.constant dense<0.000000e+00> : vector<64x512xf32>
    %51 = tpu.matmul %49, %50, %cst_29 {dimension_numbers = #tpu.dot_dimension_numbers<[1], [0], [0], [1], [0, 0, 1, 1], [], []>} : vector<64x512xbf16>, vector<512x512xbf16>, vector<64x512xf32> -> vector<64x512xf32>
    %c0_30 = arith.constant 0 : index
    %c0_31 = arith.constant 0 : index
    %52 = vector.load %arg12[%c0_30, %c0_31] : memref<1x512xf32, #tpu.memory_space<vmem>>, vector<1x512xf32>
    %53 = vector.broadcast %52 : vector<1x512xf32> to vector<64x512xf32>
    %54 = arith.addf %51, %53 : vector<64x512xf32>
    %cst_32 = arith.constant 0.000000e+00 : f32
    %55 = vector.broadcast %cst_32 : f32 to vector<64x512xf32>
    %56 = arith.maximumf %54, %55 : vector<64x512xf32>
    %c0_33 = arith.constant 0 : index
    %c0_34 = arith.constant 0 : index
    %c0_35 = arith.constant 0 : index
    %57 = vector.load %arg2[%c0_33, %c0_34, %c0_35] : memref<1x6x64xf32, #tpu.memory_space<vmem>>, vector<1x6x64xf32>
    %58 = vector.shape_cast %57 : vector<1x6x64xf32> to vector<6x64xf32>
    %c0_36 = arith.constant 0 : index
    %c0_37 = arith.constant 0 : index
    %59 = vector.load %arg26[%c0_36, %c0_37] : memref<2x512xf32, #tpu.memory_space<vmem>>, vector<2x512xf32>
    %60 = vector.extract_strided_slice %58 {offsets = [0, 0], sizes = [2, 64], strides = [1, 1]} : vector<6x64xf32> to vector<2x64xf32>
    %cst_38 = arith.constant dense<0.000000e+00> : vector<2x512xf32>
    %61 = tpu.matmul %60, %56, %cst_38 {dimension_numbers = #tpu.dot_dimension_numbers<[1], [0], [0], [1], [0, 0, 1, 1], [], []>} : vector<2x64xf32>, vector<64x512xf32>, vector<2x512xf32> -> vector<2x512xf32>
    %62 = arith.addf %59, %61 : vector<2x512xf32>
    %c0_39 = arith.constant 0 : index
    %c0_40 = arith.constant 0 : index
    %63 = vector.load %arg26[%c0_39, %c0_40] : memref<2x512xf32, #tpu.memory_space<vmem>>, vector<2x512xf32>
    tpu.vector_store %arg26[%c0_39, %c0_40], %62 {strides = array<i32>} : memref<2x512xf32, #tpu.memory_space<vmem>>, vector<2x512xf32>,
    %c0_41 = arith.constant 0 : index
    %c0_42 = arith.constant 0 : index
    %64 = vector.load %arg27[%c0_41, %c0_42] : memref<6x1024xf32, #tpu.memory_space<vmem>>, vector<6x1024xf32>
    %65 = vector.extract_strided_slice %47 {offsets = [0, 512], sizes = [64, 1024], strides = [1, 1]} : vector<64x1536xf32> to vector<64x1024xf32>
    %cst_43 = arith.constant dense<0.000000e+00> : vector<6x1024xf32>
    %66 = tpu.matmul %58, %65, %cst_43 {dimension_numbers = #tpu.dot_dimension_numbers<[1], [0], [0], [1], [0, 0, 1, 1], [], []>} : vector<6x64xf32>, vector<64x1024xf32>, vector<6x1024xf32> -> vector<6x1024xf32>
    %67 = arith.addf %64, %66 : vector<6x1024xf32>
    %c0_44 = arith.constant 0 : index
    %c0_45 = arith.constant 0 : index
    %68 = vector.load %arg27[%c0_44, %c0_45] : memref<6x1024xf32, #tpu.memory_space<vmem>>, vector<6x1024xf32>
    tpu.vector_store %arg27[%c0_44, %c0_45], %67 {strides = array<i32>} : memref<6x1024xf32, #tpu.memory_space<vmem>>, vector<6x1024xf32>,
    %c0_i32_46 = arith.constant 0 : i32
    %69 = arith.cmpi eq, %arg0, %c0_i32_46 : i32
    %70 = arith.extui %69 : i1 to i32
    %c0_i32_47 = arith.constant 0 : i32
    %71 = arith.cmpi ne, %70, %c0_i32_47 : i32
    scf.if %71 {
      %c0_48 = arith.constant 0 : index
      %c0_49 = arith.constant 0 : index
      %72 = vector.load %arg26[%c0_48, %c0_49] : memref<2x512xf32, #tpu.memory_space<vmem>>, vector<2x512xf32>
      %c0_50 = arith.constant 0 : index
      %c0_51 = arith.constant 0 : index
      %73 = vector.load %arg27[%c0_50, %c0_51] : memref<6x1024xf32, #tpu.memory_space<vmem>>, vector<6x1024xf32>
      %74 = vector.extract_strided_slice %73 {offsets = [0, 0], sizes = [2, 512], strides = [1, 1]} : vector<6x1024xf32> to vector<2x512xf32>
      %75 = vector.extract_strided_slice %73 {offsets = [2, 0], sizes = [2, 512], strides = [1, 1]} : vector<6x1024xf32> to vector<2x512xf32>
      %76 = vector.extract_strided_slice %73 {offsets = [4, 0], sizes = [2, 512], strides = [1, 1]} : vector<6x1024xf32> to vector<2x512xf32>
      %77 = vector.extract_strided_slice %73 {offsets = [0, 512], sizes = [2, 512], strides = [1, 1]} : vector<6x1024xf32> to vector<2x512xf32>
      %78 = tpu.concatenate %72, %74, %75, %76 in 0 : vector<2x512xf32>, vector<2x512xf32>, vector<2x512xf32>, vector<2x512xf32> -> vector<8x512xf32>
      %79 = arith.truncf %78 : vector<8x512xf32> to vector<8x512xbf16>
      %c0_52 = arith.constant 0 : index
      %c0_53 = arith.constant 0 : index
      %80 = vector.load %arg13[%c0_52, %c0_53] : memref<512x128xbf16, #tpu.memory_space<vmem>>, vector<512x128xbf16>
      %cst_54 = arith.constant dense<0.000000e+00> : vector<8x128xf32>
      %81 = tpu.matmul %79, %80, %cst_54 {dimension_numbers = #tpu.dot_dimension_numbers<[1], [0], [0], [1], [0, 0, 1, 1], [], []>} : vector<8x512xbf16>, vector<512x128xbf16>, vector<8x128xf32> -> vector<8x128xf32>
      %c0_55 = arith.constant 0 : index
      %c0_56 = arith.constant 0 : index
      %82 = vector.load %arg14[%c0_55, %c0_56] : memref<1x128xf32, #tpu.memory_space<vmem>>, vector<1x128xf32>
      %83 = vector.broadcast %82 : vector<1x128xf32> to vector<8x128xf32>
      %84 = arith.mulf %81, %83 : vector<8x128xf32>
      %c0_57 = arith.constant 0 : index
      %c0_58 = arith.constant 0 : index
      %85 = vector.load %arg15[%c0_57, %c0_58] : memref<1x128xf32, #tpu.memory_space<vmem>>, vector<1x128xf32>
      %86 = vector.broadcast %85 : vector<1x128xf32> to vector<8x128xf32>
      %87 = arith.addf %84, %86 : vector<8x128xf32>
      %88 = vector.extract_strided_slice %77 {offsets = [0, 0], sizes = [2, 256], strides = [1, 1]} : vector<2x512xf32> to vector<2x256xf32>
      %89 = vector.extract_strided_slice %77 {offsets = [0, 256], sizes = [2, 256], strides = [1, 1]} : vector<2x512xf32> to vector<2x256xf32>
      %90 = tpu.concatenate %88, %89 in 0 : vector<2x256xf32>, vector<2x256xf32> -> vector<4x256xf32>
      %91 = arith.truncf %90 : vector<4x256xf32> to vector<4x256xbf16>
      %c0_59 = arith.constant 0 : index
      %c0_60 = arith.constant 0 : index
      %92 = vector.load %arg16[%c0_59, %c0_60] : memref<256x128xbf16, #tpu.memory_space<vmem>>, vector<256x128xbf16>
      %cst_61 = arith.constant dense<0.000000e+00> : vector<4x128xf32>
      %93 = tpu.matmul %91, %92, %cst_61 {dimension_numbers = #tpu.dot_dimension_numbers<[1], [0], [0], [1], [0, 0, 1, 1], [], []>} : vector<4x256xbf16>, vector<256x128xbf16>, vector<4x128xf32> -> vector<4x128xf32>
      %c0_62 = arith.constant 0 : index
      %c0_63 = arith.constant 0 : index
      %94 = vector.load %arg17[%c0_62, %c0_63] : memref<1x128xf32, #tpu.memory_space<vmem>>, vector<1x128xf32>
      %95 = vector.broadcast %94 : vector<1x128xf32> to vector<4x128xf32>
      %96 = arith.addf %93, %95 : vector<4x128xf32>
      %cst_64 = arith.constant 0.000000e+00 : f32
      %97 = vector.broadcast %cst_64 : f32 to vector<4x128xf32>
      %98 = arith.maximumf %96, %97 : vector<4x128xf32>
      %99 = vector.extract_strided_slice %98 {offsets = [0, 0], sizes = [2, 128], strides = [1, 1]} : vector<4x128xf32> to vector<2x128xf32>
      %c0_65 = arith.constant 0 : index
      %c0_66 = arith.constant 0 : index
      %100 = vector.load %arg18[%c0_65, %c0_66] : memref<1x128xf32, #tpu.memory_space<vmem>>, vector<1x128xf32>
      %101 = vector.broadcast %100 : vector<1x128xf32> to vector<2x128xf32>
      %102 = arith.mulf %99, %101 : vector<2x128xf32>
      %c0_67 = arith.constant 0 : index
      %c0_68 = arith.constant 0 : index
      %103 = vector.load %arg19[%c0_67, %c0_68] : memref<1x128xf32, #tpu.memory_space<vmem>>, vector<1x128xf32>
      %104 = vector.broadcast %103 : vector<1x128xf32> to vector<2x128xf32>
      %105 = arith.addf %102, %104 : vector<2x128xf32>
      %106 = vector.extract_strided_slice %98 {offsets = [2, 0], sizes = [2, 128], strides = [1, 1]} : vector<4x128xf32> to vector<2x128xf32>
      %c0_69 = arith.constant 0 : index
      %c0_70 = arith.constant 0 : index
      %107 = vector.load %arg20[%c0_69, %c0_70] : memref<1x128xf32, #tpu.memory_space<vmem>>, vector<1x128xf32>
      %108 = vector.broadcast %107 : vector<1x128xf32> to vector<2x128xf32>
      %109 = arith.mulf %106, %108 : vector<2x128xf32>
      %c0_71 = arith.constant 0 : index
      %c0_72 = arith.constant 0 : index
      %110 = vector.load %arg21[%c0_71, %c0_72] : memref<1x128xf32, #tpu.memory_space<vmem>>, vector<1x128xf32>
      %111 = vector.broadcast %110 : vector<1x128xf32> to vector<2x128xf32>
      %112 = arith.addf %109, %111 : vector<2x128xf32>
      %113 = vector.extract_strided_slice %87 {offsets = [2, 0], sizes = [2, 128], strides = [1, 1]} : vector<8x128xf32> to vector<2x128xf32>
      %114 = vector.extract_strided_slice %87 {offsets = [4, 0], sizes = [2, 128], strides = [1, 1]} : vector<8x128xf32> to vector<2x128xf32>
      %115 = arith.addf %113, %114 : vector<2x128xf32>
      %116 = vector.extract_strided_slice %87 {offsets = [6, 0], sizes = [2, 128], strides = [1, 1]} : vector<8x128xf32> to vector<2x128xf32>
      %117 = arith.addf %115, %116 : vector<2x128xf32>
      %cst_73 = arith.constant 0.333333343 : f32
      %118 = vector.broadcast %cst_73 : f32 to vector<2x128xf32>
      %119 = arith.mulf %117, %118 : vector<2x128xf32>
      %120 = vector.extract_strided_slice %87 {offsets = [0, 0], sizes = [2, 128], strides = [1, 1]} : vector<8x128xf32> to vector<2x128xf32>
      %121 = arith.addf %105, %112 : vector<2x128xf32>
      %cst_74 = arith.constant 5.000000e-01 : f32
      %122 = vector.broadcast %cst_74 : f32 to vector<2x128xf32>
      %123 = arith.mulf %122, %121 : vector<2x128xf32>
      %124 = tpu.concatenate %119, %120 in 0 : vector<2x128xf32>, vector<2x128xf32> -> vector<4x128xf32>
      %125 = arith.truncf %124 : vector<4x128xf32> to vector<4x128xbf16>
      %c0_75 = arith.constant 0 : index
      %c0_76 = arith.constant 0 : index
      %126 = vector.load %arg22[%c0_75, %c0_76] : memref<128x64xbf16, #tpu.memory_space<vmem>>, vector<128x64xbf16>
      %cst_77 = arith.constant dense<0.000000e+00> : vector<4x64xf32>
      %127 = tpu.matmul %125, %126, %cst_77 {dimension_numbers = #tpu.dot_dimension_numbers<[1], [0], [0], [1], [0, 0, 1, 1], [], []>} : vector<4x128xbf16>, vector<128x64xbf16>, vector<4x64xf32> -> vector<4x64xf32>
      %128 = arith.truncf %123 : vector<2x128xf32> to vector<2x128xbf16>
      %c0_78 = arith.constant 0 : index
      %c0_79 = arith.constant 0 : index
      %129 = vector.load %arg23[%c0_78, %c0_79] : memref<128x64xbf16, #tpu.memory_space<vmem>>, vector<128x64xbf16>
      %cst_80 = arith.constant dense<0.000000e+00> : vector<2x64xf32>
      %130 = tpu.matmul %128, %129, %cst_80 {dimension_numbers = #tpu.dot_dimension_numbers<[1], [0], [0], [1], [0, 0, 1, 1], [], []>} : vector<2x128xbf16>, vector<128x64xbf16>, vector<2x64xf32> -> vector<2x64xf32>
      %131 = tpu.concatenate %127, %130 in 0 : vector<4x64xf32>, vector<2x64xf32> -> vector<6x64xf32>
      %c0_81 = arith.constant 0 : index
      %c0_82 = arith.constant 0 : index
      %132 = vector.load %arg25[%c0_81, %c0_82] : memref<6x64xf32, #tpu.memory_space<vmem>>, vector<6x64xf32>
      tpu.vector_store %arg25[%c0_81, %c0_82], %131 {strides = array<i32>} : memref<6x64xf32, #tpu.memory_space<vmem>>, vector<6x64xf32>,
      %133 = vector.extract_strided_slice %81 {offsets = [0, 0], sizes = [2, 128], strides = [1, 1]} : vector<8x128xf32> to vector<2x128xf32>
      %134 = vector.extract_strided_slice %81 {offsets = [0, 0], sizes = [2, 128], strides = [1, 1]} : vector<8x128xf32> to vector<2x128xf32>
      %135 = vector.extract_strided_slice %81 {offsets = [2, 0], sizes = [6, 128], strides = [1, 1]} : vector<8x128xf32> to vector<6x128xf32>
      %136 = tpu.concatenate %133, %134, %135, %98 in 0 : vector<2x128xf32>, vector<2x128xf32>, vector<6x128xf32>, vector<4x128xf32> -> vector<14x128xf32>
      %c0_83 = arith.constant 0 : index
      %c0_84 = arith.constant 0 : index
      %137 = vector.load %arg24[%c0_83, %c0_84] : memref<14x128xf32, #tpu.memory_space<vmem>>, vector<14x128xf32>
      tpu.vector_store %arg24[%c0_83, %c0_84], %136 {strides = array<i32>} : memref<14x128xf32, #tpu.memory_space<vmem>>, vector<14x128xf32>,
    } else {
    }
    return
  }
  func.func @transform_0(%arg0: i32) -> (i32, i32, i32, i32) {
    %c0_i32 = arith.constant 0 : i32
    %c0_i32_0 = arith.constant 0 : i32
    %c0_i32_1 = arith.constant 0 : i32
    %c0_i32_2 = arith.constant 0 : i32
    return %c0_i32, %c0_i32_0, %arg0, %c0_i32_1 : i32, i32, i32, i32
  }
  func.func @transform_1(%arg0: i32) -> (i32, i32, i32) {
    %c0_i32 = arith.constant 0 : i32
    %c0_i32_0 = arith.constant 0 : i32
    %c0_i32_1 = arith.constant 0 : i32
    return %arg0, %c0_i32, %c0_i32_0 : i32, i32, i32
  }
  func.func @transform_2(%arg0: i32) -> (i32, i32) {
    %c0_i32 = arith.constant 0 : i32
    %c0_i32_0 = arith.constant 0 : i32
    %c0_i32_1 = arith.constant 0 : i32
    return %c0_i32, %c0_i32_0 : i32, i32
  }
  func.func @transform_3(%arg0: i32) -> (i32, i32) {
    %c0_i32 = arith.constant 0 : i32
    %c0_i32_0 = arith.constant 0 : i32
    %c0_i32_1 = arith.constant 0 : i32
    return %c0_i32, %c0_i32_0 : i32, i32
  }
  func.func @transform_4(%arg0: i32) -> (i32, i32) {
    %c0_i32 = arith.constant 0 : i32
    %c0_i32_0 = arith.constant 0 : i32
    %c0_i32_1 = arith.constant 0 : i32
    return %c0_i32, %c0_i32_0 : i32, i32
  }
  func.func @transform_5(%arg0: i32) -> (i32, i32) {
    %c0_i32 = arith.constant 0 : i32
    %c0_i32_0 = arith.constant 0 : i32
    %c0_i32_1 = arith.constant 0 : i32
    return %c0_i32, %c0_i32_0 : i32, i32
  }
  func.func @transform_6(%arg0: i32) -> (i32, i32) {
    %c0_i32 = arith.constant 0 : i32
    %c0_i32_0 = arith.constant 0 : i32
    %c0_i32_1 = arith.constant 0 : i32
    return %c0_i32, %c0_i32_0 : i32, i32
  }
  func.func @transform_7(%arg0: i32) -> (i32, i32) {
    %c0_i32 = arith.constant 0 : i32
    %c0_i32_0 = arith.constant 0 : i32
    %c0_i32_1 = arith.constant 0 : i32
    return %c0_i32, %c0_i32_0 : i32, i32
  }
  func.func @transform_8(%arg0: i32) -> (i32, i32) {
    %c0_i32 = arith.constant 0 : i32
    %c0_i32_0 = arith.constant 0 : i32
    %c0_i32_1 = arith.constant 0 : i32
    return %c0_i32, %c0_i32_0 : i32, i32
  }
  func.func @transform_9(%arg0: i32) -> (i32, i32) {
    %c0_i32 = arith.constant 0 : i32
    %c0_i32_0 = arith.constant 0 : i32
    %c0_i32_1 = arith.constant 0 : i32
    return %c0_i32, %c0_i32_0 : i32, i32
  }
  func.func @transform_10(%arg0: i32) -> (i32, i32) {
    %c0_i32 = arith.constant 0 : i32
    %c0_i32_0 = arith.constant 0 : i32
    %c0_i32_1 = arith.constant 0 : i32
    return %c0_i32, %c0_i32_0 : i32, i32
  }
  func.func @transform_11(%arg0: i32) -> (i32, i32) {
    %c0_i32 = arith.constant 0 : i32
    %c0_i32_0 = arith.constant 0 : i32
    %c0_i32_1 = arith.constant 0 : i32
    return %c0_i32, %c0_i32_0 : i32, i32
  }
  func.func @transform_12(%arg0: i32) -> (i32, i32) {
    %c0_i32 = arith.constant 0 : i32
    %c0_i32_0 = arith.constant 0 : i32
    %c0_i32_1 = arith.constant 0 : i32
    return %c0_i32, %c0_i32_0 : i32, i32
  }
  func.func @transform_13(%arg0: i32) -> (i32, i32) {
    %c0_i32 = arith.constant 0 : i32
    %c0_i32_0 = arith.constant 0 : i32
    %c0_i32_1 = arith.constant 0 : i32
    return %c0_i32, %c0_i32_0 : i32, i32
  }
  func.func @transform_14(%arg0: i32) -> (i32, i32) {
    %c0_i32 = arith.constant 0 : i32
    %c0_i32_0 = arith.constant 0 : i32
    %c0_i32_1 = arith.constant 0 : i32
    return %c0_i32, %c0_i32_0 : i32, i32
  }
  func.func @transform_15(%arg0: i32) -> (i32, i32) {
    %c0_i32 = arith.constant 0 : i32
    %c0_i32_0 = arith.constant 0 : i32
    %c0_i32_1 = arith.constant 0 : i32
    return %c0_i32, %c0_i32_0 : i32, i32
  }
  func.func @transform_16(%arg0: i32) -> (i32, i32) {
    %c0_i32 = arith.constant 0 : i32
    %c0_i32_0 = arith.constant 0 : i32
    %c0_i32_1 = arith.constant 0 : i32
    return %c0_i32, %c0_i32_0 : i32, i32
  }
  func.func @transform_17(%arg0: i32) -> (i32, i32) {
    %c0_i32 = arith.constant 0 : i32
    %c0_i32_0 = arith.constant 0 : i32
    %c0_i32_1 = arith.constant 0 : i32
    return %c0_i32, %c0_i32_0 : i32, i32
  }
  func.func @transform_18(%arg0: i32) -> (i32, i32) {
    %c0_i32 = arith.constant 0 : i32
    %c0_i32_0 = arith.constant 0 : i32
    %c0_i32_1 = arith.constant 0 : i32
    return %c0_i32, %c0_i32_0 : i32, i32
  }
  func.func @transform_19(%arg0: i32) -> (i32, i32) {
    %c0_i32 = arith.constant 0 : i32
    %c0_i32_0 = arith.constant 0 : i32
    %c0_i32_1 = arith.constant 0 : i32
    return %c0_i32, %c0_i32_0 : i32, i32
  }
  func.func @transform_20(%arg0: i32) -> (i32, i32) {
    %c0_i32 = arith.constant 0 : i32
    %c0_i32_0 = arith.constant 0 : i32
    %c0_i32_1 = arith.constant 0 : i32
    return %c0_i32, %c0_i32_0 : i32, i32
  }
  func.func @transform_21(%arg0: i32) -> (i32, i32) {
    %c0_i32 = arith.constant 0 : i32
    %c0_i32_0 = arith.constant 0 : i32
    %c0_i32_1 = arith.constant 0 : i32
    return %c0_i32, %c0_i32_0 : i32, i32
  }
  func.func @transform_22(%arg0: i32) -> (i32, i32) {
    %c0_i32 = arith.constant 0 : i32
    %c0_i32_0 = arith.constant 0 : i32
    %c0_i32_1 = arith.constant 0 : i32
    return %c0_i32, %c0_i32_0 : i32, i32
  }
  func.func @transform_23(%arg0: i32) -> (i32, i32) {
    %c0_i32 = arith.constant 0 : i32
    %c0_i32_0 = arith.constant 0 : i32
    %c0_i32_1 = arith.constant 0 : i32
    return %c0_i32, %c0_i32_0 : i32, i32
  }
  func.func @transform_24(%arg0: i32) -> (i32, i32) {
    %c0_i32 = arith.constant 0 : i32
    %c0_i32_0 = arith.constant 0 : i32
    %c0_i32_1 = arith.constant 0 : i32
    return %c0_i32, %c0_i32_0 : i32, i32
  }
}

</mosaic_0001>

<bundles_post_ra>
// kernel: forward.1
= control target key start
LH: loop header
LB: loop body
LE: loop exit
PB: predicated region body
PF: predicated region fallthrough
CT: control target
= control target key end

     0   :  { %vm225_vm0 = vcmask 261120   ;;  %vm498_vm1 = vcmask 130048   ;;  %vm807_vm2 = vcmask 523264   ;;  %vm1393_vm3 = vcmask 785408   ;;  %s7237_s2 = inlined_call_operand.vmem [shape: bf16[32,16], index: 2, kind: input, shape index: {}]   ;;  %s7238_s0 = inlined_call_operand.vmem [shape: bf16[4,2,32,32], index: 0, kind: input, shape index: {}]   ;;  %s7239_s4 = inlined_call_operand.vmem [shape: bf16[16,64], index: 4, kind: input, shape index: {}]   ;;  %s7240_s3 = inlined_call_operand.vmem [shape: f32[1,16], index: 3, kind: input, shape index: {}]   ;;  %s7241_s6 = inlined_call_operand.vmem [shape: bf16[64,96], index: 6, kind: input, shape index: {}]   ;;  %s7242_s8 = inlined_call_operand.vmem [shape: bf16[96,1536], index: 8, kind: input, shape index: {}]   ;;  %s7243_s5 = inlined_call_operand.vmem [shape: f32[1,64], index: 5, kind: input, shape index: {}]   ;;  %s7244_s10 = inlined_call_operand.vmem [shape: bf16[512,512], index: 10, kind: input, shape index: {}]   ;;  %s7245_s7 = inlined_call_operand.vmem [shape: f32[1,96], index: 7, kind: input, shape index: {}]   ;;  %s7246_s9 = inlined_call_operand.vmem [shape: f32[1,1536], index: 9, kind: input, shape index: {}]   ;;  %s7247_s1 = inlined_call_operand.vmem [shape: f32[1,6,64], index: 1, kind: input, shape index: {}]   ;;  %s7248_s11 = inlined_call_operand.vmem [shape: f32[1,512], index: 11, kind: input, shape index: {}]   ;;  %s7249_s12 = inlined_call_operand.vmem [shape: bf16[512,128], index: 12, kind: input, shape index: {}]   ;;  %s7250_s15 = inlined_call_operand.vmem [shape: bf16[256,128], index: 15, kind: input, shape index: {}]   ;;  %s7251_s21 = inlined_call_operand.vmem [shape: bf16[128,64], index: 21, kind: input, shape index: {}]   ;;  %s7252_s22 = inlined_call_operand.vmem [shape: bf16[128,64], index: 22, kind: input, shape index: {}]   ;;  %s7253_s13 = inlined_call_operand.vmem [shape: f32[1,128], index: 13, kind: input, shape index: {}]   ;;  %s7254_s14 = inlined_call_operand.vmem [shape: f32[1,128], index: 14, kind: input, shape index: {}]   ;;  %s7255_s23 = inlined_call_operand.vmem [shape: f32[14,128], index: 23, kind: output, shape index: {0}]   ;;  %s7256_s16 = inlined_call_operand.vmem [shape: f32[1,128], index: 16, kind: input, shape index: {}]   ;;  %s7257_s17 = inlined_call_operand.vmem [shape: f32[1,128], index: 17, kind: input, shape index: {}]   ;;  %s7258_s19 = inlined_call_operand.vmem [shape: f32[1,128], index: 19, kind: input, shape index: {}]   ;;  %s7259_s20 = inlined_call_operand.vmem [shape: f32[1,128], index: 20, kind: input, shape index: {}]   ;;  %s7260_s18 = inlined_call_operand.vmem [shape: f32[1,128], index: 18, kind: input, shape index: {}]   ;;  %s7261_s24 = inlined_call_operand.vmem [shape: f32[6,64], index: 24, kind: output, shape index: {1}]  }
   0x1   :  { %7267 = sst [smem:[#allocation4_spill]] %s7237_s2  ;;  %vm3595_vm4 = vcmask 1041408   ;;  %vm3600_vm5 = vcmask 1043456   ;;  %vm3605_vm6 = vcmask 1045504   ;;  %vm5609_vm7 = vmmov 0  }
   0x2   :  { %7268 = sst [smem:[#allocation5_spill]] %s7238_s0  ;;  %s7276_s27 = sld [smem:[#allocation4_spill]]  ;;  %vm4417_vm8 = vcmask 521216  }
   0x3   :  { %7269 = sst [smem:[#allocation6_spill]] %s7239_s4  ;;  %s7277_s2 = sld [smem:[#allocation5_spill]] }
   0x4   :  { %7270 = sst [smem:[#allocation7_spill]] %s7240_s3 }
   0x5   :  { %7271 = sst [smem:[#allocation8_spill]] %s7241_s6 }
   0x6   :  { %7272 = sst [smem:[#allocation9_spill]] %s7242_s8  ;;  %s7279_s8 = sld [smem:[#allocation7_spill]] }
   0x7   :  { %7273 = sst [smem:[#allocation10_spill]] %s7243_s5 }
   0x8   :  { %7274 = sst [smem:[#allocation11_spill]] %s7244_s10  ;;  %v5219_v0 = vld [vmem:[%s7276_s27] sm:$0xff]   ;;  %v5220_v1 = vld [vmem:[%s7276_s27 + $0x8] sm:$0xff]   ;;  %s7280_s27 = sld [smem:[#allocation8_spill]] }
   0x9   :  { %7275 = sst [smem:[#allocation12_spill]] %s7245_s7  ;;  %4929 = vmatprep.subr.bf16.mxu0 %v5219_v0  ;;  %v5221_v2 = vld [vmem:[%s7277_s2] sm:$0xff]   ;;  %v5222_v3 = vld [vmem:[%s7277_s2 + $0x8] sm:$0xff]   ;;  %v5223_v4 = vld [vmem:[%s7277_s2 + $0x10] sm:$0xff]   ;;  %s7278_s7 = sld [smem:[#allocation6_spill]] }
   0xa   :  { %4930 = vmatpush3.bf16.msra.mxu0 %v5219_v0  ;;  %4933 = vmatprep.mubr.msk.bf16.mxu0 %vm225_vm0, %v5221_v2  ;;  %v5224_v5 = vld [vmem:[%s7277_s2 + $0x18] sm:$0xff]   ;;  %v5225_v6 = vld [vmem:[%s7277_s2 + $0x20] sm:$0xff]   ;;  %v5226_v7 = vld [vmem:[%s7277_s2 + $0x28] sm:$0xff]   ;;  %s7282_s4 = sld [smem:[#allocation10_spill]]  ;;  %s7283_s25 = sld [smem:[#allocation12_spill]] }
   0xb   :  { %4931 = vmatprep.subr.bf16.mxu0 %v5220_v1  ;;  %v5227_v8 = vld [vmem:[%s7277_s2 + $0x30] sm:$0xff]   ;;  %v5228_v9 = vld [vmem:[%s7277_s2 + $0x38] sm:$0xff]   ;;  %v5229_v10 = vld [vmem:[%s7277_s2 + $0x40] sm:$0xff]   ;;  %s7284_s10 = sld [smem:[#allocation11_spill]] }
   0xc   :  { %v5230_v11 = vld [vmem:[%s7277_s2 + $0x48] sm:$0xff]   ;;  %v5231_v12 = vld [vmem:[%s7277_s2 + $0x50] sm:$0xff]   ;;  %v5232_v13 = vld [vmem:[%s7277_s2 + $0x58] sm:$0xff]  }
   0xd   :  { %v5233_v14 = vld [vmem:[%s7277_s2 + $0x60] sm:$0xff]   ;;  %v5234_v15 = vld [vmem:[%s7277_s2 + $0x68] sm:$0xff]   ;;  %v5235_v16 = vld [vmem:[%s7277_s2 + $0x70] sm:$0xff]  }
   0xe   :  { %4932 = vmatpush3.bf16.msra.mxu0 %v5220_v1  ;;  %v5236_v17 = vld [vmem:[%s7277_s2 + $0x78] sm:$0xff]   ;;  %v5811_v19 = vld [vmem:[%s7279_s8] ss:$0 sm:$0xff] }
   0xf   :  { %v5237_v18 = vld [vmem:[%s7278_s7] sm:$0xff]   ;;  %s7281_s7 = sld [smem:[#allocation9_spill]] }
  0x10   :  { %4965 = vmatprep.subr.bf16.mxu1 %v5237_v18 }
  0x11   :  { %4934 = vmatmul.mubr.msk.bf16.vlgmr.msra.gmra.mrb[0].mxu0 %vm225_vm0, %v5222_v3  ;;  %4966 = vmatpush3.bf16.msra.mxu1 %v5237_v18 }
  0x12   :  { %4937 = vmatprep.mubr.msk.bf16.mxu0 %vm225_vm0, %v5223_v4 }
  0x19   :  { %4938 = vmatmul.mubr.msk.bf16.gmra.mrb[4].mxu0 %vm225_vm0, %v5224_v5 }
  0x1a   :  { %4941 = vmatprep.mubr.msk.bf16.mxu0 %vm225_vm0, %v5225_v6 }
  0x21   :  { %4942 = vmatmul.mubr.msk.bf16.gmra.mrb[8].mxu0 %vm225_vm0, %v5226_v7 }
  0x22   :  { %4945 = vmatprep.mubr.msk.bf16.mxu0 %vm225_vm0, %v5227_v8 }
  0x29   :  { %4946 = vmatmul.mubr.msk.bf16.gmra.mrb[12].mxu0 %vm225_vm0, %v5228_v9 }
  0x2a   :  { %4949 = vmatprep.mubr.msk.bf16.mxu0 %vm225_vm0, %v5229_v10 }
  0x31   :  { %4950 = vmatmul.mubr.msk.bf16.gmra.mrb[16].mxu0 %vm225_vm0, %v5230_v11 }
  0x32   :  { %4953 = vmatprep.mubr.msk.bf16.mxu0 %vm225_vm0, %v5231_v12 }
  0x39   :  { %4954 = vmatmul.mubr.msk.bf16.gmra.mrb[20].mxu0 %vm225_vm0, %v5232_v13 }
  0x3a   :  { %4957 = vmatprep.mubr.msk.bf16.mxu0 %vm225_vm0, %v5233_v14 }
  0x41   :  { %4958 = vmatmul.mubr.msk.bf16.gmra.mrb[24].mxu0 %vm225_vm0, %v5234_v15 }
  0x42   :  { %4961 = vmatprep.mubr.msk.bf16.mxu0 %vm225_vm0, %v5235_v16 }
  0x49   :  { %4962 = vmatmul.mubr.msk.bf16.gmra.mrb[28].mxu0 %vm225_vm0, %v5236_v17 }
  0xe4   :  { %v4935_v20 = vpop.f32.mrb[0].mxu0 }
  0xe5   :  { %v317_v21 = vadd.f32 %v4935_v20, %v5811_v19  ;;  %v308_v22 = vpop.f32.mrb[1].mxu0 }
  0xe6   :  { %v309_v23 = vadd.f32 %v5811_v19, %v308_v22  ;;  %v4936_v24 = vpop.f32.mrb[2].mxu0 }
  0xe7   :  { %v320_v25 = vadd.f32 %v4936_v24, %v5811_v19  ;;  %v311_v26 = vpop.f32.mrb[3].mxu0  ;;  %v437_v28 = vmax.f32 %v317_v21, 0.0 }
  0xe8   :  { %v312_v27 = vadd.f32 %v5811_v19, %v311_v26  ;;  %v435_v30 = vmax.f32 %v309_v23, 0.0 }
  0xe9   :  { %v438_v29 = vmax.f32 %v320_v25, 0.0 }
  0xea   :  { %v436_v31 = vmax.f32 %v312_v27, 0.0 }
  0xeb   :  { %v468_v32 = vpack.c.bf16 %v438_v29, %v437_v28 }
  0xec   :  { %v4939_v33 = vpop.f32.mrb[4].mxu0  ;;  %v467_v34 = vpack.c.bf16 %v436_v31, %v435_v30 }
  0xed   :  { %v333_v35 = vadd.f32 %v4939_v33, %v5811_v19  ;;  %v324_v36 = vpop.f32.mrb[5].mxu0 }
  0xee   :  { %v325_v37 = vadd.f32 %v5811_v19, %v324_v36  ;;  %v4940_v38 = vpop.f32.mrb[6].mxu0  ;;  %4967 = vmatprep.mubr.msk.bf16.mxu1 %vm498_vm1, %v467_v34 }
  0xef   :  { %v336_v39 = vadd.f32 %v4940_v38, %v5811_v19  ;;  %v327_v40 = vpop.f32.mrb[7].mxu0  ;;  %4968 = vmatmul.mubr.msk.bf16.vlgmr.msra.gmra.mrb[0].mxu1 %vm498_vm1, %v468_v32  ;;  %v441_v42 = vmax.f32 %v333_v35, 0.0 }
  0xf0   :  { %v328_v41 = vadd.f32 %v5811_v19, %v327_v40  ;;  %v439_v44 = vmax.f32 %v325_v37, 0.0 }
  0xf1   :  { %v442_v43 = vmax.f32 %v336_v39, 0.0 }
  0xf2   :  { %v440_v45 = vmax.f32 %v328_v41, 0.0 }
  0xf3   :  { %v470_v46 = vpack.c.bf16 %v442_v43, %v441_v42 }
  0xf4   :  { %v469_v47 = vpack.c.bf16 %v440_v45, %v439_v44  ;;  %v4943_v48 = vpop.f32.mrb[8].mxu0 }
  0xf5   :  { %v349_v49 = vadd.f32 %v4943_v48, %v5811_v19  ;;  %v340_v50 = vpop.f32.mrb[9].mxu0 }
  0xf6   :  { %v341_v51 = vadd.f32 %v5811_v19, %v340_v50  ;;  %v4944_v52 = vpop.f32.mrb[10].mxu0  ;;  %4971 = vmatprep.mubr.msk.bf16.mxu1 %vm498_vm1, %v469_v47 }
  0xf7   :  { %v352_v53 = vadd.f32 %v4944_v52, %v5811_v19  ;;  %v343_v54 = vpop.f32.mrb[11].mxu0  ;;  %4972 = vmatmul.mubr.msk.bf16.gmra.mrb[4].mxu1 %vm498_vm1, %v470_v46  ;;  %v445_v56 = vmax.f32 %v349_v49, 0.0 }
  0xf8   :  { %v344_v55 = vadd.f32 %v5811_v19, %v343_v54  ;;  %v443_v58 = vmax.f32 %v341_v51, 0.0 }
  0xf9   :  { %v446_v57 = vmax.f32 %v352_v53, 0.0 }
  0xfa   :  { %v444_v59 = vmax.f32 %v344_v55, 0.0 }
  0xfb   :  { %v472_v60 = vpack.c.bf16 %v446_v57, %v445_v56 }
  0xfc   :  { %v471_v61 = vpack.c.bf16 %v444_v59, %v443_v58  ;;  %v4947_v62 = vpop.f32.mrb[12].mxu0 }
  0xfd   :  { %v365_v63 = vadd.f32 %v4947_v62, %v5811_v19  ;;  %v356_v0 = vpop.f32.mrb[13].mxu0 }
  0xfe   :  { %v357_v1 = vadd.f32 %v5811_v19, %v356_v0  ;;  %v4948_v2 = vpop.f32.mrb[14].mxu0  ;;  %4975 = vmatprep.mubr.msk.bf16.mxu1 %vm498_vm1, %v471_v61 }
  0xff   :  { %v368_v3 = vadd.f32 %v4948_v2, %v5811_v19  ;;  %v359_v4 = vpop.f32.mrb[15].mxu0  ;;  %4976 = vmatmul.mubr.msk.bf16.gmra.mrb[8].mxu1 %vm498_vm1, %v472_v60  ;;  %v449_v6 = vmax.f32 %v365_v63, 0.0 }
 0x100   :  { %v360_v5 = vadd.f32 %v5811_v19, %v359_v4  ;;  %v447_v8 = vmax.f32 %v357_v1, 0.0 }
 0x101   :  { %v450_v7 = vmax.f32 %v368_v3, 0.0 }
 0x102   :  { %v448_v9 = vmax.f32 %v360_v5, 0.0  ;;  %v5238_v5 = vld [vmem:[%s7280_s27] sm:$0xff]  }
 0x103   :  { %v474_v10 = vpack.c.bf16 %v450_v7, %v449_v6  ;;  %4999 = vmatprep.subr.bf16.mxu1 %v5238_v5  ;;  %v5239_v6 = vld [vmem:[%s7280_s27 + $0x8] sm:$0xff]   ;;  %v5241_v7 = vld [vmem:[%s7280_s27 + $0x18] sm:$0xff]  }
 0x104   :  { %v473_v11 = vpack.c.bf16 %v448_v9, %v447_v8  ;;  %v4951_v12 = vpop.f32.mrb[16].mxu0  ;;  %5000 = vmatpush3.bf16.msra.mxu1 %v5238_v5  ;;  %v5242_v8 = vld [vmem:[%s7281_s7] ss:$48 sps:$4 sm:$0xff]   ;;  %v5244_v9 = vld [vmem:[%s7281_s7 + $0x4] ss:$48 sps:$4 sm:$0xff]  }
 0x105   :  { %v381_v13 = vadd.f32 %v4951_v12, %v5811_v19  ;;  %v372_v14 = vpop.f32.mrb[17].mxu0  ;;  %5001 = vmatprep.subr.bf16.mxu1 %v5239_v6  ;;  %1406 = vmatprep.subr.bf16.mxu0 %v5244_v9  ;;  %v5250_v12 = vld [vmem:[%s7281_s7 + $0xc4] ss:$48 sps:$4 sm:$0xff]  }
 0x106   :  { %v373_v15 = vadd.f32 %v5811_v19, %v372_v14  ;;  %v4952_v16 = vpop.f32.mrb[18].mxu0  ;;  %4979 = vmatprep.mubr.msk.bf16.mxu1 %vm498_vm1, %v473_v11  ;;  %1407 = vmatpush1.bf16.msra.mxu0 %v5242_v8  ;;  %v5245_v11 = vld [vmem:[%s7281_s7 + $0x60] ss:$48 sps:$4 sm:$0xff]  }
 0x107   :  { %v384_v17 = vadd.f32 %v4952_v16, %v5811_v19  ;;  %v375_v18 = vpop.f32.mrb[19].mxu0  ;;  %4980 = vmatmul.mubr.msk.bf16.gmra.mrb[12].mxu1 %vm498_vm1, %v474_v10  ;;  %v453_v21 = vmax.f32 %v381_v13, 0.0  ;;  %v5247_v10 = vld [vmem:[%s7281_s7 + $0x64] ss:$48 sps:$4 sm:$0xff]   ;;  %v5256_v13 = vld [vmem:[%s7281_s7 + $0xc] ss:$48 sps:$4 sm:$0xff]  }
 0x108   :  { %v376_v20 = vadd.f32 %v5811_v19, %v375_v18  ;;  %v451_v23 = vmax.f32 %v373_v15, 0.0  ;;  %5002 = vmatpush3.bf16.msra.mxu1 %v5239_v6  ;;  %1408 = vmatprep.subr.bf16.mxu0 %v5247_v10  ;;  %v5248_v14 = vld [vmem:[%s7281_s7 + $0xc0] ss:$48 sps:$4 sm:$0xff]   ;;  %v5253_v15 = vld [vmem:[%s7281_s7 + $0x124] ss:$48 sps:$4 sm:$0xff]  }
 0x109   :  { %v454_v22 = vmax.f32 %v384_v17, 0.0  ;;  %v5251_v16 = vld [vmem:[%s7281_s7 + $0x120] ss:$48 sps:$4 sm:$0xff]   ;;  %v5262_v17 = vld [vmem:[%s7281_s7 + $0x184] ss:$48 sps:$4 sm:$0xff]  }
 0x10a   :  { %v452_v24 = vmax.f32 %v376_v20, 0.0  ;;  %1409 = vmatpush1.bf16.msra.mxu0 %v5245_v11  ;;  %v5260_v18 = vld [vmem:[%s7281_s7 + $0x180] ss:$48 sps:$4 sm:$0xff]  }
 0x10b   :  { %v476_v25 = vpack.c.bf16 %v454_v22, %v453_v21  ;;  %1410 = vmatprep.subr.bf16.mxu0 %v5250_v12 }
 0x10c   :  { %v475_v26 = vpack.c.bf16 %v452_v24, %v451_v23  ;;  %v4955_v27 = vpop.f32.mrb[20].mxu0 }
 0x10d   :  { %v397_v28 = vadd.f32 %v4955_v27, %v5811_v19  ;;  %v388_v29 = vpop.f32.mrb[21].mxu0 }
 0x10e   :  { %v389_v30 = vadd.f32 %v5811_v19, %v388_v29  ;;  %v4956_v31 = vpop.f32.mrb[22].mxu0  ;;  %4983 = vmatprep.mubr.msk.bf16.mxu1 %vm498_vm1, %v475_v26  ;;  %1411 = vmatpush1.bf16.msra.mxu0 %v5248_v14 }
 0x10f   :  { %v400_v32 = vadd.f32 %v4956_v31, %v5811_v19  ;;  %v391_v33 = vpop.f32.mrb[23].mxu0  ;;  %4984 = vmatmul.mubr.msk.bf16.gmra.mrb[16].mxu1 %vm498_vm1, %v476_v25  ;;  %v457_v35 = vmax.f32 %v397_v28, 0.0  ;;  %1412 = vmatprep.subr.bf16.mxu0 %v5253_v15  ;;  %v5909_v28 = vld [vmem:[%s7282_s4] ss:$0 sm:$0xff] }
 0x110   :  { %v392_v34 = vadd.f32 %v5811_v19, %v391_v33  ;;  %v455_v37 = vmax.f32 %v389_v30, 0.0 }
 0x111   :  { %v458_v36 = vmax.f32 %v400_v32, 0.0 }
 0x112   :  { %v456_v38 = vmax.f32 %v392_v34, 0.0  ;;  %1413 = vmatpush1.bf16.msra.mxu0 %v5251_v16 }
 0x113   :  { %v478_v39 = vpack.c.bf16 %v458_v36, %v457_v35  ;;  %1414 = vmatprep.subr.bf16.mxu0 %v5262_v17 }
 0x114   :  { %v477_v40 = vpack.c.bf16 %v456_v38, %v455_v37  ;;  %v4959_v41 = vpop.f32.mrb[24].mxu0 }
 0x115   :  { %v413_v42 = vadd.f32 %v4959_v41, %v5811_v19  ;;  %v404_v43 = vpop.f32.mrb[25].mxu0 }
 0x116   :  { %v405_v44 = vadd.f32 %v5811_v19, %v404_v43  ;;  %v4960_v45 = vpop.f32.mrb[26].mxu0  ;;  %4987 = vmatprep.mubr.msk.bf16.mxu1 %vm498_vm1, %v477_v40  ;;  %1415 = vmatpush1.bf16.msra.mxu0 %v5260_v18 }
 0x117   :  { %v416_v46 = vadd.f32 %v4960_v45, %v5811_v19  ;;  %v407_v47 = vpop.f32.mrb[27].mxu0  ;;  %4988 = vmatmul.mubr.msk.bf16.gmra.mrb[20].mxu1 %vm498_vm1, %v478_v39  ;;  %v461_v49 = vmax.f32 %v413_v42, 0.0 }
 0x118   :  { %v408_v48 = vadd.f32 %v5811_v19, %v407_v47  ;;  %v459_v51 = vmax.f32 %v405_v44, 0.0 }
 0x119   :  { %v462_v50 = vmax.f32 %v416_v46, 0.0 }
 0x11a   :  { %v460_v52 = vmax.f32 %v408_v48, 0.0 }
 0x11b   :  { %v480_v53 = vpack.c.bf16 %v462_v50, %v461_v49 }
 0x11c   :  { %v479_v54 = vpack.c.bf16 %v460_v52, %v459_v51  ;;  %v4963_v55 = vpop.f32.mrb[28].mxu0 }
 0x11d   :  { %v429_v56 = vadd.f32 %v4963_v55, %v5811_v19  ;;  %v420_v57 = vpop.f32.mrb[29].mxu0 }
 0x11e   :  { %v421_v58 = vadd.f32 %v5811_v19, %v420_v57  ;;  %v4964_v59 = vpop.f32.mrb[30].mxu0  ;;  %4991 = vmatprep.mubr.msk.bf16.mxu1 %vm498_vm1, %v479_v54 }
 0x11f   :  { %v465_v60 = vmax.f32 %v429_v56, 0.0  ;;  %v432_v61 = vadd.f32 %v4964_v59, %v5811_v19  ;;  %v423_v62 = vpop.f32.mrb[31].mxu0  ;;  %4992 = vmatmul.mubr.msk.bf16.gmra.mrb[24].mxu1 %vm498_vm1, %v480_v53 }
 0x120   :  { %v463_v63 = vmax.f32 %v421_v58, 0.0  ;;  %v424_v0 = vadd.f32 %v5811_v19, %v423_v62  ;;  %v5240_v19 = vld [vmem:[%s7280_s27 + $0x10] sm:$0xff]  }
 0x121   :  { %v466_v1 = vmax.f32 %v432_v61, 0.0  ;;  %5003 = vmatprep.subr.bf16.mxu1 %v5240_v19 }
 0x122   :  { %v464_v2 = vmax.f32 %v424_v0, 0.0  ;;  %5004 = vmatpush3.bf16.msra.mxu1 %v5240_v19 }
 0x123   :  { %v482_v3 = vpack.c.bf16 %v466_v1, %v465_v60  ;;  %5005 = vmatprep.subr.bf16.mxu1 %v5241_v7 }
 0x124   :  { %v481_v4 = vpack.c.bf16 %v464_v2, %v463_v63 }
 0x126   :  { %4995 = vmatprep.mubr.msk.bf16.mxu1 %vm498_vm1, %v481_v4  ;;  %5006 = vmatpush3.bf16.msra.mxu1 %v5241_v7 }
 0x127   :  { %4996 = vmatmul.mubr.msk.bf16.gmra.mrb[28].mxu1 %vm498_vm1, %v482_v3  ;;  %1479 = vmatprep.subr.bf16.mxu1 %v5256_v13 }
 0x1c2   :  { %v4969_v20 = vpop.f32.mrb[0].mxu1 }
 0x1c3   :  { %v581_v21 = vpop.f32.mrb[1].mxu1  ;;  %v590_v29 = vadd.f32 %v4969_v20, %v5909_v28 }
 0x1c4   :  { %v4970_v22 = vpop.f32.mrb[2].mxu1  ;;  %v582_v30 = vadd.f32 %v5909_v28, %v581_v21 }
 0x1c5   :  { %v584_v23 = vpop.f32.mrb[3].mxu1  ;;  %v593_v32 = vadd.f32 %v4970_v22, %v5909_v28  ;;  %v710_v38 = vmax.f32 %v590_v29, 0.0 }
 0x1c6   :  { %v585_v35 = vadd.f32 %v5909_v28, %v584_v23  ;;  %v708_v42 = vmax.f32 %v582_v30, 0.0 }
 0x1c7   :  { %v711_v45 = vmax.f32 %v593_v32, 0.0 }
 0x1c8   :  { %v709_v48 = vmax.f32 %v585_v35, 0.0 }
 0x1ca   :  { %v4973_v24 = vpop.f32.mrb[4].mxu1 }
 0x1cb   :  { %v597_v25 = vpop.f32.mrb[5].mxu1  ;;  %v606_v51 = vadd.f32 %v4973_v24, %v5909_v28 }
 0x1cc   :  { %v4974_v26 = vpop.f32.mrb[6].mxu1  ;;  %v598_v53 = vadd.f32 %v5909_v28, %v597_v25 }
 0x1cd   :  { %v600_v27 = vpop.f32.mrb[7].mxu1  ;;  %v609_v56 = vadd.f32 %v4974_v26, %v5909_v28  ;;  %v714_v62 = vmax.f32 %v606_v51, 0.0 }
 0x1ce   :  { %v601_v59 = vadd.f32 %v5909_v28, %v600_v27  ;;  %v712_v2 = vmax.f32 %v598_v53, 0.0 }
 0x1cf   :  { %v715_v5 = vmax.f32 %v609_v56, 0.0 }
 0x1d0   :  { %v713_v7 = vmax.f32 %v601_v59, 0.0 }
 0x1d2   :  { %v4977_v31 = vpop.f32.mrb[8].mxu1 }
 0x1d3   :  { %v622_v33 = vadd.f32 %v4977_v31, %v5909_v28  ;;  %v613_v34 = vpop.f32.mrb[9].mxu1 }
 0x1d4   :  { %v614_v36 = vadd.f32 %v5909_v28, %v613_v34  ;;  %v4978_v37 = vpop.f32.mrb[10].mxu1 }
 0x1d5   :  { %v718_v39 = vmax.f32 %v622_v33, 0.0  ;;  %v625_v40 = vadd.f32 %v4978_v37, %v5909_v28  ;;  %v616_v41 = vpop.f32.mrb[11].mxu1 }
 0x1d6   :  { %v716_v43 = vmax.f32 %v614_v36, 0.0  ;;  %v617_v44 = vadd.f32 %v5909_v28, %v616_v41 }
 0x1d7   :  { %v5919_v46 = vmax.f32 %v710_v38, %v718_v39  ;;  %v719_v47 = vmax.f32 %v625_v40, 0.0 }
 0x1d8   :  { %v5921_v49 = vmax.f32 %v708_v42, %v716_v43  ;;  %v717_v50 = vmax.f32 %v617_v44, 0.0 }
 0x1d9   :  { %v5924_v52 = vmax.f32 %v711_v45, %v719_v47 }
 0x1da   :  { %v5927_v54 = vmax.f32 %v709_v48, %v717_v50  ;;  %v4981_v55 = vpop.f32.mrb[12].mxu1 }
 0x1db   :  { %v638_v57 = vadd.f32 %v4981_v55, %v5909_v28  ;;  %v629_v58 = vpop.f32.mrb[13].mxu1 }
 0x1dc   :  { %v630_v60 = vadd.f32 %v5909_v28, %v629_v58  ;;  %v4982_v61 = vpop.f32.mrb[14].mxu1 }
 0x1dd   :  { %v722_v63 = vmax.f32 %v638_v57, 0.0  ;;  %v641_v0 = vadd.f32 %v4982_v61, %v5909_v28  ;;  %v632_v1 = vpop.f32.mrb[15].mxu1 }
 0x1de   :  { %v720_v3 = vmax.f32 %v630_v60, 0.0  ;;  %v633_v4 = vadd.f32 %v5909_v28, %v632_v1 }
 0x1df   :  { %v5935_v6 = vmax.f32 %v714_v62, %v722_v63  ;;  %v723_v19 = vmax.f32 %v641_v0, 0.0 }
 0x1e0   :  { %v5937_v8 = vmax.f32 %v712_v2, %v720_v3  ;;  %v721_v9 = vmax.f32 %v633_v4, 0.0 }
 0x1e1   :  { %v5939_v10 = vmax.f32 %v715_v5, %v723_v19  ;;  %v5254_v5 = vld [vmem:[%s7281_s7 + $0x8] ss:$48 sps:$4 sm:$0xff]  }
 0x1e2   :  { %v5941_v11 = vmax.f32 %v713_v7, %v721_v9  ;;  %v4985_v12 = vpop.f32.mrb[16].mxu1  ;;  %v5259_v9 = vld [vmem:[%s7281_s7 + $0x6c] ss:$48 sps:$4 sm:$0xff]  }
 0x1e3   :  { %v645_v13 = vpop.f32.mrb[17].mxu1  ;;  %v654_v21 = vadd.f32 %v4985_v12, %v5909_v28 }
 0x1e4   :  { %v4986_v14 = vpop.f32.mrb[18].mxu1  ;;  %v646_v22 = vadd.f32 %v5909_v28, %v645_v13 }
 0x1e5   :  { %v648_v15 = vpop.f32.mrb[19].mxu1  ;;  %v657_v24 = vadd.f32 %v4986_v14, %v5909_v28  ;;  %v726_v31 = vmax.f32 %v654_v21, 0.0  ;;  %v5265_v21 = vld [vmem:[%s7281_s7 + $0xcc] ss:$48 sps:$4 sm:$0xff]  }
 0x1e6   :  { %v649_v27 = vadd.f32 %v5909_v28, %v648_v15  ;;  %v724_v35 = vmax.f32 %v646_v22, 0.0 }
 0x1e7   :  { %v727_v38 = vmax.f32 %v657_v24, 0.0  ;;  %v5268_v24 = vld [vmem:[%s7281_s7 + $0x12c] ss:$48 sps:$4 sm:$0xff]  }
 0x1e8   :  { %v725_v41 = vmax.f32 %v649_v27, 0.0  ;;  %v5277_v27 = vld [vmem:[%s7281_s7 + $0x1ec] ss:$48 sps:$4 sm:$0xff]  }
 0x1ea   :  { %v4989_v16 = vpop.f32.mrb[20].mxu1 }
 0x1eb   :  { %v661_v17 = vpop.f32.mrb[21].mxu1  ;;  %v670_v44 = vadd.f32 %v4989_v16, %v5909_v28 }
 0x1ec   :  { %v4990_v18 = vpop.f32.mrb[22].mxu1  ;;  %v662_v48 = vadd.f32 %v5909_v28, %v661_v17 }
 0x1ed   :  { %v664_v20 = vpop.f32.mrb[23].mxu1  ;;  %v673_v55 = vadd.f32 %v4990_v18, %v5909_v28  ;;  %v730_v62 = vmax.f32 %v670_v44, 0.0  ;;  %v5257_v18 = vld [vmem:[%s7281_s7 + $0x68] ss:$48 sps:$4 sm:$0xff]  }
 0x1ee   :  { %v665_v59 = vadd.f32 %v5909_v28, %v664_v20  ;;  %v728_v2 = vmax.f32 %v662_v48, 0.0  ;;  %v5278_v48 = vld [vmem:[%s7281_s7 + $0x10] ss:$48 sps:$4 sm:$0xff]  }
 0x1f0   :  { %v729_v12 = vmax.f32 %v665_v59, 0.0 }
 0x1f2   :  { %v4993_v23 = vpop.f32.mrb[24].mxu1 }
 0x1f3   :  { %v686_v25 = vadd.f32 %v4993_v23, %v5909_v28  ;;  %v677_v26 = vpop.f32.mrb[25].mxu1 }
 0x1f4   :  { %v678_v29 = vadd.f32 %v5909_v28, %v677_v26  ;;  %v4994_v30 = vpop.f32.mrb[26].mxu1  ;;  %v5274_v26 = vld [vmem:[%s7281_s7 + $0x1e4] ss:$48 sps:$4 sm:$0xff]  }
 0x1f5   :  { %v734_v32 = vmax.f32 %v686_v25, 0.0  ;;  %v689_v33 = vadd.f32 %v4994_v30, %v5909_v28  ;;  %v680_v34 = vpop.f32.mrb[27].mxu1  ;;  %v5269_v25 = vld [vmem:[%s7281_s7 + $0x188] ss:$48 sps:$4 sm:$0xff]   ;;  %1416 = vmatprep.subr.bf16.mxu0 %v5274_v26  ;;  %v5320_v26 = vld [vmem:[%s7281_s7 + $0x80] ss:$48 sps:$4 sm:$0xff]  }
 0x1f6   :  { %v732_v36 = vmax.f32 %v678_v29, 0.0  ;;  %v681_v37 = vadd.f32 %v5909_v28, %v680_v34  ;;  %v5272_v29 = vld [vmem:[%s7281_s7 + $0x1e0] ss:$48 sps:$4 sm:$0xff]   ;;  %v5275_v30 = vld [vmem:[%s7281_s7 + $0x1e8] ss:$48 sps:$4 sm:$0xff]  }
 0x1f7   :  { %v750_v39 = vmax.f32 %v726_v31, %v734_v32  ;;  %v735_v40 = vmax.f32 %v689_v33, 0.0  ;;  %1417 = vmatpush1.bf16.msra.mxu0 %v5272_v29  ;;  %v5606_v31 = vmov 0   ;;  %v5280_v32 = vld [vmem:[%s7281_s7 + $0x14] ss:$48 sps:$4 sm:$0xff]   ;;  %v5283_v33 = vld [vmem:[%s7281_s7 + $0x1c] ss:$48 sps:$4 sm:$0xff]  }
 0x1f8   :  { %v748_v42 = vmax.f32 %v724_v35, %v732_v36  ;;  %v733_v43 = vmax.f32 %v681_v37, 0.0  ;;  %1438 = vmatprep.mubr.bf16.mxu0 %v5606_v31  ;;  %1552 = vmatprep.subr.bf16.mxu0 %v5280_v32  ;;  %v4491_v34 = vld [vmem:[%s7283_s25] ss:$0 sm:$0xff]  ;;  %v5328_v29 = vld [vmem:[%s7281_s7 + $0xe4] ss:$48 sps:$4 sm:$0xff]  }
 0x1f9   :  { %v758_v45 = vmax.f32 %v5919_v46, %v750_v39  ;;  %v751_v47 = vmax.f32 %v727_v38, %v735_v40  ;;  %v5326_v32 = vld [vmem:[%s7281_s7 + $0xe0] ss:$48 sps:$4 sm:$0xff]  }
 0x1fa   :  { %v756_v50 = vmax.f32 %v5921_v49, %v748_v42  ;;  %v749_v51 = vmax.f32 %v725_v41, %v733_v43  ;;  %v4997_v53 = vpop.f32.mrb[28].mxu1 }
 0x1fb   :  { %v759_v56 = vmax.f32 %v5924_v52, %v751_v47  ;;  %v702_v57 = vadd.f32 %v4997_v53, %v5909_v28  ;;  %v693_v58 = vpop.f32.mrb[29].mxu1 }
 0x1fc   :  { %v757_v60 = vmax.f32 %v5927_v54, %v749_v51  ;;  %v694_v46 = vadd.f32 %v5909_v28, %v693_v58  ;;  %v4998_v61 = vpop.f32.mrb[30].mxu1  ;;  %v731_v54 = vmax.f32 %v673_v55, 0.0  ;;  %v5281_v51 = vld [vmem:[%s7281_s7 + $0x18] ss:$48 sps:$4 sm:$0xff]  }
 0x1fd   :  { %v765_v63 = vpack.c.bf16 %v759_v56, %v758_v45  ;;  %v738_v49 = vmax.f32 %v702_v57, 0.0  ;;  %v705_v0 = vadd.f32 %v4998_v61, %v5909_v28  ;;  %v696_v1 = vpop.f32.mrb[31].mxu1  ;;  %v5286_v56 = vld [vmem:[%s7281_s7 + $0x74] ss:$48 sps:$4 sm:$0xff]   ;;  %v5289_v57 = vld [vmem:[%s7281_s7 + $0x7c] ss:$48 sps:$4 sm:$0xff]  }
 0x1fe   :  { %v764_v3 = vpack.c.bf16 %v757_v60, %v756_v50  ;;  %v736_v52 = vmax.f32 %v694_v46, 0.0  ;;  %v697_v4 = vadd.f32 %v5909_v28, %v696_v1  ;;  %v5284_v61 = vld [vmem:[%s7281_s7 + $0x70] ss:$48 sps:$4 sm:$0xff]   ;;  %v5295_v1 = vld [vmem:[%s7281_s7 + $0xdc] ss:$48 sps:$4 sm:$0xff]  }
 0x1ff   :  { %v754_v19 = vmax.f32 %v730_v62, %v738_v49  ;;  %v739_v7 = vmax.f32 %v705_v0, 0.0  ;;  %v5287_v62 = vld [vmem:[%s7281_s7 + $0x78] ss:$48 sps:$4 sm:$0xff]   ;;  %v5292_v0 = vld [vmem:[%s7281_s7 + $0xd4] ss:$48 sps:$4 sm:$0xff]  }
 0x200   :  { %v752_v13 = vmax.f32 %v728_v2, %v736_v52  ;;  %v737_v14 = vmax.f32 %v697_v4, 0.0  ;;  %5007 = vmatprep.mubr.msk.bf16.mxu1 %vm807_vm2, %v764_v3 }
 0x201   :  { %v762_v15 = vmax.f32 %v5935_v6, %v754_v19  ;;  %v755_v16 = vmax.f32 %v731_v54, %v739_v7  ;;  %5008 = vmatmul.mubr.msk.bf16.vlgmr.msra.gmra.mrb[32].mxu1 %vm807_vm2, %v765_v63  ;;  %v5290_v54 = vld [vmem:[%s7281_s7 + $0xd0] ss:$48 sps:$4 sm:$0xff]   ;;  %v5293_v19 = vld [vmem:[%s7281_s7 + $0xd8] ss:$48 sps:$4 sm:$0xff]  }
 0x202   :  { %v760_v28 = vmax.f32 %v5937_v8, %v752_v13  ;;  %v753_v17 = vmax.f32 %v729_v12, %v737_v14  ;;  %1480 = vmatpush1.bf16.msra.mxu1 %v5254_v5  ;;  %v5263_v8 = vld [vmem:[%s7281_s7 + $0xc8] ss:$48 sps:$4 sm:$0xff]   ;;  %v5301_v12 = vld [vmem:[%s7281_s7 + $0x13c] ss:$48 sps:$4 sm:$0xff]   ;;  %v5296_v14 = vld [vmem:[%s7281_s7 + $0x130] ss:$48 sps:$4 sm:$0xff]  }
 0x203   :  { %v763_v20 = vmax.f32 %v5939_v10, %v755_v16  ;;  %1481 = vmatprep.subr.bf16.mxu1 %v5259_v9  ;;  %v5266_v10 = vld [vmem:[%s7281_s7 + $0x128] ss:$48 sps:$4 sm:$0xff]   ;;  %v5298_v9 = vld [vmem:[%s7281_s7 + $0x134] ss:$48 sps:$4 sm:$0xff]  }
 0x204   :  { %v761_v6 = vmax.f32 %v5941_v11, %v753_v17  ;;  %v5271_v11 = vld [vmem:[%s7281_s7 + $0x18c] ss:$48 sps:$4 sm:$0xff]   ;;  %v5304_v16 = vld [vmem:[%s7281_s7 + $0x194] ss:$48 sps:$4 sm:$0xff]   ;;  %v5302_v17 = vld [vmem:[%s7281_s7 + $0x190] ss:$48 sps:$4 sm:$0xff]  }
 0x205   :  { %v767_v22 = vpack.c.bf16 %v763_v20, %v762_v15  ;;  %v5299_v15 = vld [vmem:[%s7281_s7 + $0x138] ss:$48 sps:$4 sm:$0xff]   ;;  %v5310_v20 = vld [vmem:[%s7281_s7 + $0x1f4] ss:$48 sps:$4 sm:$0xff]  }
 0x206   :  { %v766_v23 = vpack.c.bf16 %v761_v6, %v760_v28  ;;  %1482 = vmatpush1.bf16.msra.mxu1 %v5257_v18  ;;  %v5307_v28 = vld [vmem:[%s7281_s7 + $0x19c] ss:$48 sps:$4 sm:$0xff]   ;;  %v5305_v18 = vld [vmem:[%s7281_s7 + $0x198] ss:$48 sps:$4 sm:$0xff]   ;;  %v5308_v6 = vld [vmem:[%s7281_s7 + $0x1f0] ss:$48 sps:$4 sm:$0xff]  }
 0x207   :  { %1483 = vmatprep.subr.bf16.mxu1 %v5265_v21  ;;  %v5313_v21 = vld [vmem:[%s7281_s7 + $0x1fc] ss:$48 sps:$4 sm:$0xff]  }
 0x208   :  { %5011 = vmatprep.mubr.msk.bf16.mxu1 %vm807_vm2, %v766_v23  ;;  %v5316_v23 = vld [vmem:[%s7281_s7 + $0x24] ss:$48 sps:$4 sm:$0xff]  }
 0x209   :  { %5012 = vmatmul.mubr.msk.bf16.gmra.mrb[36].mxu1 %vm807_vm2, %v767_v22  ;;  %v5311_v22 = vld [vmem:[%s7281_s7 + $0x1f8] ss:$48 sps:$4 sm:$0xff]  }
 0x20a   :  { %1484 = vmatpush1.bf16.msra.mxu1 %v5263_v8  ;;  %1511 = vmatprep.mubr.bf16.mxu1 %v5606_v31  ;;  %v5319_v8 = vld [vmem:[%s7281_s7 + $0x2c] ss:$48 sps:$4 sm:$0xff]  }
 0x20b   :  { %1485 = vmatprep.subr.bf16.mxu1 %v5268_v24  ;;  %v5314_v24 = vld [vmem:[%s7281_s7 + $0x20] ss:$48 sps:$4 sm:$0xff]  }
 0x20e   :  { %1486 = vmatpush1.bf16.msra.mxu1 %v5266_v10  ;;  %v5317_v10 = vld [vmem:[%s7281_s7 + $0x28] ss:$48 sps:$4 sm:$0xff]  }
 0x20f   :  { %1487 = vmatprep.subr.bf16.mxu1 %v5271_v11  ;;  %v5322_v11 = vld [vmem:[%s7281_s7 + $0x84] ss:$48 sps:$4 sm:$0xff]  }
 0x212   :  { %1488 = vmatpush1.bf16.msra.mxu1 %v5269_v25  ;;  %v5325_v25 = vld [vmem:[%s7281_s7 + $0x8c] ss:$48 sps:$4 sm:$0xff]  }
 0x213   :  { %1489 = vmatprep.subr.bf16.mxu1 %v5277_v27  ;;  %v5323_v27 = vld [vmem:[%s7281_s7 + $0x88] ss:$48 sps:$4 sm:$0xff]  }
 0x216   :  { %1490 = vmatpush1.bf16.msra.mxu1 %v5275_v30  ;;  %v5331_v30 = vld [vmem:[%s7281_s7 + $0xec] ss:$48 sps:$4 sm:$0xff]  }
 0x217   :  { %1625 = vmatprep.subr.bf16.mxu1 %v5283_v33  ;;  %v5329_v33 = vld [vmem:[%s7281_s7 + $0xe8] ss:$48 sps:$4 sm:$0xff]  }
 0x2d4   :  { %v5009_v35 = vpop.f32.mrb[32].mxu1 }
 0x2d5   :  { %v863_v36 = vadd.f32 %v5009_v35, %v4491_v34  ;;  %v854_v37 = vpop.f32.mrb[33].mxu1  ;;  %v5337_v35 = vld [vmem:[%s7281_s7 + $0x14c] ss:$48 sps:$4 sm:$0xff]  }
 0x2d6   :  { %v855_v38 = vadd.f32 %v4491_v34, %v854_v37  ;;  %v5010_v39 = vpop.f32.mrb[34].mxu1  ;;  %v5335_v37 = vld [vmem:[%s7281_s7 + $0x148] ss:$48 sps:$4 sm:$0xff]  }
 0x2d7   :  { %v866_v40 = vadd.f32 %v5010_v39, %v4491_v34  ;;  %v857_v41 = vpop.f32.mrb[35].mxu1  ;;  %v887_v43 = vmax.f32 %v863_v36, 0.0  ;;  %v5332_v36 = vld [vmem:[%s7281_s7 + $0x140] ss:$48 sps:$4 sm:$0xff]   ;;  %v5343_v39 = vld [vmem:[%s7281_s7 + $0x1ac] ss:$48 sps:$4 sm:$0xff]  }
 0x2d8   :  { %v858_v42 = vadd.f32 %v4491_v34, %v857_v41  ;;  %v885_v45 = vmax.f32 %v855_v38, 0.0  ;;  %v5340_v38 = vld [vmem:[%s7281_s7 + $0x1a4] ss:$48 sps:$4 sm:$0xff]   ;;  %v5341_v41 = vld [vmem:[%s7281_s7 + $0x1a8] ss:$48 sps:$4 sm:$0xff]  }
 0x2d9   :  { %v888_v44 = vmax.f32 %v866_v40, 0.0  ;;  %v5338_v40 = vld [vmem:[%s7281_s7 + $0x1a0] ss:$48 sps:$4 sm:$0xff]  }
 0x2da   :  { %v886_v47 = vmax.f32 %v858_v42, 0.0  ;;  %v5346_v42 = vld [vmem:[%s7281_s7 + $0x204] ss:$48 sps:$4 sm:$0xff]  }
 0x2db   :  { %v6024_v50 = vpack.c.bf16 %v888_v44, %v887_v43  ;;  %v5349_v43 = vld [vmem:[%s7281_s7 + $0x20c] ss:$48 sps:$4 sm:$0xff]   ;;  %v5344_v44 = vld [vmem:[%s7281_s7 + $0x200] ss:$48 sps:$4 sm:$0xff]  }
 0x2dc   :  { %v6029_v53 = vpack.c.bf16 %v886_v47, %v885_v45  ;;  %v5013_v55 = vpop.f32.mrb[36].mxu1  ;;  %v5347_v45 = vld [vmem:[%s7281_s7 + $0x208] ss:$48 sps:$4 sm:$0xff]   ;;  %v5352_v47 = vld [vmem:[%s7284_s10 + $0x4] ss:$16 sps:$4 sm:$0xff]  }
 0x2dd   :  { %v879_v58 = vadd.f32 %v5013_v55, %v4491_v34  ;;  %v870_v59 = vpop.f32.mrb[37].mxu1  ;;  %v5353_v55 = vld [vmem:[%s7284_s10 + $0x8] ss:$16 sps:$4 sm:$0xff]  }
 0x2de   :  { %v871_v60 = vadd.f32 %v4491_v34, %v870_v59  ;;  %v5014_v46 = vpop.f32.mrb[38].mxu1  ;;  %4572 = vmatmul.mubr.msk.bf16.vlgmr.msra.gmra.mrb[32].mxu0 %vm1393_vm3, %v6029_v53  ;;  %4576 = vmatmul.mubr.msk.bf16.vlgmr.msra.gmra.mrb[40].mxu1 %vm1393_vm3, %v6029_v53  ;;  %v5359_v59 = vld [vmem:[%s7284_s10 + $0x28] ss:$16 sps:$4 sm:$0xff]  }
 0x2df   :  { %v882_v63 = vadd.f32 %v5014_v46, %v4491_v34  ;;  %v873_v49 = vpop.f32.mrb[39].mxu1  ;;  %1448 = vmatprep.mubr.bf16.mxu0 %v5606_v31  ;;  %1521 = vmatprep.mubr.bf16.mxu1 %v5606_v31  ;;  %v891_v3 = vmax.f32 %v879_v58, 0.0  ;;  %v5356_v58 = vld [vmem:[%s7284_s10 + $0x20] ss:$16 sps:$4 sm:$0xff]  }
 0x2e0   :  { %v874_v2 = vadd.f32 %v4491_v34, %v873_v49  ;;  %1553 = vmatpush1.bf16.msra.mxu0 %v5278_v48  ;;  %1626 = vmatpush1.bf16.msra.mxu1 %v5281_v51  ;;  %v889_v4 = vmax.f32 %v871_v60, 0.0  ;;  %v5334_v34 = vld [vmem:[%s7281_s7 + $0x144] ss:$48 sps:$4 sm:$0xff]   ;;  %v5355_v48 = vld [vmem:[%s7284_s10 + $0xc] ss:$16 sps:$4 sm:$0xff]  }
 0x2e1   :  { %v892_v52 = vmax.f32 %v882_v63, 0.0  ;;  %1554 = vmatprep.subr.bf16.mxu0 %v5286_v56  ;;  %1627 = vmatprep.subr.bf16.mxu1 %v5289_v57  ;;  %v5350_v51 = vld [vmem:[%s7284_s10] ss:$16 sps:$4 sm:$0xff]   ;;  %v5358_v56 = vld [vmem:[%s7284_s10 + $0x24] ss:$16 sps:$4 sm:$0xff]  }
 0x2e2   :  { %v890_v5 = vmax.f32 %v874_v2, 0.0  ;;  %v5361_v57 = vld [vmem:[%s7284_s10 + $0x2c] ss:$16 sps:$4 sm:$0xff]   ;;  %v5362_v46 = vld [vmem:[%s7284_s10 + $0x40] ss:$16 sps:$4 sm:$0xff]  }
 0x2e3   :  { %v6061_v7 = vpack.c.bf16 %v892_v52, %v891_v3  ;;  %v5367_v60 = vld [vmem:[%s7284_s10 + $0x4c] ss:$16 sps:$4 sm:$0xff]   ;;  %v5368_v49 = vld [vmem:[%s7284_s10 + $0x60] ss:$16 sps:$4 sm:$0xff]   ;;  %v5377_v3 = vld [vmem:[%s7284_s10 + $0x88] ss:$16 sps:$4 sm:$0xff]  }
 0x2e4   :  { %v6069_v13 = vpack.c.bf16 %v890_v5, %v889_v4  ;;  %1555 = vmatpush1.bf16.msra.mxu0 %v5284_v61  ;;  %1628 = vmatpush1.bf16.msra.mxu1 %v5287_v62  ;;  %v5365_v61 = vld [vmem:[%s7284_s10 + $0x48] ss:$16 sps:$4 sm:$0xff]   ;;  %v5370_v62 = vld [vmem:[%s7284_s10 + $0x64] ss:$16 sps:$4 sm:$0xff]   ;;  %v5373_v63 = vld [vmem:[%s7284_s10 + $0x6c] ss:$16 sps:$4 sm:$0xff]  }
 0x2e5   :  { %1556 = vmatprep.subr.bf16.mxu0 %v5292_v0  ;;  %1629 = vmatprep.subr.bf16.mxu1 %v5295_v1  ;;  %v5371_v0 = vld [vmem:[%s7284_s10 + $0x68] ss:$16 sps:$4 sm:$0xff]   ;;  %v5379_v1 = vld [vmem:[%s7284_s10 + $0x8c] ss:$16 sps:$4 sm:$0xff]   ;;  %v5374_v2 = vld [vmem:[%s7284_s10 + $0x80] ss:$16 sps:$4 sm:$0xff]  }
 0x2e6   :  { %4573 = vmatmul.mubr.msk.bf16.gmra.mrb[36].mxu0 %vm1393_vm3, %v6024_v50  ;;  %4577 = vmatmul.mubr.msk.bf16.gmra.mrb[44].mxu1 %vm1393_vm3, %v6024_v50  ;;  %v5382_v52 = vld [vmem:[%s7284_s10 + $0xa4] ss:$16 sps:$4 sm:$0xff]   ;;  %v5385_v4 = vld [vmem:[%s7284_s10 + $0xac] ss:$16 sps:$4 sm:$0xff]   ;;  %v5380_v5 = vld [vmem:[%s7284_s10 + $0xa0] ss:$16 sps:$4 sm:$0xff]  }
 0x2e7   :  { %1458 = vmatprep.mubr.bf16.mxu0 %v5606_v31  ;;  %1531 = vmatprep.mubr.bf16.mxu1 %v5606_v31 }
 0x2e8   :  { %1557 = vmatpush1.bf16.msra.mxu0 %v5290_v54  ;;  %1630 = vmatpush1.bf16.msra.mxu1 %v5293_v19  ;;  %v5383_v54 = vld [vmem:[%s7284_s10 + $0xa8] ss:$16 sps:$4 sm:$0xff]   ;;  %v5388_v19 = vld [vmem:[%s7284_s10 + $0xc4] ss:$16 sps:$4 sm:$0xff]  }
 0x2e9   :  { %1558 = vmatprep.subr.bf16.mxu0 %v5298_v9  ;;  %1631 = vmatprep.subr.bf16.mxu1 %v5301_v12  ;;  %v5386_v9 = vld [vmem:[%s7284_s10 + $0xc0] ss:$16 sps:$4 sm:$0xff]   ;;  %v5389_v12 = vld [vmem:[%s7284_s10 + $0xc8] ss:$16 sps:$4 sm:$0xff]  }
 0x2ec   :  { %1559 = vmatpush1.bf16.msra.mxu0 %v5296_v14  ;;  %1632 = vmatpush1.bf16.msra.mxu1 %v5299_v15  ;;  %v5397_v14 = vld [vmem:[%s7284_s10 + $0xec] ss:$16 sps:$4 sm:$0xff]   ;;  %v5392_v15 = vld [vmem:[%s7284_s10 + $0xe0] ss:$16 sps:$4 sm:$0xff]  }
 0x2ed   :  { %1560 = vmatprep.subr.bf16.mxu0 %v5304_v16  ;;  %1633 = vmatprep.subr.bf16.mxu1 %v5307_v28  ;;  %v5395_v16 = vld [vmem:[%s7284_s10 + $0xe8] ss:$16 sps:$4 sm:$0xff]   ;;  %v5400_v28 = vld [vmem:[%s7284_s10 + $0x104] ss:$16 sps:$4 sm:$0xff]  }
 0x2ee   :  { %4574 = vmatmul.mubr.msk.bf16.gmra.mrb[40].mxu0 %vm1393_vm3, %v6069_v13  ;;  %4578 = vmatmul.mubr.msk.bf16.gmra.mrb[48].mxu1 %vm1393_vm3, %v6069_v13 }
 0x2ef   :  { %1468 = vmatprep.mubr.bf16.mxu0 %v5606_v31  ;;  %1541 = vmatprep.mubr.bf16.mxu1 %v5606_v31 }
 0x2f0   :  { %1561 = vmatpush1.bf16.msra.mxu0 %v5302_v17  ;;  %1634 = vmatpush1.bf16.msra.mxu1 %v5305_v18  ;;  %v5398_v17 = vld [vmem:[%s7284_s10 + $0x100] ss:$16 sps:$4 sm:$0xff]   ;;  %v5401_v18 = vld [vmem:[%s7284_s10 + $0x108] ss:$16 sps:$4 sm:$0xff]  }
 0x2f1   :  { %1562 = vmatprep.subr.bf16.mxu0 %v5310_v20  ;;  %1635 = vmatprep.subr.bf16.mxu1 %v5313_v21  ;;  %v5406_v20 = vld [vmem:[%s7284_s10 + $0x124] ss:$16 sps:$4 sm:$0xff]   ;;  %v5409_v21 = vld [vmem:[%s7284_s10 + $0x12c] ss:$16 sps:$4 sm:$0xff]  }
 0x2f4   :  { %1563 = vmatpush1.bf16.msra.mxu0 %v5308_v6  ;;  %1636 = vmatpush1.bf16.msra.mxu1 %v5311_v22  ;;  %v5404_v6 = vld [vmem:[%s7284_s10 + $0x120] ss:$16 sps:$4 sm:$0xff]   ;;  %v5407_v22 = vld [vmem:[%s7284_s10 + $0x128] ss:$16 sps:$4 sm:$0xff]  }
 0x2f5   :  { %1698 = vmatprep.subr.bf16.mxu0 %v5316_v23  ;;  %1771 = vmatprep.subr.bf16.mxu1 %v5319_v8  ;;  %v5412_v23 = vld [vmem:[%s7284_s10 + $0x144] ss:$16 sps:$4 sm:$0xff]   ;;  %v5415_v8 = vld [vmem:[%s7284_s10 + $0x14c] ss:$16 sps:$4 sm:$0xff]  }
 0x2f6   :  { %4575 = vmatmul.mubr.msk.bf16.gmra.mrb[44].mxu0 %vm1393_vm3, %v6061_v7  ;;  %4579 = vmatmul.mubr.msk.bf16.gmra.mrb[52].mxu1 %vm1393_vm3, %v6061_v7 }
 0x2f7   :  { %1584 = vmatprep.mubr.bf16.mxu0 %v5606_v31  ;;  %1657 = vmatprep.mubr.bf16.mxu1 %v5606_v31 }
 0x2fe   :  { %4580 = vmatmul.mubr.msk.bf16.vlgmr.msra.gmra.mrb[48].mxu0 %vm1393_vm3, %v6029_v53  ;;  %4584 = vmatmul.mubr.msk.bf16.vlgmr.msra.gmra.mrb[56].mxu1 %vm1393_vm3, %v6029_v53 }
 0x2ff   :  { %1594 = vmatprep.mubr.bf16.mxu0 %v5606_v31  ;;  %1667 = vmatprep.mubr.bf16.mxu1 %v5606_v31 }
 0x300   :  { %1699 = vmatpush1.bf16.msra.mxu0 %v5314_v24  ;;  %1772 = vmatpush1.bf16.msra.mxu1 %v5317_v10  ;;  %v5410_v24 = vld [vmem:[%s7284_s10 + $0x140] ss:$16 sps:$4 sm:$0xff]   ;;  %v5413_v10 = vld [vmem:[%s7284_s10 + $0x148] ss:$16 sps:$4 sm:$0xff]  }
 0x301   :  { %1700 = vmatprep.subr.bf16.mxu0 %v5322_v11  ;;  %1773 = vmatprep.subr.bf16.mxu1 %v5325_v25  ;;  %v5418_v11 = vld [vmem:[%s7284_s10 + $0x164] ss:$16 sps:$4 sm:$0xff]   ;;  %v5421_v25 = vld [vmem:[%s7284_s10 + $0x16c] ss:$16 sps:$4 sm:$0xff]  }
 0x304   :  { %1701 = vmatpush1.bf16.msra.mxu0 %v5320_v26  ;;  %1774 = vmatpush1.bf16.msra.mxu1 %v5323_v27  ;;  %v5416_v26 = vld [vmem:[%s7284_s10 + $0x160] ss:$16 sps:$4 sm:$0xff]   ;;  %v5419_v27 = vld [vmem:[%s7284_s10 + $0x168] ss:$16 sps:$4 sm:$0xff]  }
 0x305   :  { %1702 = vmatprep.subr.bf16.mxu0 %v5328_v29  ;;  %1775 = vmatprep.subr.bf16.mxu1 %v5331_v30  ;;  %v5424_v29 = vld [vmem:[%s7284_s10 + $0x184] ss:$16 sps:$4 sm:$0xff]   ;;  %v5427_v30 = vld [vmem:[%s7284_s10 + $0x18c] ss:$16 sps:$4 sm:$0xff]  }
 0x306   :  { %4581 = vmatmul.mubr.msk.bf16.gmra.mrb[52].mxu0 %vm1393_vm3, %v6024_v50  ;;  %4585 = vmatmul.mubr.msk.bf16.gmra.mrb[60].mxu1 %vm1393_vm3, %v6024_v50 }
 0x307   :  { %1604 = vmatprep.mubr.bf16.mxu0 %v5606_v31  ;;  %1677 = vmatprep.mubr.bf16.mxu1 %v5606_v31 }
 0x308   :  { %1703 = vmatpush1.bf16.msra.mxu0 %v5326_v32  ;;  %1776 = vmatpush1.bf16.msra.mxu1 %v5329_v33  ;;  %v5422_v32 = vld [vmem:[%s7284_s10 + $0x180] ss:$16 sps:$4 sm:$0xff]   ;;  %v5425_v33 = vld [vmem:[%s7284_s10 + $0x188] ss:$16 sps:$4 sm:$0xff]  }
 0x309   :  { %1704 = vmatprep.subr.bf16.mxu0 %v5334_v34  ;;  %1777 = vmatprep.subr.bf16.mxu1 %v5337_v35  ;;  %v5430_v34 = vld [vmem:[%s7284_s10 + $0x1a4] ss:$16 sps:$4 sm:$0xff]   ;;  %v5433_v35 = vld [vmem:[%s7284_s10 + $0x1ac] ss:$16 sps:$4 sm:$0xff]  }
 0x30c   :  { %1705 = vmatpush1.bf16.msra.mxu0 %v5332_v36  ;;  %1778 = vmatpush1.bf16.msra.mxu1 %v5335_v37  ;;  %v5428_v36 = vld [vmem:[%s7284_s10 + $0x1a0] ss:$16 sps:$4 sm:$0xff]   ;;  %v5431_v37 = vld [vmem:[%s7284_s10 + $0x1a8] ss:$16 sps:$4 sm:$0xff]  }
 0x30d   :  { %1706 = vmatprep.subr.bf16.mxu0 %v5340_v38  ;;  %1779 = vmatprep.subr.bf16.mxu1 %v5343_v39  ;;  %v5436_v38 = vld [vmem:[%s7284_s10 + $0x1c4] ss:$16 sps:$4 sm:$0xff]   ;;  %v5439_v39 = vld [vmem:[%s7284_s10 + $0x1cc] ss:$16 sps:$4 sm:$0xff]  }
 0x30e   :  { %4582 = vmatmul.mubr.msk.bf16.gmra.mrb[56].mxu0 %vm1393_vm3, %v6069_v13  ;;  %4586 = vmatmul.mubr.msk.bf16.gmra.mrb[64].mxu1 %vm1393_vm3, %v6069_v13 }
 0x30f   :  { %1614 = vmatprep.mubr.bf16.mxu0 %v5606_v31  ;;  %1687 = vmatprep.mubr.bf16.mxu1 %v5606_v31 }
 0x310   :  { %1707 = vmatpush1.bf16.msra.mxu0 %v5338_v40  ;;  %1780 = vmatpush1.bf16.msra.mxu1 %v5341_v41  ;;  %v5434_v40 = vld [vmem:[%s7284_s10 + $0x1c0] ss:$16 sps:$4 sm:$0xff]   ;;  %v5437_v41 = vld [vmem:[%s7284_s10 + $0x1c8] ss:$16 sps:$4 sm:$0xff]  }
 0x311   :  { %1708 = vmatprep.subr.bf16.mxu0 %v5346_v42  ;;  %1781 = vmatprep.subr.bf16.mxu1 %v5349_v43  ;;  %v5442_v42 = vld [vmem:[%s7284_s10 + $0x1e4] ss:$16 sps:$4 sm:$0xff]   ;;  %v5445_v43 = vld [vmem:[%s7284_s10 + $0x1ec] ss:$16 sps:$4 sm:$0xff]  }
 0x314   :  { %1709 = vmatpush1.bf16.msra.mxu0 %v5344_v44  ;;  %1782 = vmatpush1.bf16.msra.mxu1 %v5347_v45  ;;  %v5440_v44 = vld [vmem:[%s7284_s10 + $0x1e0] ss:$16 sps:$4 sm:$0xff]   ;;  %v5443_v45 = vld [vmem:[%s7284_s10 + $0x1e8] ss:$16 sps:$4 sm:$0xff]  }
 0x315   :  { %2746 = vmatprep.subr.bf16.mxu0 %v5352_v47  ;;  %2892 = vmatprep.subr.bf16.mxu1 %v5355_v48  ;;  %v5448_v47 = vld [vmem:[%s7284_s10 + $0x204] ss:$16 sps:$4 sm:$0xff]   ;;  %v5451_v48 = vld [vmem:[%s7284_s10 + $0x20c] ss:$16 sps:$4 sm:$0xff]  }
 0x316   :  { %4583 = vmatmul.mubr.msk.bf16.gmra.mrb[60].mxu0 %vm1393_vm3, %v6061_v7  ;;  %4587 = vmatmul.mubr.msk.bf16.gmra.mrb[68].mxu1 %vm1393_vm3, %v6061_v7 }
 0x317   :  { %1730 = vmatprep.mubr.bf16.mxu0 %v5606_v31  ;;  %1803 = vmatprep.mubr.bf16.mxu1 %v5606_v31 }
 0x31e   :  { %4588 = vmatmul.mubr.msk.bf16.vlgmr.msra.gmra.mrb[64].mxu0 %vm1393_vm3, %v6029_v53  ;;  %4592 = vmatmul.mubr.msk.bf16.vlgmr.msra.gmra.mrb[72].mxu1 %vm1393_vm3, %v6029_v53  ;;  %v5364_v53 = vld [vmem:[%s7284_s10 + $0x44] ss:$16 sps:$4 sm:$0xff]  }
 0x31f   :  { %1740 = vmatprep.mubr.bf16.mxu0 %v5606_v31  ;;  %1813 = vmatprep.mubr.bf16.mxu1 %v5606_v31 }
 0x320   :  { %2747 = vmatpush1.bf16.msra.mxu0 %v5350_v51  ;;  %2893 = vmatpush1.bf16.msra.mxu1 %v5353_v55  ;;  %v973_v51 = vlaneseq }
 0x321   :  { %2748 = vmatprep.subr.bf16.mxu0 %v5358_v56  ;;  %2894 = vmatprep.subr.bf16.mxu1 %v5361_v57 }
 0x322   :  { %v6435_v55 = vshrl.u32 %v973_v51, 7 }
 0x324   :  { %2749 = vmatpush1.bf16.msra.mxu0 %v5356_v58  ;;  %2895 = vmatpush1.bf16.msra.mxu1 %v5359_v59  ;;  %v6438_v56 = vsub.s32 0, %v6435_v55  ;;  %v6441_v57 = vsub.s32 2, %v6435_v55  ;;  %v6446_v58 = vld [vmem:[%s7246_s9] sm:$0xff]  ;;  %v6449_v59 = vsub.s32 1, %v6435_v55 }
 0x325   :  { %2750 = vmatprep.subr.bf16.mxu0 %v5364_v53  ;;  %2896 = vmatprep.subr.bf16.mxu1 %v5367_v60  ;;  %v6452_v53 = vsub.s32 3, %v6435_v55 }
 0x326   :  { %4589 = vmatmul.mubr.msk.bf16.gmra.mrb[68].mxu0 %vm1393_vm3, %v6024_v50  ;;  %4593 = vmatmul.mubr.msk.bf16.gmra.mrb[76].mxu1 %vm1393_vm3, %v6024_v50  ;;  %v5376_v50 = vld [vmem:[%s7284_s10 + $0x84] ss:$16 sps:$4 sm:$0xff]   ;;  %v6456_v60 = vrot.slane %v6446_v58, %v6438_v56 }
 0x327   :  { %1750 = vmatprep.mubr.bf16.mxu0 %v5606_v31  ;;  %1823 = vmatprep.mubr.bf16.mxu1 %v5606_v31 }
 0x328   :  { %2751 = vmatpush1.bf16.msra.mxu0 %v5362_v46  ;;  %2897 = vmatpush1.bf16.msra.mxu1 %v5365_v61  ;;  %v6460_v46 = vrot.slane %v6446_v58, %v6441_v57  ;;  %v6464_v61 = vrot.slane %v6446_v58, %v6449_v59 }
 0x329   :  { %2752 = vmatprep.subr.bf16.mxu0 %v5370_v62  ;;  %2898 = vmatprep.subr.bf16.mxu1 %v5373_v63  ;;  %v6468_v62 = vrot.slane %v6446_v58, %v6452_v53 }
 0x32c   :  { %2753 = vmatpush1.bf16.msra.mxu0 %v5368_v49  ;;  %2899 = vmatpush1.bf16.msra.mxu1 %v5371_v0 }
 0x32d   :  { %2754 = vmatprep.subr.bf16.mxu0 %v5376_v50  ;;  %2900 = vmatprep.subr.bf16.mxu1 %v5379_v1 }
 0x32e   :  { %4590 = vmatmul.mubr.msk.bf16.gmra.mrb[72].mxu0 %vm1393_vm3, %v6069_v13  ;;  %4594 = vmatmul.mubr.msk.bf16.gmra.mrb[80].mxu1 %vm1393_vm3, %v6069_v13  ;;  %v5394_v13 = vld [vmem:[%s7284_s10 + $0xe4] ss:$16 sps:$4 sm:$0xff]  }
 0x32f   :  { %1760 = vmatprep.mubr.bf16.mxu0 %v5606_v31  ;;  %1833 = vmatprep.mubr.bf16.mxu1 %v5606_v31  ;;  %v5391_v31 = vld [vmem:[%s7284_s10 + $0xcc] ss:$16 sps:$4 sm:$0xff]  }
 0x330   :  { %2755 = vmatpush1.bf16.msra.mxu0 %v5374_v2  ;;  %2901 = vmatpush1.bf16.msra.mxu1 %v5377_v3 }
 0x331   :  { %2756 = vmatprep.subr.bf16.mxu0 %v5382_v52  ;;  %2902 = vmatprep.subr.bf16.mxu1 %v5385_v4 }
 0x334   :  { %2757 = vmatpush1.bf16.msra.mxu0 %v5380_v5  ;;  %2903 = vmatpush1.bf16.msra.mxu1 %v5383_v54 }
 0x335   :  { %2758 = vmatprep.subr.bf16.mxu0 %v5388_v19  ;;  %2904 = vmatprep.subr.bf16.mxu1 %v5391_v31 }
 0x336   :  { %4591 = vmatmul.mubr.msk.bf16.gmra.mrb[76].mxu0 %vm1393_vm3, %v6061_v7  ;;  %4595 = vmatmul.mubr.msk.bf16.gmra.mrb[84].mxu1 %vm1393_vm3, %v6061_v7  ;;  %v5403_v7 = vld [vmem:[%s7284_s10 + $0x10c] ss:$16 sps:$4 sm:$0xff]  }
 0x338   :  { %2759 = vmatpush1.bf16.msra.mxu0 %v5386_v9  ;;  %2905 = vmatpush1.bf16.msra.mxu1 %v5389_v12 }
 0x339   :  { %2760 = vmatprep.subr.bf16.mxu0 %v5394_v13  ;;  %2906 = vmatprep.subr.bf16.mxu1 %v5397_v14 }
 0x33c   :  { %2761 = vmatpush1.bf16.msra.mxu0 %v5392_v15  ;;  %2907 = vmatpush1.bf16.msra.mxu1 %v5395_v16 }
 0x33d   :  { %2762 = vmatprep.subr.bf16.mxu0 %v5400_v28  ;;  %2908 = vmatprep.subr.bf16.mxu1 %v5403_v7 }
 0x340   :  { %2763 = vmatpush1.bf16.msra.mxu0 %v5398_v17  ;;  %2909 = vmatpush1.bf16.msra.mxu1 %v5401_v18 }
 0x341   :  { %2764 = vmatprep.subr.bf16.mxu0 %v5406_v20  ;;  %2910 = vmatprep.subr.bf16.mxu1 %v5409_v21 }
 0x344   :  { %2765 = vmatpush1.bf16.msra.mxu0 %v5404_v6  ;;  %2911 = vmatpush1.bf16.msra.mxu1 %v5407_v22 }
 0x345   :  { %2766 = vmatprep.subr.bf16.mxu0 %v5412_v23  ;;  %2912 = vmatprep.subr.bf16.mxu1 %v5415_v8 }
 0x348   :  { %2767 = vmatpush1.bf16.msra.mxu0 %v5410_v24  ;;  %2913 = vmatpush1.bf16.msra.mxu1 %v5413_v10  ;;  %v5446_v10 = vld [vmem:[%s7284_s10 + $0x200] ss:$16 sps:$4 sm:$0xff]  }
 0x349   :  { %2768 = vmatprep.subr.bf16.mxu0 %v5418_v11  ;;  %2914 = vmatprep.subr.bf16.mxu1 %v5421_v25  ;;  %v5449_v11 = vld [vmem:[%s7284_s10 + $0x208] ss:$16 sps:$4 sm:$0xff]  }
 0x34c   :  { %2769 = vmatpush1.bf16.msra.mxu0 %v5416_v26  ;;  %2915 = vmatpush1.bf16.msra.mxu1 %v5419_v27 }
 0x34d   :  { %2770 = vmatprep.subr.bf16.mxu0 %v5424_v29  ;;  %2916 = vmatprep.subr.bf16.mxu1 %v5427_v30  ;;  %v5454_v30 = vld [vmem:[%s7284_s10 + $0x224] ss:$16 sps:$4 sm:$0xff]  }
 0x350   :  { %2771 = vmatpush1.bf16.msra.mxu0 %v5422_v32  ;;  %2917 = vmatpush1.bf16.msra.mxu1 %v5425_v33  ;;  %v5457_v32 = vld [vmem:[%s7284_s10 + $0x22c] ss:$16 sps:$4 sm:$0xff]  }
 0x351   :  { %2772 = vmatprep.subr.bf16.mxu0 %v5430_v34  ;;  %2918 = vmatprep.subr.bf16.mxu1 %v5433_v35 }
 0x354   :  { %2773 = vmatpush1.bf16.msra.mxu0 %v5428_v36  ;;  %2919 = vmatpush1.bf16.msra.mxu1 %v5431_v37 }
 0x355   :  { %2774 = vmatprep.subr.bf16.mxu0 %v5436_v38  ;;  %2920 = vmatprep.subr.bf16.mxu1 %v5439_v39 }
 0x358   :  { %2775 = vmatpush1.bf16.msra.mxu0 %v5434_v40  ;;  %2921 = vmatpush1.bf16.msra.mxu1 %v5437_v41 }
 0x359   :  { %2776 = vmatprep.subr.bf16.mxu0 %v5442_v42  ;;  %2922 = vmatprep.subr.bf16.mxu1 %v5445_v43  ;;  %v5452_v43 = vld [vmem:[%s7284_s10 + $0x220] ss:$16 sps:$4 sm:$0xff]  }
 0x35c   :  { %2777 = vmatpush1.bf16.msra.mxu0 %v5440_v44  ;;  %2923 = vmatpush1.bf16.msra.mxu1 %v5443_v45  ;;  %v5455_v44 = vld [vmem:[%s7284_s10 + $0x228] ss:$16 sps:$4 sm:$0xff]   ;;  %v5460_v45 = vld [vmem:[%s7284_s10 + $0x244] ss:$16 sps:$4 sm:$0xff]  }
 0x35d   :  { %2819 = vmatprep.subr.bf16.mxu0 %v5448_v47  ;;  %2965 = vmatprep.subr.bf16.mxu1 %v5451_v48 }
 0x3b1   :  { %v1440_v63 = vpop.f32.mrb[32].mxu0  ;;  %v1513_v49 = vpop.f32.mrb[40].mxu1 }
 0x3b2   :  { %v1441_v0 = vadd.f32 %v1440_v63, %v6456_v60  ;;  %v1514_v50 = vadd.f32 %v1513_v49, %v6460_v46  ;;  %v1442_v1 = vpop.f32.mrb[33].mxu0  ;;  %v1515_v2 = vpop.f32.mrb[41].mxu1  ;;  %v5463_v49 = vld [vmem:[%s7284_s10 + $0x24c] ss:$16 sps:$4 sm:$0xff]  }
 0x3b3   :  { %v1443_v3 = vadd.f32 %v1442_v1, %v6464_v61  ;;  %v1516_v52 = vadd.f32 %v1515_v2, %v6468_v62  ;;  %v1444_v4 = vpop.f32.mrb[34].mxu0  ;;  %v1517_v5 = vpop.f32.mrb[42].mxu1 }
 0x3b4   :  { %v1445_v54 = vadd.f32 %v1444_v4, %v6456_v60  ;;  %v1518_v19 = vadd.f32 %v1517_v5, %v6460_v46  ;;  %v1446_v31 = vpop.f32.mrb[35].mxu0  ;;  %v1519_v9 = vpop.f32.mrb[43].mxu1  ;;  %v1844_v14 = vmax.f32 %v1441_v0, 0.0  ;;  %v1846_v15 = vmax.f32 %v1514_v50, 0.0 }
 0x3b5   :  { %v1447_v12 = vadd.f32 %v1446_v31, %v6464_v61  ;;  %v1520_v13 = vadd.f32 %v1519_v9, %v6468_v62  ;;  %v1845_v7 = vmax.f32 %v1443_v3, 0.0  ;;  %v1847_v17 = vmax.f32 %v1516_v52, 0.0  ;;  %v5458_v31 = vld [vmem:[%s7284_s10 + $0x240] ss:$16 sps:$4 sm:$0xff]   ;;  %v5461_v9 = vld [vmem:[%s7284_s10 + $0x248] ss:$16 sps:$4 sm:$0xff]  }
 0x3b6   :  { %v1856_v16 = vmax.f32 %v1445_v54, 0.0  ;;  %v1858_v28 = vmax.f32 %v1518_v19, 0.0 }
 0x3b7   :  { %v1857_v18 = vmax.f32 %v1447_v12, 0.0  ;;  %v1859_v20 = vmax.f32 %v1520_v13, 0.0 }
 0x3b8   :  { %v1940_v21 = vpack.c.bf16 %v1856_v16, %v1844_v14  ;;  %v6478_v6 = vpack.c.bf16 %v1858_v28, %v1846_v15  ;;  %v5466_v16 = vld [vmem:[%s7284_s10 + $0x264] ss:$16 sps:$4 sm:$0xff]   ;;  %v5469_v28 = vld [vmem:[%s7284_s10 + $0x26c] ss:$16 sps:$4 sm:$0xff]  }
 0x3b9   :  { %v1941_v22 = vpack.c.bf16 %v1857_v18, %v1845_v7  ;;  %v6480_v23 = vpack.c.bf16 %v1859_v20, %v1847_v17  ;;  %v1450_v8 = vpop.f32.mrb[36].mxu0  ;;  %v1523_v24 = vpop.f32.mrb[44].mxu1 }
 0x3ba   :  { %v1451_v25 = vadd.f32 %v1450_v8, %v6456_v60  ;;  %v1524_v26 = vadd.f32 %v1523_v24, %v6460_v46  ;;  %v1452_v27 = vpop.f32.mrb[37].mxu0  ;;  %v1525_v29 = vpop.f32.mrb[45].mxu1 }
 0x3bb   :  { %v1453_v33 = vadd.f32 %v1452_v27, %v6464_v61  ;;  %v1526_v34 = vadd.f32 %v1525_v29, %v6468_v62  ;;  %v1454_v35 = vpop.f32.mrb[38].mxu0  ;;  %v1527_v36 = vpop.f32.mrb[46].mxu1  ;;  %2778 = vmatprep.mubr.bf16.mxu0 %v1941_v22  ;;  %2924 = vmatprep.mubr.bf16.mxu1 %v1941_v22  ;;  %v5472_v27 = vld [vmem:[%s7284_s10 + $0x284] ss:$16 sps:$4 sm:$0xff]   ;;  %v991_v29 = vsub.s32 4, %v6435_v55 }
 0x3bc   :  { %v1455_v37 = vadd.f32 %v1454_v35, %v6456_v60  ;;  %v1528_v38 = vadd.f32 %v1527_v36, %v6460_v46  ;;  %v1456_v39 = vpop.f32.mrb[39].mxu0  ;;  %v1529_v40 = vpop.f32.mrb[47].mxu1  ;;  %2779 = vmatmul.mubr.bf16.vlgmr.msra.gmra.mrb[80].mxu0 %v1940_v21  ;;  %2925 = vmatmul.mubr.bf16.vlgmr.msra.gmra.mrb[88].mxu1 %v1940_v21  ;;  %v1868_v47 = vmax.f32 %v1451_v25, 0.0  ;;  %v1870_v48 = vmax.f32 %v1524_v26, 0.0  ;;  %v5467_v26 = vld [vmem:[%s7284_s10 + $0x268] ss:$16 sps:$4 sm:$0xff]  }
 0x3bd   :  { %v1457_v41 = vadd.f32 %v1456_v39, %v6464_v61  ;;  %v1530_v42 = vadd.f32 %v1529_v40, %v6468_v62  ;;  %2820 = vmatpush1.bf16.msra.mxu0 %v5446_v10  ;;  %2966 = vmatpush1.bf16.msra.mxu1 %v5449_v11  ;;  %v1869_v0 = vmax.f32 %v1453_v33, 0.0  ;;  %v1871_v50 = vmax.f32 %v1526_v34, 0.0  ;;  %v5464_v10 = vld [vmem:[%s7284_s10 + $0x260] ss:$16 sps:$4 sm:$0xff]   ;;  %v5475_v36 = vld [vmem:[%s7284_s10 + $0x28c] ss:$16 sps:$4 sm:$0xff]  }
 0x3be   :  { %v1880_v51 = vmax.f32 %v1455_v37, 0.0  ;;  %v1882_v63 = vmax.f32 %v1528_v38, 0.0  ;;  %2821 = vmatprep.subr.bf16.mxu0 %v5454_v30  ;;  %2967 = vmatprep.subr.bf16.mxu1 %v5457_v32  ;;  %v999_v30 = vsub.s32 6, %v6435_v55 }
 0x3bf   :  { %v1881_v1 = vmax.f32 %v1457_v41, 0.0  ;;  %v1883_v2 = vmax.f32 %v1530_v42, 0.0 }
 0x3c0   :  { %v1944_v3 = vpack.c.bf16 %v1880_v51, %v1868_v47  ;;  %v6514_v52 = vpack.c.bf16 %v1882_v63, %v1870_v48  ;;  %v5473_v63 = vld [vmem:[%s7284_s10 + $0x288] ss:$16 sps:$4 sm:$0xff]  }
 0x3c1   :  { %v1945_v4 = vpack.c.bf16 %v1881_v1, %v1869_v0  ;;  %v6516_v5 = vpack.c.bf16 %v1883_v2, %v1871_v50  ;;  %2822 = vmatpush1.bf16.msra.mxu0 %v5452_v43  ;;  %2968 = vmatpush1.bf16.msra.mxu1 %v5455_v44  ;;  %v1460_v54 = vpop.f32.mrb[40].mxu0  ;;  %v1533_v19 = vpop.f32.mrb[48].mxu1  ;;  %v5470_v43 = vld [vmem:[%s7284_s10 + $0x280] ss:$16 sps:$4 sm:$0xff]   ;;  %v995_v44 = vsub.s32 5, %v6435_v55 }
 0x3c2   :  { %v1461_v12 = vadd.f32 %v1460_v54, %v6456_v60  ;;  %v1534_v13 = vadd.f32 %v1533_v19, %v6460_v46  ;;  %v1462_v14 = vpop.f32.mrb[41].mxu0  ;;  %v1535_v15 = vpop.f32.mrb[49].mxu1  ;;  %2823 = vmatprep.subr.bf16.mxu0 %v5460_v45  ;;  %2969 = vmatprep.subr.bf16.mxu1 %v5463_v49  ;;  %v1003_v49 = vsub.s32 7, %v6435_v55  ;;  %v6573_v54 = vrot.slane %v6446_v58, %v991_v29 }
 0x3c3   :  { %v1463_v7 = vadd.f32 %v1462_v14, %v6464_v61  ;;  %v1536_v17 = vadd.f32 %v1535_v15, %v6468_v62  ;;  %v1464_v18 = vpop.f32.mrb[42].mxu0  ;;  %v1537_v20 = vpop.f32.mrb[50].mxu1  ;;  %2788 = vmatprep.mubr.bf16.mxu0 %v1945_v4  ;;  %2934 = vmatprep.mubr.bf16.mxu1 %v1945_v4  ;;  %v5481_v4 = vld [vmem:[%s7284_s10 + $0x2ac] ss:$16 sps:$4 sm:$0xff]  }
 0x3c4   :  { %v1465_v21 = vadd.f32 %v1464_v18, %v6456_v60  ;;  %v1538_v22 = vadd.f32 %v1537_v20, %v6460_v46  ;;  %v1466_v8 = vpop.f32.mrb[43].mxu0  ;;  %v1539_v24 = vpop.f32.mrb[51].mxu1  ;;  %2789 = vmatmul.mubr.bf16.gmra.mrb[84].mxu0 %v1944_v3  ;;  %2935 = vmatmul.mubr.bf16.gmra.mrb[92].mxu1 %v1944_v3  ;;  %v1892_v32 = vmax.f32 %v1461_v12, 0.0  ;;  %v1894_v33 = vmax.f32 %v1534_v13, 0.0  ;;  %v5478_v3 = vld [vmem:[%s7284_s10 + $0x2a4] ss:$16 sps:$4 sm:$0xff]  }
 0x3c5   :  { %v1467_v11 = vadd.f32 %v1466_v8, %v6464_v61  ;;  %v1540_v25 = vadd.f32 %v1539_v24, %v6468_v62  ;;  %2824 = vmatpush1.bf16.msra.mxu0 %v5458_v31  ;;  %2970 = vmatpush1.bf16.msra.mxu1 %v5461_v9  ;;  %v1893_v37 = vmax.f32 %v1463_v7, 0.0  ;;  %v1895_v38 = vmax.f32 %v1536_v17, 0.0  ;;  %v5476_v20 = vld [vmem:[%s7284_s10 + $0x2a0] ss:$16 sps:$4 sm:$0xff]   ;;  %v5487_v24 = vld [vmem:[%s7284_s10 + $0x2cc] ss:$16 sps:$4 sm:$0xff]  }
 0x3c6   :  { %v1904_v34 = vmax.f32 %v1465_v21, 0.0  ;;  %v1906_v35 = vmax.f32 %v1538_v22, 0.0  ;;  %2825 = vmatprep.subr.bf16.mxu0 %v5466_v16  ;;  %2971 = vmatprep.subr.bf16.mxu1 %v5469_v28  ;;  %v6578_v13 = vrot.slane %v6446_v58, %v999_v30  ;;  %v6583_v7 = vrot.slane %v6446_v58, %v995_v44  ;;  %v5484_v21 = vld [vmem:[%s7284_s10 + $0x2c4] ss:$16 sps:$4 sm:$0xff]  }
 0x3c7   :  { %v1905_v39 = vmax.f32 %v1467_v11, 0.0  ;;  %v1907_v40 = vmax.f32 %v1540_v25, 0.0 }
 0x3c8   :  { %v1948_v41 = vpack.c.bf16 %v1904_v34, %v1892_v32  ;;  %v6552_v42 = vpack.c.bf16 %v1906_v35, %v1894_v33  ;;  %v5482_v34 = vld [vmem:[%s7284_s10 + $0x2c0] ss:$16 sps:$4 sm:$0xff]   ;;  %v5485_v35 = vld [vmem:[%s7284_s10 + $0x2c8] ss:$16 sps:$4 sm:$0xff]  }
 0x3c9   :  { %v1949_v45 = vpack.c.bf16 %v1905_v39, %v1893_v37  ;;  %v6558_v47 = vpack.c.bf16 %v1907_v40, %v1895_v38  ;;  %2826 = vmatpush1.bf16.msra.mxu0 %v5464_v10  ;;  %2972 = vmatpush1.bf16.msra.mxu1 %v5467_v26  ;;  %v1470_v48 = vpop.f32.mrb[44].mxu0  ;;  %v1543_v51 = vpop.f32.mrb[52].mxu1 }
 0x3ca   :  { %v1471_v0 = vadd.f32 %v1470_v48, %v6456_v60  ;;  %v1544_v50 = vadd.f32 %v1543_v51, %v6460_v46  ;;  %v1472_v1 = vpop.f32.mrb[45].mxu0  ;;  %v1545_v2 = vpop.f32.mrb[53].mxu1  ;;  %2827 = vmatprep.subr.bf16.mxu0 %v5472_v27  ;;  %2973 = vmatprep.subr.bf16.mxu1 %v5475_v36  ;;  %v5493_v48 = vld [vmem:[%s7284_s10 + $0x2ec] ss:$16 sps:$4 sm:$0xff]  }
 0x3cb   :  { %v1473_v19 = vadd.f32 %v1472_v1, %v6464_v61  ;;  %v1546_v31 = vadd.f32 %v1545_v2, %v6468_v62  ;;  %v1474_v9 = vpop.f32.mrb[46].mxu0  ;;  %v1547_v12 = vpop.f32.mrb[54].mxu1  ;;  %2798 = vmatprep.mubr.bf16.mxu0 %v1949_v45  ;;  %2944 = vmatprep.mubr.bf16.mxu1 %v1949_v45  ;;  %v5490_v45 = vld [vmem:[%s7284_s10 + $0x2e4] ss:$16 sps:$4 sm:$0xff]   ;;  %v5488_v2 = vld [vmem:[%s7284_s10 + $0x2e0] ss:$16 sps:$4 sm:$0xff]  }
 0x3cc   :  { %v1475_v14 = vadd.f32 %v1474_v9, %v6456_v60  ;;  %v1548_v15 = vadd.f32 %v1547_v12, %v6460_v46  ;;  %v1476_v16 = vpop.f32.mrb[47].mxu0  ;;  %v1549_v28 = vpop.f32.mrb[55].mxu1  ;;  %2799 = vmatmul.mubr.bf16.gmra.mrb[88].mxu0 %v1948_v41  ;;  %2945 = vmatmul.mubr.bf16.gmra.mrb[96].mxu1 %v1948_v41  ;;  %v5479_v60 = vld [vmem:[%s7284_s10 + $0x2a8] ss:$16 sps:$4 sm:$0xff]   ;;  %v6594_v46 = vrot.slane %v6446_v58, %v1003_v49  ;;  %v1918_v22 = vmax.f32 %v1544_v50, 0.0 }
 0x3cd   :  { %v1477_v17 = vadd.f32 %v1476_v16, %v6464_v61  ;;  %v1550_v18 = vadd.f32 %v1549_v28, %v6468_v62  ;;  %2828 = vmatpush1.bf16.msra.mxu0 %v5470_v43  ;;  %2974 = vmatpush1.bf16.msra.mxu1 %v5473_v63  ;;  %v1916_v61 = vmax.f32 %v1471_v0, 0.0  ;;  %v1917_v10 = vmax.f32 %v1473_v19, 0.0 }
 0x3ce   :  { %v1928_v62 = vmax.f32 %v1475_v14, 0.0  ;;  %v1930_v8 = vmax.f32 %v1548_v15, 0.0  ;;  %2829 = vmatprep.subr.bf16.mxu0 %v5478_v3  ;;  %2975 = vmatprep.subr.bf16.mxu1 %v5481_v4  ;;  %v1919_v11 = vmax.f32 %v1546_v31, 0.0  ;;  %v5491_v3 = vld [vmem:[%s7284_s10 + $0x2e8] ss:$16 sps:$4 sm:$0xff]  }
 0x3cf   :  { %v1929_v25 = vmax.f32 %v1477_v17, 0.0  ;;  %v1931_v26 = vmax.f32 %v1550_v18, 0.0  ;;  %v5496_v4 = vld [vmem:[%s7284_s10 + $0x304] ss:$16 sps:$4 sm:$0xff]   ;;  %v5499_v14 = vld [vmem:[%s7284_s10 + $0x30c] ss:$16 sps:$4 sm:$0xff]  }
 0x3d0   :  { %v1952_v58 = vpack.c.bf16 %v1928_v62, %v1916_v61  ;;  %v6602_v27 = vpack.c.bf16 %v1930_v8, %v1918_v22  ;;  %v5494_v22 = vld [vmem:[%s7284_s10 + $0x300] ss:$16 sps:$4 sm:$0xff]   ;;  %v5497_v62 = vld [vmem:[%s7284_s10 + $0x308] ss:$16 sps:$4 sm:$0xff]  }
 0x3d1   :  { %v1953_v29 = vpack.c.bf16 %v1929_v25, %v1917_v10  ;;  %v6604_v30 = vpack.c.bf16 %v1931_v26, %v1919_v11  ;;  %2830 = vmatpush1.bf16.msra.mxu0 %v5476_v20  ;;  %2976 = vmatpush1.bf16.msra.mxu1 %v5479_v60  ;;  %v1586_v32 = vpop.f32.mrb[48].mxu0  ;;  %v1659_v33 = vpop.f32.mrb[56].mxu1  ;;  %v5502_v25 = vld [vmem:[%s7284_s10 + $0x324] ss:$16 sps:$4 sm:$0xff]   ;;  %v5505_v26 = vld [vmem:[%s7284_s10 + $0x32c] ss:$16 sps:$4 sm:$0xff]  }
 0x3d2   :  { %v1587_v36 = vadd.f32 %v1586_v32, %v6573_v54  ;;  %v1660_v37 = vadd.f32 %v1659_v33, %v6578_v13  ;;  %v1588_v38 = vpop.f32.mrb[49].mxu0  ;;  %v1661_v39 = vpop.f32.mrb[57].mxu1  ;;  %2831 = vmatprep.subr.bf16.mxu0 %v5484_v21  ;;  %2977 = vmatprep.subr.bf16.mxu1 %v5487_v24 }
 0x3d3   :  { %v1589_v40 = vadd.f32 %v1588_v38, %v6583_v7  ;;  %v1662_v41 = vadd.f32 %v1661_v39, %v6594_v46  ;;  %v1590_v43 = vpop.f32.mrb[50].mxu0  ;;  %v1663_v44 = vpop.f32.mrb[58].mxu1  ;;  %2808 = vmatprep.mubr.bf16.mxu0 %v1953_v29  ;;  %2954 = vmatprep.mubr.bf16.mxu1 %v1953_v29 }
 0x3d4   :  { %v1591_v51 = vadd.f32 %v1590_v43, %v6573_v54  ;;  %v1664_v63 = vadd.f32 %v1663_v44, %v6578_v13  ;;  %v1592_v49 = vpop.f32.mrb[51].mxu0  ;;  %v1665_v0 = vpop.f32.mrb[59].mxu1  ;;  %2809 = vmatmul.mubr.bf16.gmra.mrb[92].mxu0 %v1952_v58  ;;  %2955 = vmatmul.mubr.bf16.gmra.mrb[100].mxu1 %v1952_v58  ;;  %v1848_v19 = vmax.f32 %v1587_v36, 0.0  ;;  %v1850_v31 = vmax.f32 %v1660_v37, 0.0  ;;  %v5508_v43 = vld [vmem:[%s7284_s10 + $0x344] ss:$16 sps:$4 sm:$0xff]  }
 0x3d5   :  { %v1593_v50 = vadd.f32 %v1592_v49, %v6583_v7  ;;  %v1666_v1 = vadd.f32 %v1665_v0, %v6594_v46  ;;  %2832 = vmatpush1.bf16.msra.mxu0 %v5482_v34  ;;  %2978 = vmatpush1.bf16.msra.mxu1 %v5485_v35  ;;  %v1849_v15 = vmax.f32 %v1589_v40, 0.0  ;;  %v1851_v16 = vmax.f32 %v1662_v41, 0.0  ;;  %v5500_v40 = vld [vmem:[%s7284_s10 + $0x320] ss:$16 sps:$4 sm:$0xff]   ;;  %v5503_v41 = vld [vmem:[%s7284_s10 + $0x328] ss:$16 sps:$4 sm:$0xff]  }
 0x3d6   :  { %v1860_v9 = vmax.f32 %v1591_v51, 0.0  ;;  %v1862_v12 = vmax.f32 %v1664_v63, 0.0  ;;  %2851 = vmatprep.mubr.bf16.mxu0 %v6480_v23  ;;  %2997 = vmatprep.mubr.bf16.mxu1 %v6480_v23  ;;  %v5511_v63 = vld [vmem:[%s7284_s10 + $0x34c] ss:$16 sps:$4 sm:$0xff]  }
 0x3d7   :  { %v1861_v28 = vmax.f32 %v1593_v50, 0.0  ;;  %v1863_v17 = vmax.f32 %v1666_v1, 0.0  ;;  %2833 = vmatprep.subr.bf16.mxu0 %v5490_v45  ;;  %2979 = vmatprep.subr.bf16.mxu1 %v5493_v48 }
 0x3d8   :  { %v6640_v18 = vpack.c.bf16 %v1860_v9, %v1848_v19  ;;  %v6642_v20 = vpack.c.bf16 %v1862_v12, %v1850_v31  ;;  %v5506_v12 = vld [vmem:[%s7284_s10 + $0x340] ss:$16 sps:$4 sm:$0xff]  }
 0x3d9   :  { %v6644_v60 = vpack.c.bf16 %v1861_v28, %v1849_v15  ;;  %v6646_v21 = vpack.c.bf16 %v1863_v17, %v1851_v16  ;;  %2834 = vmatpush1.bf16.msra.mxu0 %v5488_v2  ;;  %2980 = vmatpush1.bf16.msra.mxu1 %v5491_v3  ;;  %v1596_v23 = vpop.f32.mrb[52].mxu0  ;;  %v1669_v61 = vpop.f32.mrb[60].mxu1 }
 0x3da   :  { %v1597_v8 = vadd.f32 %v1596_v23, %v6573_v54  ;;  %v1670_v24 = vadd.f32 %v1669_v61, %v6578_v13  ;;  %v1598_v10 = vpop.f32.mrb[53].mxu0  ;;  %v1671_v11 = vpop.f32.mrb[61].mxu1  ;;  %2835 = vmatprep.subr.bf16.mxu0 %v5496_v4  ;;  %2981 = vmatprep.subr.bf16.mxu1 %v5499_v14  ;;  %v5509_v14 = vld [vmem:[%s7284_s10 + $0x348] ss:$16 sps:$4 sm:$0xff]   ;;  %v5514_v23 = vld [vmem:[%s7284_s10 + $0x364] ss:$16 sps:$4 sm:$0xff]  }
 0x3db   :  { %v1599_v58 = vadd.f32 %v1598_v10, %v6583_v7  ;;  %v1672_v29 = vadd.f32 %v1671_v11, %v6594_v46  ;;  %v1600_v32 = vpop.f32.mrb[54].mxu0  ;;  %v1673_v33 = vpop.f32.mrb[62].mxu1  ;;  %v5517_v61 = vld [vmem:[%s7284_s10 + $0x36c] ss:$16 sps:$4 sm:$0xff]  }
 0x3dc   :  { %v1601_v34 = vadd.f32 %v1600_v32, %v6573_v54  ;;  %v1674_v35 = vadd.f32 %v1673_v33, %v6578_v13  ;;  %v1602_v36 = vpop.f32.mrb[55].mxu0  ;;  %v1675_v37 = vpop.f32.mrb[63].mxu1  ;;  %v1872_v44 = vmax.f32 %v1597_v8, 0.0  ;;  %v1874_v45 = vmax.f32 %v1670_v24, 0.0  ;;  %v5512_v32 = vld [vmem:[%s7284_s10 + $0x360] ss:$16 sps:$4 sm:$0xff]  }
 0x3dd   :  { %v1603_v38 = vadd.f32 %v1602_v36, %v6583_v7  ;;  %v1676_v39 = vadd.f32 %v1675_v37, %v6594_v46  ;;  %2836 = vmatpush1.bf16.msra.mxu0 %v5494_v22  ;;  %2982 = vmatpush1.bf16.msra.mxu1 %v5497_v62  ;;  %v1873_v49 = vmax.f32 %v1599_v58, 0.0  ;;  %v1875_v0 = vmax.f32 %v1672_v29, 0.0  ;;  %v5515_v33 = vld [vmem:[%s7284_s10 + $0x368] ss:$16 sps:$4 sm:$0xff]  }
 0x3de   :  { %v1884_v48 = vmax.f32 %v1601_v34, 0.0  ;;  %v1886_v51 = vmax.f32 %v1674_v35, 0.0  ;;  %2837 = vmatprep.subr.bf16.mxu0 %v5502_v25  ;;  %2983 = vmatprep.subr.bf16.mxu1 %v5505_v26  ;;  %v5520_v34 = vld [vmem:[%s7284_s10 + $0x384] ss:$16 sps:$4 sm:$0xff]  }
 0x3df   :  { %v1885_v50 = vmax.f32 %v1603_v38, 0.0  ;;  %v1887_v1 = vmax.f32 %v1676_v39, 0.0  ;;  %v5523_v39 = vld [vmem:[%s7284_s10 + $0x38c] ss:$16 sps:$4 sm:$0xff]  }
 0x3e0   :  { %v6680_v2 = vpack.c.bf16 %v1884_v48, %v1872_v44  ;;  %v6682_v3 = vpack.c.bf16 %v1886_v51, %v1874_v45  ;;  %v970_v51 = vld [vmem:[%s7246_s9 + $0x8] sm:$0xf] }
 0x3e1   :  { %v6684_v4 = vpack.c.bf16 %v1885_v50, %v1873_v49  ;;  %v6686_v19 = vpack.c.bf16 %v1887_v1, %v1875_v0  ;;  %2838 = vmatpush1.bf16.msra.mxu0 %v5500_v40  ;;  %2984 = vmatpush1.bf16.msra.mxu1 %v5503_v41  ;;  %v1606_v31 = vpop.f32.mrb[56].mxu0  ;;  %v1679_v9 = vpop.f32.mrb[64].mxu1  ;;  %v5518_v1 = vld [vmem:[%s7284_s10 + $0x380] ss:$16 sps:$4 sm:$0xff]  }
 0x3e2   :  { %v1607_v15 = vadd.f32 %v1606_v31, %v6573_v54  ;;  %v1680_v16 = vadd.f32 %v1679_v9, %v6578_v13  ;;  %v1608_v28 = vpop.f32.mrb[57].mxu0  ;;  %v1681_v17 = vpop.f32.mrb[65].mxu1  ;;  %2839 = vmatprep.subr.bf16.mxu0 %v5508_v43  ;;  %2985 = vmatprep.subr.bf16.mxu1 %v5511_v63  ;;  %v5521_v31 = vld [vmem:[%s7284_s10 + $0x388] ss:$16 sps:$4 sm:$0xff]  }
 0x3e3   :  { %v1609_v22 = vadd.f32 %v1608_v28, %v6583_v7  ;;  %v1682_v62 = vadd.f32 %v1681_v17, %v6594_v46  ;;  %v1610_v8 = vpop.f32.mrb[58].mxu0  ;;  %v1683_v24 = vpop.f32.mrb[66].mxu1  ;;  %v5529_v28 = vld [vmem:[%s7284_s10 + $0x3ac] ss:$16 sps:$4 sm:$0xff]  }
 0x3e4   :  { %v1611_v10 = vadd.f32 %v1610_v8, %v6573_v54  ;;  %v1684_v11 = vadd.f32 %v1683_v24, %v6578_v13  ;;  %v1612_v25 = vpop.f32.mrb[59].mxu0  ;;  %v1685_v26 = vpop.f32.mrb[67].mxu1  ;;  %v1896_v35 = vmax.f32 %v1607_v15, 0.0  ;;  %v1898_v36 = vmax.f32 %v1680_v16, 0.0  ;;  %v5526_v16 = vld [vmem:[%s7284_s10 + $0x3a4] ss:$16 sps:$4 sm:$0xff]  }
 0x3e5   :  { %v1613_v58 = vadd.f32 %v1612_v25, %v6583_v7  ;;  %v1686_v29 = vadd.f32 %v1685_v26, %v6594_v46  ;;  %2840 = vmatpush1.bf16.msra.mxu0 %v5506_v12  ;;  %2986 = vmatpush1.bf16.msra.mxu1 %v5509_v14  ;;  %v1897_v40 = vmax.f32 %v1609_v22, 0.0  ;;  %v1899_v41 = vmax.f32 %v1682_v62, 0.0 }
 0x3e6   :  { %v1908_v37 = vmax.f32 %v1611_v10, 0.0  ;;  %v1910_v38 = vmax.f32 %v1684_v11, 0.0  ;;  %2841 = vmatprep.subr.bf16.mxu0 %v5514_v23  ;;  %2987 = vmatprep.subr.bf16.mxu1 %v5517_v61  ;;  %v6748_v62 = vrot.slane %v970_v51, %v6438_v56  ;;  %v6753_v25 = vrot.slane %v970_v51, %v6441_v57 }
 0x3e7   :  { %v1909_v43 = vmax.f32 %v1613_v58, 0.0  ;;  %v1911_v44 = vmax.f32 %v1686_v29, 0.0  ;;  %v6756_v26 = vrot.slane %v970_v51, %v6449_v59 }
 0x3e8   :  { %v6720_v45 = vpack.c.bf16 %v1908_v37, %v1896_v35  ;;  %v6722_v48 = vpack.c.bf16 %v1910_v38, %v1898_v36  ;;  %v5535_v36 = vld [vmem:[%s7284_s10 + $0x3cc] ss:$16 sps:$4 sm:$0xff]  }
 0x3e9   :  { %v6727_v63 = vpack.c.bf16 %v1909_v43, %v1897_v40  ;;  %v6729_v49 = vpack.c.bf16 %v1911_v44, %v1899_v41  ;;  %2842 = vmatpush1.bf16.msra.mxu0 %v5512_v32  ;;  %2988 = vmatpush1.bf16.msra.mxu1 %v5515_v33  ;;  %v1616_v0 = vpop.f32.mrb[60].mxu0  ;;  %v1689_v50 = vpop.f32.mrb[68].mxu1  ;;  %v6767_v32 = vrot.slane %v970_v51, %v6452_v53  ;;  %v5532_v33 = vld [vmem:[%s7284_s10 + $0x3c4] ss:$16 sps:$4 sm:$0xff]  }
 0x3ea   :  { %v1617_v9 = vadd.f32 %v1616_v0, %v6573_v54  ;;  %v1690_v12 = vadd.f32 %v1689_v50, %v6578_v13  ;;  %v1618_v14 = vpop.f32.mrb[61].mxu0  ;;  %v1691_v15 = vpop.f32.mrb[69].mxu1  ;;  %2843 = vmatprep.subr.bf16.mxu0 %v5520_v34  ;;  %2989 = vmatprep.subr.bf16.mxu1 %v5523_v39 }
 0x3eb   :  { %v1619_v17 = vadd.f32 %v1618_v14, %v6583_v7  ;;  %v1692_v23 = vadd.f32 %v1691_v15, %v6594_v46  ;;  %v1620_v61 = vpop.f32.mrb[62].mxu0  ;;  %v1693_v22 = vpop.f32.mrb[70].mxu1 }
 0x3ec   :  { %v1621_v8 = vadd.f32 %v1620_v61, %v6573_v54  ;;  %v1694_v24 = vadd.f32 %v1693_v22, %v6578_v13  ;;  %v1622_v10 = vpop.f32.mrb[63].mxu0  ;;  %v1695_v11 = vpop.f32.mrb[71].mxu1  ;;  %v5524_v54 = vld [vmem:[%s7284_s10 + $0x3a0] ss:$16 sps:$4 sm:$0xff]   ;;  %v5527_v13 = vld [vmem:[%s7284_s10 + $0x3a8] ss:$16 sps:$4 sm:$0xff]  }
 0x3ed   :  { %v1623_v58 = vadd.f32 %v1622_v10, %v6583_v7  ;;  %v1696_v29 = vadd.f32 %v1695_v11, %v6594_v46  ;;  %2844 = vmatpush1.bf16.msra.mxu0 %v5518_v1  ;;  %2990 = vmatpush1.bf16.msra.mxu1 %v5521_v31  ;;  %v1920_v7 = vmax.f32 %v1617_v9, 0.0  ;;  %v1922_v34 = vmax.f32 %v1690_v12, 0.0  ;;  %v5530_v1 = vld [vmem:[%s7284_s10 + $0x3c0] ss:$16 sps:$4 sm:$0xff]   ;;  %v5533_v31 = vld [vmem:[%s7284_s10 + $0x3c8] ss:$16 sps:$4 sm:$0xff]  }
 0x3ee   :  { %v1932_v46 = vmax.f32 %v1621_v8, 0.0  ;;  %v1934_v35 = vmax.f32 %v1694_v24, 0.0  ;;  %2845 = vmatprep.subr.bf16.mxu0 %v5526_v16  ;;  %2991 = vmatprep.subr.bf16.mxu1 %v5529_v28  ;;  %v1921_v37 = vmax.f32 %v1619_v17, 0.0  ;;  %v1923_v38 = vmax.f32 %v1692_v23, 0.0  ;;  %v5538_v16 = vld [vmem:[%s7284_s10 + $0x3e4] ss:$16 sps:$4 sm:$0xff]  }
 0x3ef   :  { %v1933_v39 = vmax.f32 %v1623_v58, 0.0  ;;  %v1935_v40 = vmax.f32 %v1696_v29, 0.0  ;;  %v5541_v28 = vld [vmem:[%s7284_s10 + $0x3ec] ss:$16 sps:$4 sm:$0xff]  }
 0x3f0   :  { %v6775_v41 = vpack.c.bf16 %v1932_v46, %v1920_v7  ;;  %v6777_v43 = vpack.c.bf16 %v1934_v35, %v1922_v34 }
 0x3f1   :  { %v6779_v44 = vpack.c.bf16 %v1933_v39, %v1921_v37  ;;  %v6781_v51 = vpack.c.bf16 %v1935_v40, %v1923_v38  ;;  %2846 = vmatpush1.bf16.msra.mxu0 %v5524_v54  ;;  %2992 = vmatpush1.bf16.msra.mxu1 %v5527_v13  ;;  %v1732_v0 = vpop.f32.mrb[64].mxu0  ;;  %v1805_v50 = vpop.f32.mrb[72].mxu1  ;;  %v5536_v54 = vld [vmem:[%s7284_s10 + $0x3e0] ss:$16 sps:$4 sm:$0xff]   ;;  %v5539_v13 = vld [vmem:[%s7284_s10 + $0x3e8] ss:$16 sps:$4 sm:$0xff]  }
 0x3f2   :  { %v1733_v9 = vadd.f32 %v1732_v0, %v6748_v62  ;;  %v1806_v12 = vadd.f32 %v1805_v50, %v6753_v25  ;;  %v1734_v14 = vpop.f32.mrb[65].mxu0  ;;  %v1807_v15 = vpop.f32.mrb[73].mxu1  ;;  %2847 = vmatprep.subr.bf16.mxu0 %v5532_v33  ;;  %2993 = vmatprep.subr.bf16.mxu1 %v5535_v36 }
 0x3f3   :  { %v1735_v17 = vadd.f32 %v1734_v14, %v6756_v26  ;;  %v1808_v23 = vadd.f32 %v1807_v15, %v6767_v32  ;;  %v1736_v61 = vpop.f32.mrb[66].mxu0  ;;  %v1809_v22 = vpop.f32.mrb[74].mxu1 }
 0x3f4   :  { %v1737_v8 = vadd.f32 %v1736_v61, %v6748_v62  ;;  %v1810_v24 = vadd.f32 %v1809_v22, %v6753_v25  ;;  %v1738_v10 = vpop.f32.mrb[67].mxu0  ;;  %v1811_v11 = vpop.f32.mrb[75].mxu1  ;;  %v1852_v33 = vmax.f32 %v1733_v9, 0.0  ;;  %v1854_v7 = vmax.f32 %v1806_v12, 0.0 }
 0x3f5   :  { %v1739_v58 = vadd.f32 %v1738_v10, %v6756_v26  ;;  %v1812_v29 = vadd.f32 %v1811_v11, %v6767_v32  ;;  %2848 = vmatpush1.bf16.msra.mxu0 %v5530_v1  ;;  %2994 = vmatpush1.bf16.msra.mxu1 %v5533_v31  ;;  %v1853_v35 = vmax.f32 %v1735_v17, 0.0  ;;  %v1855_v36 = vmax.f32 %v1808_v23, 0.0 }
 0x3f6   :  { %v1864_v34 = vmax.f32 %v1737_v8, 0.0  ;;  %v1866_v46 = vmax.f32 %v1810_v24, 0.0  ;;  %2849 = vmatprep.subr.bf16.mxu0 %v5538_v16  ;;  %2995 = vmatprep.subr.bf16.mxu1 %v5541_v28 }
 0x3f7   :  { %v1865_v37 = vmax.f32 %v1739_v58, 0.0  ;;  %v1867_v38 = vmax.f32 %v1812_v29, 0.0 }
 0x3f8   :  { %v5121_v39 = vpack.c.bf16 %v1864_v34, %v1852_v33  ;;  %v6809_v40 = vpack.c.bf16 %v1866_v46, %v1854_v7 }
 0x3f9   :  { %v5119_v0 = vpack.c.bf16 %v1865_v37, %v1853_v35  ;;  %v6811_v50 = vpack.c.bf16 %v1867_v38, %v1855_v36  ;;  %2850 = vmatpush1.bf16.msra.mxu0 %v5536_v54  ;;  %2996 = vmatpush1.bf16.msra.mxu1 %v5539_v13  ;;  %v1742_v1 = vpop.f32.mrb[68].mxu0  ;;  %v1815_v31 = vpop.f32.mrb[76].mxu1 }
 0x3fa   :  { %v1743_v9 = vadd.f32 %v1742_v1, %v6748_v62  ;;  %v1816_v12 = vadd.f32 %v1815_v31, %v6753_v25  ;;  %v1744_v14 = vpop.f32.mrb[69].mxu0  ;;  %v1817_v15 = vpop.f32.mrb[77].mxu1 }
 0x3fb   :  { %v1745_v16 = vadd.f32 %v1744_v14, %v6756_v26  ;;  %v1818_v28 = vadd.f32 %v1817_v15, %v6767_v32  ;;  %v1746_v17 = vpop.f32.mrb[70].mxu0  ;;  %v1819_v23 = vpop.f32.mrb[78].mxu1  ;;  %5120 = vmatprep.subr.bf16.mxu1 %v5119_v0 }
 0x3fc   :  { %v1747_v61 = vadd.f32 %v1746_v17, %v6748_v62  ;;  %v1820_v22 = vadd.f32 %v1819_v23, %v6753_v25  ;;  %2852 = vmatmul.mubr.bf16.vlgmr.msra.gmra.mrb[80].mxu0 %v6478_v6  ;;  %2998 = vmatmul.mubr.bf16.vlgmr.msra.gmra.mrb[88].mxu1 %v6478_v6  ;;  %v1748_v8 = vpop.f32.mrb[71].mxu0  ;;  %v1821_v24 = vpop.f32.mrb[79].mxu1  ;;  %v1876_v58 = vmax.f32 %v1743_v9, 0.0  ;;  %v1878_v29 = vmax.f32 %v1816_v12, 0.0 }
 0x3fd   :  { %v1749_v10 = vadd.f32 %v1748_v8, %v6756_v26  ;;  %v1822_v11 = vadd.f32 %v1821_v24, %v6767_v32  ;;  %2861 = vmatprep.mubr.bf16.mxu0 %v6516_v5  ;;  %3007 = vmatprep.mubr.bf16.mxu1 %v6516_v5  ;;  %v1877_v33 = vmax.f32 %v1745_v16, 0.0  ;;  %v1879_v7 = vmax.f32 %v1818_v28, 0.0 }
 0x3fe   :  { %v1888_v54 = vmax.f32 %v1747_v61, 0.0  ;;  %v1890_v13 = vmax.f32 %v1820_v22, 0.0  ;;  %5122 = vmatpush1.bf16.msra.mxu1 %v5121_v39 }
 0x3ff   :  { %v1889_v34 = vmax.f32 %v1749_v10, 0.0  ;;  %v1891_v46 = vmax.f32 %v1822_v11, 0.0 }
 0x400   :  { %v5125_v6 = vpack.c.bf16 %v1888_v54, %v1876_v58  ;;  %v6825_v35 = vpack.c.bf16 %v1890_v13, %v1878_v29 }
 0x401   :  { %v5123_v36 = vpack.c.bf16 %v1889_v34, %v1877_v33  ;;  %v6827_v37 = vpack.c.bf16 %v1891_v46, %v1879_v7  ;;  %v1752_v38 = vpop.f32.mrb[72].mxu0  ;;  %v1825_v0 = vpop.f32.mrb[80].mxu1 }
 0x402   :  { %v1753_v1 = vadd.f32 %v1752_v38, %v6748_v62  ;;  %v1826_v5 = vadd.f32 %v1825_v0, %v6753_v25  ;;  %v1754_v31 = vpop.f32.mrb[73].mxu0  ;;  %v1827_v9 = vpop.f32.mrb[81].mxu1 }
 0x403   :  { %v1755_v39 = vadd.f32 %v1754_v31, %v6756_v26  ;;  %v1828_v12 = vadd.f32 %v1827_v9, %v6767_v32  ;;  %v1756_v14 = vpop.f32.mrb[74].mxu0  ;;  %v1829_v15 = vpop.f32.mrb[82].mxu1  ;;  %5124 = vmatprep.subr.bf16.mxu1 %v5123_v36 }
 0x404   :  { %v1757_v16 = vadd.f32 %v1756_v14, %v6748_v62  ;;  %v1830_v28 = vadd.f32 %v1829_v15, %v6753_v25  ;;  %2862 = vmatmul.mubr.bf16.gmra.mrb[84].mxu0 %v6514_v52  ;;  %3008 = vmatmul.mubr.bf16.gmra.mrb[92].mxu1 %v6514_v52  ;;  %v1758_v17 = vpop.f32.mrb[75].mxu0  ;;  %v1831_v23 = vpop.f32.mrb[83].mxu1  ;;  %v1900_v8 = vmax.f32 %v1753_v1, 0.0  ;;  %v1902_v24 = vmax.f32 %v1826_v5, 0.0 }
 0x405   :  { %v1759_v61 = vadd.f32 %v1758_v17, %v6756_v26  ;;  %v1832_v22 = vadd.f32 %v1831_v23, %v6767_v32  ;;  %2871 = vmatprep.mubr.bf16.mxu0 %v6558_v47  ;;  %3017 = vmatprep.mubr.bf16.mxu1 %v6558_v47  ;;  %v1901_v58 = vmax.f32 %v1755_v39, 0.0  ;;  %v1903_v29 = vmax.f32 %v1828_v12, 0.0 }
 0x406   :  { %v1912_v10 = vmax.f32 %v1757_v16, 0.0  ;;  %v1914_v11 = vmax.f32 %v1830_v28, 0.0  ;;  %5126 = vmatpush1.bf16.msra.mxu1 %v5125_v6 }
 0x407   :  { %v1913_v54 = vmax.f32 %v1759_v61, 0.0  ;;  %v1915_v13 = vmax.f32 %v1832_v22, 0.0 }
 0x408   :  { %v5129_v52 = vpack.c.bf16 %v1912_v10, %v1900_v8  ;;  %v6841_v33 = vpack.c.bf16 %v1914_v11, %v1902_v24 }
 0x409   :  { %v5127_v7 = vpack.c.bf16 %v1913_v54, %v1901_v58  ;;  %v6843_v34 = vpack.c.bf16 %v1915_v13, %v1903_v29  ;;  %v1762_v46 = vpop.f32.mrb[76].mxu0  ;;  %v1835_v36 = vpop.f32.mrb[84].mxu1 }
 0x40a   :  { %v1763_v38 = vadd.f32 %v1762_v46, %v6748_v62  ;;  %v1836_v47 = vadd.f32 %v1835_v36, %v6753_v25  ;;  %v1764_v0 = vpop.f32.mrb[77].mxu0  ;;  %v1837_v1 = vpop.f32.mrb[85].mxu1 }
 0x40b   :  { %v1765_v6 = vadd.f32 %v1764_v0, %v6756_v26  ;;  %v1838_v5 = vadd.f32 %v1837_v1, %v6767_v32  ;;  %v1766_v31 = vpop.f32.mrb[78].mxu0  ;;  %v1839_v9 = vpop.f32.mrb[86].mxu1  ;;  %5128 = vmatprep.subr.bf16.mxu1 %v5127_v7 }
 0x40c   :  { %v1767_v39 = vadd.f32 %v1766_v31, %v6748_v62  ;;  %v1840_v12 = vadd.f32 %v1839_v9, %v6753_v25  ;;  %2872 = vmatmul.mubr.bf16.gmra.mrb[88].mxu0 %v6552_v42  ;;  %3018 = vmatmul.mubr.bf16.gmra.mrb[96].mxu1 %v6552_v42  ;;  %v1768_v14 = vpop.f32.mrb[79].mxu0  ;;  %v1841_v15 = vpop.f32.mrb[87].mxu1  ;;  %v1924_v17 = vmax.f32 %v1763_v38, 0.0  ;;  %v1926_v23 = vmax.f32 %v1836_v47, 0.0 }
 0x40d   :  { %v1769_v16 = vadd.f32 %v1768_v14, %v6756_v26  ;;  %v1842_v28 = vadd.f32 %v1841_v15, %v6767_v32  ;;  %2881 = vmatprep.mubr.bf16.mxu0 %v6604_v30  ;;  %3027 = vmatprep.mubr.bf16.mxu1 %v6604_v30  ;;  %v1925_v25 = vmax.f32 %v1765_v6, 0.0  ;;  %v1927_v22 = vmax.f32 %v1838_v5, 0.0  ;;  %v2084_v32 = vld [vmem:[%s7248_s11] sm:$0xf] }
 0x40e   :  { %v1936_v61 = vmax.f32 %v1767_v39, 0.0  ;;  %v1938_v62 = vmax.f32 %v1840_v12, 0.0  ;;  %5130 = vmatpush1.bf16.msra.mxu1 %v5129_v52  ;;  %v5607_v30 = vmov 0.0   ;;  %v6884_v58 = vrot.slane %v2084_v32, %v6438_v56 }
 0x40f   :  { %v1937_v8 = vmax.f32 %v1769_v16, 0.0  ;;  %v1939_v24 = vmax.f32 %v1842_v28, 0.0  ;;  %82 = vst [vmem:[#allocation3] sm:$0x3f] %v5607_v30  ;;  %83 = vst [vmem:[#allocation3 + $0x8] sm:$0x3f] %v5607_v30  ;;  %v6887_v29 = vrot.slane %v2084_v32, %v6441_v57  ;;  %v6890_v54 = vrot.slane %v2084_v32, %v6449_v59 }
 0x410   :  { %v5133_v42 = vpack.c.bf16 %v1936_v61, %v1924_v17  ;;  %v6857_v10 = vpack.c.bf16 %v1938_v62, %v1926_v23  ;;  %84 = vst [vmem:[#allocation3 + $0x10] sm:$0x3f] %v5607_v30  ;;  %85 = vst [vmem:[#allocation3 + $0x18] sm:$0x3f] %v5607_v30  ;;  %v6893_v13 = vrot.slane %v2084_v32, %v6452_v53 }
 0x411   :  { %v5131_v11 = vpack.c.bf16 %v1937_v8, %v1925_v25  ;;  %v6859_v26 = vpack.c.bf16 %v1939_v24, %v1927_v22  ;;  %86 = vst [vmem:[#allocation3 + $0x20] sm:$0x3f] %v5607_v30  ;;  %87 = vst [vmem:[#allocation3 + $0x28] sm:$0x3f] %v5607_v30 }
 0x412   :  { %88 = vst [vmem:[#allocation3 + $0x30] sm:$0x3f] %v5607_v30  ;;  %89 = vst [vmem:[#allocation3 + $0x38] sm:$0x3f] %v5607_v30 }
 0x413   :  { %5132 = vmatprep.subr.bf16.mxu1 %v5131_v11 }
 0x414   :  { %2882 = vmatmul.mubr.bf16.gmra.mrb[92].mxu0 %v6602_v27  ;;  %3028 = vmatmul.mubr.bf16.gmra.mrb[100].mxu1 %v6602_v27  ;;  %v6875_v27 = vld [vmem:[%s7247_s1] sm:$0x3f] }
 0x415   :  { %5134 = vmatpush1.bf16.msra.mxu1 %v5133_v42  ;;  %3139 = vmatprep.mubr.f32.mxu0 %v5607_v30 }
 0x416   :  { %3455 = vmatprep.mubr.f32.mxu1 %v5607_v30 }
 0x41c   :  { %4728 = vmatmul.mubr.msk.f32.vlgmr.msra.gmra.mrb[104].mxu1 %vm807_vm2, %v6875_v27 }
 0x4cf   :  { %v2853_v52 = vpop.f32.mrb[80].mxu0  ;;  %v2999_v7 = vpop.f32.mrb[88].mxu1 }
 0x4d0   :  { %v5151_v46 = vadd.f32 %v2853_v52, %v6884_v58  ;;  %v5167_v36 = vadd.f32 %v2999_v7, %v6887_v29  ;;  %v2855_v38 = vpop.f32.mrb[81].mxu0  ;;  %v3001_v47 = vpop.f32.mrb[89].mxu1 }
 0x4d1   :  { %v5152_v56 = vadd.f32 %v2855_v38, %v6890_v54  ;;  %v5168_v0 = vadd.f32 %v3001_v47, %v6893_v13  ;;  %v2857_v57 = vpop.f32.mrb[82].mxu0  ;;  %v3003_v1 = vpop.f32.mrb[90].mxu1 }
 0x4d2   :  { %v5153_v59 = vadd.f32 %v2857_v57, %v6884_v58  ;;  %v5169_v6 = vadd.f32 %v3003_v1, %v6887_v29  ;;  %v2859_v53 = vpop.f32.mrb[83].mxu0  ;;  %v3005_v5 = vpop.f32.mrb[91].mxu1  ;;  %v3038_v39 = vmax.f32 %v5151_v46, 0.0  ;;  %v3040_v12 = vmax.f32 %v5167_v36, 0.0 }
 0x4d3   :  { %v5154_v31 = vadd.f32 %v2859_v53, %v6890_v54  ;;  %v5170_v9 = vadd.f32 %v3005_v5, %v6893_v13  ;;  %v3039_v16 = vmax.f32 %v5152_v56, 0.0  ;;  %v3041_v28 = vmax.f32 %v5168_v0, 0.0 }
 0x4d4   :  { %v3042_v14 = vmax.f32 %v5153_v59, 0.0  ;;  %v3044_v15 = vmax.f32 %v5169_v6, 0.0 }
 0x4d5   :  { %v3043_v17 = vmax.f32 %v5154_v31, 0.0  ;;  %v3045_v23 = vmax.f32 %v5170_v9, 0.0 }
 0x4d6   :  { %v5057_v61 = vpack.c.bf16 %v3042_v14, %v3038_v39  ;;  %v6903_v62 = vpack.c.bf16 %v3044_v15, %v3040_v12 }
 0x4d7   :  { %v5055_v25 = vpack.c.bf16 %v3043_v17, %v3039_v16  ;;  %v6905_v22 = vpack.c.bf16 %v3045_v23, %v3041_v28  ;;  %v2863_v8 = vpop.f32.mrb[84].mxu0  ;;  %v3009_v24 = vpop.f32.mrb[92].mxu1 }
 0x4d8   :  { %v5155_v42 = vadd.f32 %v2863_v8, %v6884_v58  ;;  %v5171_v11 = vadd.f32 %v3009_v24, %v6887_v29  ;;  %v2865_v32 = vpop.f32.mrb[85].mxu0  ;;  %v3011_v52 = vpop.f32.mrb[93].mxu1 }
 0x4d9   :  { %v5156_v7 = vadd.f32 %v2865_v32, %v6890_v54  ;;  %v5172_v46 = vadd.f32 %v3011_v52, %v6893_v13  ;;  %v2867_v36 = vpop.f32.mrb[86].mxu0  ;;  %v3013_v38 = vpop.f32.mrb[94].mxu1  ;;  %5056 = vmatprep.subr.bf16.mxu0 %v5055_v25 }
 0x4da   :  { %v5157_v47 = vadd.f32 %v2867_v36, %v6884_v58  ;;  %v5173_v56 = vadd.f32 %v3013_v38, %v6887_v29  ;;  %v2869_v0 = vpop.f32.mrb[87].mxu0  ;;  %v3015_v57 = vpop.f32.mrb[95].mxu1  ;;  %5058 = vmatpush1.bf16.msra.mxu0 %v5057_v61  ;;  %v3046_v6 = vmax.f32 %v5155_v42, 0.0  ;;  %v3048_v53 = vmax.f32 %v5171_v11, 0.0 }
 0x4db   :  { %v5158_v1 = vadd.f32 %v2869_v0, %v6890_v54  ;;  %v5174_v59 = vadd.f32 %v3015_v57, %v6893_v13  ;;  %v3047_v9 = vmax.f32 %v5156_v7, 0.0  ;;  %v3049_v39 = vmax.f32 %v5172_v46, 0.0 }
 0x4dc   :  { %v3050_v5 = vmax.f32 %v5157_v47, 0.0  ;;  %v3052_v31 = vmax.f32 %v5173_v56, 0.0 }
 0x4dd   :  { %v3051_v12 = vmax.f32 %v5158_v1, 0.0  ;;  %v3053_v14 = vmax.f32 %v5174_v59, 0.0 }
 0x4de   :  { %v5061_v15 = vpack.c.bf16 %v3050_v5, %v3046_v6  ;;  %v6915_v16 = vpack.c.bf16 %v3052_v31, %v3048_v53 }
 0x4df   :  { %v5059_v28 = vpack.c.bf16 %v3051_v12, %v3047_v9  ;;  %v6917_v17 = vpack.c.bf16 %v3053_v14, %v3049_v39  ;;  %v2873_v23 = vpop.f32.mrb[88].mxu0  ;;  %v3019_v61 = vpop.f32.mrb[96].mxu1 }
 0x4e0   :  { %v5159_v25 = vadd.f32 %v2873_v23, %v6884_v58  ;;  %v5175_v8 = vadd.f32 %v3019_v61, %v6887_v29  ;;  %v2875_v24 = vpop.f32.mrb[89].mxu0  ;;  %v3021_v42 = vpop.f32.mrb[97].mxu1 }
 0x4e1   :  { %v5160_v11 = vadd.f32 %v2875_v24, %v6890_v54  ;;  %v5176_v32 = vadd.f32 %v3021_v42, %v6893_v13  ;;  %v2877_v52 = vpop.f32.mrb[90].mxu0  ;;  %v3023_v7 = vpop.f32.mrb[98].mxu1  ;;  %5060 = vmatprep.subr.bf16.mxu0 %v5059_v28 }
 0x4e2   :  { %v5161_v46 = vadd.f32 %v2877_v52, %v6884_v58  ;;  %v5177_v36 = vadd.f32 %v3023_v7, %v6887_v29  ;;  %v2879_v38 = vpop.f32.mrb[91].mxu0  ;;  %v3025_v47 = vpop.f32.mrb[99].mxu1  ;;  %5062 = vmatpush1.bf16.msra.mxu0 %v5061_v15  ;;  %v3054_v57 = vmax.f32 %v5159_v25, 0.0  ;;  %v3056_v1 = vmax.f32 %v5175_v8, 0.0 }
 0x4e3   :  { %v5162_v56 = vadd.f32 %v2879_v38, %v6890_v54  ;;  %v5178_v0 = vadd.f32 %v3025_v47, %v6893_v13  ;;  %v3055_v53 = vmax.f32 %v5160_v11, 0.0  ;;  %v3057_v5 = vmax.f32 %v5176_v32, 0.0 }
 0x4e4   :  { %v3058_v59 = vmax.f32 %v5161_v46, 0.0  ;;  %v3060_v6 = vmax.f32 %v5177_v36, 0.0 }
 0x4e5   :  { %v3059_v31 = vmax.f32 %v5162_v56, 0.0  ;;  %v3061_v9 = vmax.f32 %v5178_v0, 0.0 }
 0x4e6   :  { %v5065_v39 = vpack.c.bf16 %v3058_v59, %v3054_v57  ;;  %v5081_v12 = vpack.c.bf16 %v3060_v6, %v3056_v1 }
 0x4e7   :  { %v5063_v14 = vpack.c.bf16 %v3059_v31, %v3055_v53  ;;  %v5079_v28 = vpack.c.bf16 %v3061_v9, %v3057_v5  ;;  %v2883_v23 = vpop.f32.mrb[92].mxu0  ;;  %v3029_v61 = vpop.f32.mrb[100].mxu1 }
 0x4e8   :  { %v5163_v15 = vadd.f32 %v2883_v23, %v6884_v58  ;;  %v5179_v24 = vadd.f32 %v3029_v61, %v6887_v29  ;;  %v2885_v42 = vpop.f32.mrb[93].mxu0  ;;  %v3031_v52 = vpop.f32.mrb[101].mxu1  ;;  %v3246_v61 = vld [vmem:[#allocation3 + $0x28] sm:$0x3f] }
 0x4e9   :  { %v5164_v25 = vadd.f32 %v2885_v42, %v6890_v54  ;;  %v5180_v8 = vadd.f32 %v3031_v52, %v6893_v13  ;;  %v2887_v11 = vpop.f32.mrb[94].mxu0  ;;  %v3033_v32 = vpop.f32.mrb[102].mxu1  ;;  %5064 = vmatprep.subr.bf16.mxu0 %v5063_v14 }
 0x4ea   :  { %v5165_v7 = vadd.f32 %v2887_v11, %v6884_v58  ;;  %v5181_v46 = vadd.f32 %v3033_v32, %v6887_v29  ;;  %v2889_v36 = vpop.f32.mrb[95].mxu0  ;;  %v3035_v38 = vpop.f32.mrb[103].mxu1  ;;  %5066 = vmatpush1.bf16.msra.mxu0 %v5065_v39  ;;  %v3062_v0 = vmax.f32 %v5163_v15, 0.0  ;;  %v3064_v57 = vmax.f32 %v5179_v24, 0.0  ;;  %v5567_v29 = vld [vmem:[%s7249_s12 + $0xe0] sm:$0xff]   ;;  %v5581_v39 = vld [vmem:[%s7249_s12 + $0xb8] sm:$0xff]  }
 0x4eb   :  { %v5166_v47 = vadd.f32 %v2889_v36, %v6890_v54  ;;  %v5182_v56 = vadd.f32 %v3035_v38, %v6893_v13  ;;  %v3063_v6 = vmax.f32 %v5164_v25, 0.0  ;;  %v3065_v53 = vmax.f32 %v5180_v8, 0.0  ;;  %v5569_v54 = vld [vmem:[%s7249_s12 + $0xa0] sm:$0xff]   ;;  %v5571_v13 = vld [vmem:[%s7249_s12 + $0xe8] sm:$0xff]  }
 0x4ec   :  { %v3066_v1 = vmax.f32 %v5165_v7, 0.0  ;;  %v3068_v59 = vmax.f32 %v5181_v46, 0.0  ;;  %v5608_v11 = vmov 1983009808  }
 0x4ed   :  { %v3067_v5 = vmax.f32 %v5166_v47, 0.0  ;;  %v3069_v31 = vmax.f32 %v5182_v56, 0.0  ;;  %v3224_v32 = vunpack.c.l.s4 %v5608_v11  ;;  %v5583_v11 = vld [vmem:[%s7250_s15 + $0x20] sm:$0xff]  }
 0x4ee   :  { %v5069_v9 = vpack.c.bf16 %v3066_v1, %v3062_v0  ;;  %v5085_v14 = vpack.c.bf16 %v3068_v59, %v3064_v57  ;;  %v3241_v1 = vld [vmem:[#allocation3] sm:$0x3f]  ;;  %v3242_v59 = vld [vmem:[#allocation3 + $0x8] sm:$0x3f] }
 0x4ef   :  { %v5067_v58 = vpack.c.bf16 %v3067_v5, %v3063_v6  ;;  %v5083_v23 = vpack.c.bf16 %v3069_v31, %v3065_v53  ;;  %v3225_v7 = vunpack.c.0.s8 %v3224_v32 }
 0x4f1   :  { %5068 = vmatprep.subr.bf16.mxu0 %v5067_v58  ;;  %v3228_v46 = vsub.s32 %v3225_v7, %v6435_v55 }
 0x4f2   :  { %5070 = vmatpush1.bf16.msra.mxu0 %v5069_v9 }
 0x4f3   :  { %5072 = vmatprep.subr.bf16.mxu0 %v6905_v22  ;;  %v5575_v22 = vld [vmem:[%s7249_s12 + $0xf0] sm:$0xff]  }
 0x4f5   :  { %4724 = vmatmul.mubr.msk.f32.vlgmr.msra.gmra.mrb[96].mxu0 %vm807_vm2, %v6875_v27 }
 0x4f6   :  { %5074 = vmatpush1.bf16.msra.mxu0 %v6903_v62  ;;  %3210 = vmatprep.mubr.f32.mxu0 %v5607_v30  ;;  %v5573_v62 = vld [vmem:[%s7249_s12 + $0xa8] sm:$0xff]  }
 0x4f7   :  { %5076 = vmatprep.subr.bf16.mxu0 %v6917_v17  ;;  %v5579_v17 = vld [vmem:[%s7249_s12 + $0xf8] sm:$0xff]  }
 0x4fa   :  { %5078 = vmatpush1.bf16.msra.mxu0 %v6915_v16  ;;  %v5577_v16 = vld [vmem:[%s7249_s12 + $0xb0] sm:$0xff]  }
 0x4fb   :  { %5080 = vmatprep.subr.bf16.mxu0 %v5079_v28  ;;  %v3245_v28 = vld [vmem:[#allocation3 + $0x20] sm:$0x3f] }
 0x4fe   :  { %5082 = vmatpush1.bf16.msra.mxu0 %v5081_v12  ;;  %v3457_v12 = vpop.f32.mrb[104].mxu1 }
 0x4ff   :  { %5084 = vmatprep.subr.bf16.mxu0 %v5083_v23  ;;  %v3459_v15 = vpop.f32.mrb[105].mxu1  ;;  %v3537_v24 = vadd.f32 %v3457_v12, %v3245_v28  ;;  %v3248_v28 = vld [vmem:[#allocation3 + $0x38] sm:$0x3f] }
 0x500   :  { %v3538_v42 = vadd.f32 %v3459_v15, %v3246_v61 }
 0x501   :  { %3545 = vst [vmem:[#allocation3 + $0x20] sm:$0x3f] %v3537_v24 }
 0x502   :  { %5086 = vmatpush1.bf16.msra.mxu0 %v5085_v14  ;;  %3546 = vst [vmem:[#allocation3 + $0x28] sm:$0x3f] %v3538_v42 }
 0x503   :  { %5088 = vmatprep.subr.bf16.mxu0 %v6644_v60  ;;  %v5544_v60 = vld [vmem:[%s7249_s12 + $0x48] sm:$0xff]  }
 0x505   :  { %4725 = vmatmul.mubr.msk.f32.vlgmr.msra.gmra.mrb[98].mxu0 %vm807_vm2, %v6875_v27 }
 0x506   :  { %5090 = vmatpush1.bf16.msra.mxu0 %v6640_v18  ;;  %3313 = vmatprep.mubr.f32.mxu0 %v5607_v30  ;;  %v5542_v18 = vld [vmem:[%s7249_s12 + $0x40] sm:$0xff]  }
 0x507   :  { %5092 = vmatprep.subr.bf16.mxu0 %v6684_v4  ;;  %4845 = vmatprep.subr.bf16.mxu1 %v5542_v18  ;;  %v5548_v4 = vld [vmem:[%s7249_s12 + $0x58] sm:$0xff]  }
 0x50a   :  { %5094 = vmatpush1.bf16.msra.mxu0 %v6680_v2  ;;  %v5546_v2 = vld [vmem:[%s7249_s12 + $0x50] sm:$0xff]  }
 0x50b   :  { %5096 = vmatprep.subr.bf16.mxu0 %v6727_v63  ;;  %v5552_v63 = vld [vmem:[%s7249_s12 + $0xc0] sm:$0xff]  }
 0x50e   :  { %5098 = vmatpush1.bf16.msra.mxu0 %v6720_v45  ;;  %v5550_v45 = vld [vmem:[%s7249_s12 + $0x60] sm:$0xff]  }
 0x50f   :  { %5100 = vmatprep.subr.bf16.mxu0 %v6779_v44  ;;  %v5556_v44 = vld [vmem:[%s7249_s12 + $0xc8] sm:$0xff]  }
 0x512   :  { %5102 = vmatpush1.bf16.msra.mxu0 %v6775_v41  ;;  %v5554_v41 = vld [vmem:[%s7249_s12 + $0x68] sm:$0xff]  }
 0x513   :  { %5104 = vmatprep.subr.bf16.mxu0 %v6646_v21  ;;  %v5545_v21 = vld [vmem:[%s7249_s12 + $0x8] sm:$0xff]  }
 0x515   :  { %4726 = vmatmul.mubr.msk.f32.vlgmr.msra.gmra.mrb[100].mxu0 %vm807_vm2, %v6875_v27 }
 0x516   :  { %5106 = vmatpush1.bf16.msra.mxu0 %v6642_v20  ;;  %3384 = vmatprep.mubr.f32.mxu0 %v5607_v30  ;;  %v5543_v20 = vld [vmem:[%s7249_s12] sm:$0xff]  }
 0x517   :  { %5108 = vmatprep.subr.bf16.mxu0 %v6686_v19  ;;  %4846 = vmatpush3.bf16.msra.mxu1 %v5543_v20  ;;  %v5549_v19 = vld [vmem:[%s7249_s12 + $0x18] sm:$0xff]  }
 0x518   :  { %4847 = vmatprep.subr.bf16.mxu1 %v5544_v60  ;;  %v3243_v60 = vld [vmem:[#allocation3 + $0x10] sm:$0x3f] }
 0x51a   :  { %5110 = vmatpush1.bf16.msra.mxu0 %v6682_v3  ;;  %v5547_v3 = vld [vmem:[%s7249_s12 + $0x10] sm:$0xff]  }
 0x51b   :  { %5112 = vmatprep.subr.bf16.mxu0 %v6729_v49  ;;  %4848 = vmatpush3.bf16.msra.mxu1 %v5545_v21  ;;  %v5553_v49 = vld [vmem:[%s7249_s12 + $0x80] sm:$0xff]  }
 0x51c   :  { %4849 = vmatprep.subr.bf16.mxu1 %v5546_v2 }
 0x51e   :  { %5114 = vmatpush1.bf16.msra.mxu0 %v6722_v48  ;;  %v5551_v48 = vld [vmem:[%s7249_s12 + $0x20] sm:$0xff]  }
 0x51f   :  { %5116 = vmatprep.subr.bf16.mxu0 %v6781_v51  ;;  %4850 = vmatpush3.bf16.msra.mxu1 %v5547_v3  ;;  %v5557_v51 = vld [vmem:[%s7249_s12 + $0x88] sm:$0xff]   ;;  %v3244_v3 = vld [vmem:[#allocation3 + $0x18] sm:$0x3f] }
 0x520   :  { %4851 = vmatprep.subr.bf16.mxu1 %v5548_v4 }
 0x522   :  { %5118 = vmatpush1.bf16.msra.mxu0 %v6777_v43  ;;  %v5555_v43 = vld [vmem:[%s7249_s12 + $0x28] sm:$0xff]  }
 0x523   :  { %5136 = vmatprep.subr.bf16.mxu0 %v6811_v50  ;;  %4852 = vmatpush3.bf16.msra.mxu1 %v5549_v19  ;;  %v5559_v50 = vld [vmem:[%s7249_s12 + $0x30] sm:$0xff]  }
 0x524   :  { %4853 = vmatprep.subr.bf16.mxu1 %v5550_v45 }
 0x525   :  { %4727 = vmatmul.mubr.msk.f32.vlgmr.msra.gmra.mrb[102].mxu0 %vm807_vm2, %v6875_v27 }
 0x526   :  { %5138 = vmatpush1.bf16.msra.mxu0 %v6809_v40  ;;  %3526 = vmatprep.mubr.f32.mxu0 %v5607_v30  ;;  %v5558_v40 = vld [vmem:[%s7249_s12 + $0x70] sm:$0xff]  }
 0x527   :  { %5140 = vmatprep.subr.bf16.mxu0 %v6827_v37  ;;  %4854 = vmatpush3.bf16.msra.mxu1 %v5551_v48  ;;  %v5561_v37 = vld [vmem:[%s7249_s12 + $0x90] sm:$0xff]  }
 0x528   :  { %4855 = vmatprep.subr.bf16.mxu1 %v5554_v41 }
 0x52a   :  { %5142 = vmatpush1.bf16.msra.mxu0 %v6825_v35  ;;  %v5560_v35 = vld [vmem:[%s7249_s12 + $0xd0] sm:$0xff]  }
 0x52b   :  { %5144 = vmatprep.subr.bf16.mxu0 %v6843_v34  ;;  %4856 = vmatpush3.bf16.msra.mxu1 %v5555_v43  ;;  %v5563_v34 = vld [vmem:[%s7249_s12 + $0x38] sm:$0xff]   ;;  %v5568_v43 = vld [vmem:[%s7250_s15] sm:$0xff]  }
 0x52c   :  { %4857 = vmatprep.subr.bf16.mxu1 %v5558_v40  ;;  %v5570_v40 = vld [vmem:[%s7250_s15 + $0x48] sm:$0xff]  }
 0x52e   :  { %5146 = vmatpush1.bf16.msra.mxu0 %v6841_v33  ;;  %v5562_v33 = vld [vmem:[%s7249_s12 + $0x78] sm:$0xff]  }
 0x52f   :  { %5148 = vmatprep.subr.bf16.mxu0 %v6859_v26  ;;  %4858 = vmatpush3.bf16.msra.mxu1 %v5559_v50  ;;  %v5565_v26 = vld [vmem:[%s7249_s12 + $0x98] sm:$0xff]  }
 0x530   :  { %4859 = vmatprep.subr.bf16.mxu1 %v5562_v33 }
 0x532   :  { %5150 = vmatpush1.bf16.msra.mxu0 %v6857_v10  ;;  %v5564_v10 = vld [vmem:[%s7249_s12 + $0xd8] sm:$0xff]  }
 0x533   :  { %4867 = vmatprep.subr.bf16.mxu0 %v5552_v63  ;;  %4860 = vmatpush3.bf16.msra.mxu1 %v5563_v34  ;;  %v5576_v34 = vld [vmem:[%s7250_s15 + $0x10] sm:$0xff]  }
 0x535   :  { %4729 = vmatmul.mubr.msk.f32.vlgmr.msra.gmra.mrb[104].mxu0 %vm807_vm2, %v6875_v27  ;;  %v5566_v27 = vld [vmem:[%s7250_s15 + $0x40] sm:$0xff]  }
 0x536   :  { %4868 = vmatpush3.bf16.msra.mxu0 %v5553_v49  ;;  %4889 = vmatprep.subr.bf16.mxu1 %v5566_v27 }
 0x537   :  { %4869 = vmatprep.subr.bf16.mxu0 %v5556_v44 }
 0x53a   :  { %4870 = vmatpush3.bf16.msra.mxu0 %v5557_v51 }
 0x53b   :  { %4871 = vmatprep.subr.bf16.mxu0 %v5560_v35  ;;  %v5572_v35 = vld [vmem:[%s7250_s15 + $0x8] sm:$0xff]  }
 0x53e   :  { %4872 = vmatpush3.bf16.msra.mxu0 %v5561_v37  ;;  %v5574_v37 = vld [vmem:[%s7250_s15 + $0x50] sm:$0xff]  }
 0x53f   :  { %4873 = vmatprep.subr.bf16.mxu0 %v5564_v10  ;;  %v5578_v10 = vld [vmem:[%s7250_s15 + $0x58] sm:$0xff]  }
 0x542   :  { %4874 = vmatpush3.bf16.msra.mxu0 %v5565_v26 }
 0x543   :  { %4875 = vmatprep.subr.bf16.mxu0 %v5567_v29 }
 0x546   :  { %4876 = vmatpush3.bf16.msra.mxu0 %v5569_v54 }
 0x547   :  { %4877 = vmatprep.subr.bf16.mxu0 %v5571_v13 }
 0x54a   :  { %4878 = vmatpush3.bf16.msra.mxu0 %v5573_v62  ;;  %v5580_v62 = vld [vmem:[%s7250_s15 + $0x18] sm:$0xff]  }
 0x54b   :  { %4879 = vmatprep.subr.bf16.mxu0 %v5575_v22 }
 0x54e   :  { %4880 = vmatpush3.bf16.msra.mxu0 %v5577_v16  ;;  %v3247_v16 = vld [vmem:[#allocation3 + $0x30] sm:$0x3f] }
 0x54f   :  { %4881 = vmatprep.subr.bf16.mxu0 %v5579_v17 }
 0x552   :  { %4882 = vmatpush3.bf16.msra.mxu0 %v5581_v39  ;;  %v5582_v39 = vld [vmem:[%s7250_s15 + $0x60] sm:$0xff]  }
 0x553   :  { %5015 = vmatprep.subr.bf16.mxu0 %v5607_v30 }
 0x5c8   :  { %v3141_v52 = vpop.f32.mrb[96].mxu0 }
 0x5c9   :  { %v3143_v25 = vpop.f32.mrb[97].mxu0 }
 0x5ca   :  { %v3221_v8 = vcombine.low %v3141_v52, %v3143_v25 }
 0x5cc   :  { %v3229_v56 = vrot.slane %v3221_v8, %v3228_v46 }
 0x5d8   :  { %v3212_v36 = vpop.f32.mrb[98].mxu0 }
 0x5d9   :  { %v3214_v38 = vpop.f32.mrb[99].mxu0 }
 0x5da   :  { %v3222_v47 = vcombine.low %v3212_v36, %v3214_v38  ;;  %v5585_v36 = vld [vmem:[%s7250_s15 + $0x28] sm:$0xff]   ;;  %v5586_v38 = vld [vmem:[%s7250_s15 + $0x70] sm:$0xff]  }
 0x5dc   :  { %v3236_v0 = vrot.slane %v3222_v47, %v3228_v46  ;;  %v5587_v47 = vld [vmem:[%s7250_s15 + $0x30] sm:$0xff]  }
 0x5de   :  { %v3237_v57 = vcombine.low %v3229_v56, %v3236_v0  ;;  %v4801_v50 = vcombine.low %v3236_v0, %v3236_v0  ;;  %v5588_v56 = vld [vmem:[%s7250_s15 + $0x78] sm:$0xff]  }
 0x5e0   :  { %v3569_v9 = vrot.slane %v3237_v57, %v3228_v46  ;;  %v3576_v33 = vrot.slane %v4801_v50, %v3228_v46  ;;  %v5584_v46 = vld [vmem:[%s7250_s15 + $0x68] sm:$0xff]  }
 0x5e1   :  { %v3558_v57 = vld [vmem:[#allocation3 + $0x28] sm:$0x3f] }
 0x5e2   :  { %v3577_v23 = vcombine.high %v3569_v9, %v3569_v9  ;;  %v3578_v54 = vcombine.high %v3576_v33, %v3576_v33 }
 0x5e8   :  { %v3315_v6 = vpop.f32.mrb[100].mxu0 }
 0x5e9   :  { %v3533_v53 = vadd.f32 %v3315_v6, %v3241_v1  ;;  %v3317_v5 = vpop.f32.mrb[101].mxu0 }
 0x5ea   :  { %v3534_v31 = vadd.f32 %v3317_v5, %v3242_v59  ;;  %v5589_v5 = vld [vmem:[%s7250_s15 + $0x38] sm:$0xff]  }
 0x5eb   :  { %3541 = vst [vmem:[#allocation3] sm:$0x3f] %v3533_v53  ;;  %v3557_v53 = vld [vmem:[#allocation3 + $0x20] sm:$0x3f] }
 0x5ec   :  { %3542 = vst [vmem:[#allocation3 + $0x8] sm:$0x3f] %v3534_v31 }
 0x5f2   :  { %v3553_v14 = vld [vmem:[#allocation3] sm:$0x3f] }
 0x5f3   :  { %v3554_v58 = vld [vmem:[#allocation3 + $0x8] sm:$0x3f]  ;;  %v3587_v55 = vrot.slane %v3553_v14, 6 }
 0x5f4   :  { %v3588_v18 = vrot.slane %v3554_v58, 6 }
 0x5f5   :  { %v3596_v20 = vsel %vm3595_vm4, %v3569_v9, %v3587_v55 }
 0x5f6   :  { %v3597_v21 = vsel %vm3595_vm4, %v3577_v23, %v3588_v18  ;;  %v3601_v2 = vsel %vm3600_vm5, %v3596_v20, %v3587_v55  ;;  %v5591_v23 = vld [vmem:[%s7251_s21 + $0x8] sm:$0xff]   ;;  %v5593_v20 = vld [vmem:[%s7251_s21 + $0x18] sm:$0xff]  }
 0x5f7   :  { %v3602_v4 = vsel %vm3600_vm5, %v3597_v21, %v3588_v18  ;;  %v3606_v19 = vsel %vm3605_vm6, %v3601_v2, %v3587_v55  ;;  %v5590_v55 = vld [vmem:[%s7251_s21] sm:$0xff]   ;;  %v5596_v2 = vld [vmem:[%s7252_s22 + $0x8] sm:$0xff]  }
 0x5f8   :  { %v3386_v45 = vpop.f32.mrb[102].mxu0  ;;  %v3607_v48 = vsel %vm3605_vm6, %v3602_v4, %v3588_v18  ;;  %v3610_v51 = vpack.c.bf16 %v3606_v19, %v3606_v19  ;;  %v5592_v18 = vld [vmem:[%s7251_s21 + $0x10] sm:$0xff]   ;;  %v5595_v21 = vld [vmem:[%s7251_s21 + $0x20] sm:$0xff]  }
 0x5f9   :  { %v3535_v63 = vadd.f32 %v3386_v45, %v3243_v60  ;;  %v3388_v49 = vpop.f32.mrb[103].mxu0  ;;  %v3611_v41 = vpack.c.bf16 %v3607_v48, %v3607_v48  ;;  %v5594_v60 = vld [vmem:[%s7252_s22] sm:$0xff]   ;;  %v5598_v4 = vld [vmem:[%s7252_s22 + $0x10] sm:$0xff]   ;;  %v5600_v45 = vld [vmem:[%s7252_s22 + $0x18] sm:$0xff]  }
 0x5fa   :  { %v3536_v44 = vadd.f32 %v3388_v49, %v3244_v3  ;;  %v5597_v3 = vld [vmem:[%s7251_s21 + $0x28] sm:$0xff]   ;;  %v5599_v19 = vld [vmem:[%s7251_s21 + $0x30] sm:$0xff]   ;;  %v5601_v48 = vld [vmem:[%s7251_s21 + $0x38] sm:$0xff]  }
 0x5fb   :  { %3543 = vst [vmem:[#allocation3 + $0x10] sm:$0x3f] %v3535_v63  ;;  %3902 = vmatprep.mubr.bf16.mxu1 %v3611_v41  ;;  %v5602_v63 = vld [vmem:[%s7252_s22 + $0x20] sm:$0xff]   ;;  %v5603_v49 = vld [vmem:[%s7252_s22 + $0x28] sm:$0xff]   ;;  %v5604_v41 = vld [vmem:[%s7252_s22 + $0x30] sm:$0xff]  }
 0x5fc   :  { %3544 = vst [vmem:[#allocation3 + $0x18] sm:$0x3f] %v3536_v44  ;;  %3903 = vmatmul.mubr.bf16.vlgmr.msra.gmra.mrb[108].mxu1 %v3610_v51 }
 0x5fd   :  { %4890 = vmatpush3.bf16.msra.mxu1 %v5568_v43  ;;  %v5605_v43 = vld [vmem:[%s7252_s22 + $0x38] sm:$0xff]  }
 0x5fe   :  { %4891 = vmatprep.subr.bf16.mxu1 %v5570_v40 }
 0x601   :  { %4892 = vmatpush3.bf16.msra.mxu1 %v5572_v35 }
 0x602   :  { %4893 = vmatprep.subr.bf16.mxu1 %v5574_v37  ;;  %v3555_v26 = vld [vmem:[#allocation3 + $0x10] sm:$0x3f] }
 0x603   :  { %v3556_v27 = vld [vmem:[#allocation3 + $0x18] sm:$0x3f]  ;;  %v3589_v29 = vrot.slane %v3555_v26, 6  ;;  %v4762_v26 = vld [vmem:[%s7253_s13] ss:$0 sm:$0xff] }
 0x604   :  { %v3590_v13 = vrot.slane %v3556_v27, 6 }
 0x605   :  { %4894 = vmatpush3.bf16.msra.mxu1 %v5576_v34  ;;  %v3598_v22 = vsel %vm3595_vm4, %v3576_v33, %v3589_v29 }
 0x606   :  { %4895 = vmatprep.subr.bf16.mxu1 %v5578_v10  ;;  %v3599_v17 = vsel %vm3595_vm4, %v3578_v54, %v3590_v13  ;;  %v3603_v12 = vsel %vm3600_vm5, %v3598_v22, %v3589_v29 }
 0x607   :  { %v3604_v61 = vsel %vm3600_vm5, %v3599_v17, %v3590_v13  ;;  %v3608_v15 = vsel %vm3605_vm6, %v3603_v12, %v3589_v29 }
 0x608   :  { %v3528_v24 = vpop.f32.mrb[104].mxu0  ;;  %v3609_v42 = vsel %vm3605_vm6, %v3604_v61, %v3590_v13  ;;  %v3612_v7 = vpack.c.bf16 %v3608_v15, %v3608_v15 }
 0x609   :  { %4896 = vmatpush3.bf16.msra.mxu1 %v5580_v62  ;;  %v3539_v52 = vadd.f32 %v3528_v24, %v3247_v16  ;;  %v3530_v25 = vpop.f32.mrb[105].mxu0  ;;  %v3613_v8 = vpack.c.bf16 %v3609_v42, %v3609_v42  ;;  %v4764_v24 = vld [vmem:[%s7256_s16] ss:$0 sm:$0xff] }
 0x60a   :  { %v3540_v32 = vadd.f32 %v3530_v25, %v3248_v28  ;;  %4897 = vmatprep.subr.bf16.mxu1 %v5582_v39 }
 0x60b   :  { %3547 = vst [vmem:[#allocation3 + $0x30] sm:$0x3f] %v3539_v52  ;;  %3942 = vmatprep.mubr.bf16.mxu0 %v3613_v8 }
 0x60c   :  { %3548 = vst [vmem:[#allocation3 + $0x38] sm:$0x3f] %v3540_v32  ;;  %3943 = vmatmul.mubr.bf16.vlgmr.msra.gmra.mrb[108].mxu0 %v3612_v7 }
 0x60d   :  { %4898 = vmatpush3.bf16.msra.mxu1 %v5583_v11  ;;  %5016 = vmatpush3.bf16.msra.mxu0 %v5590_v55 }
 0x60e   :  { %4899 = vmatprep.subr.bf16.mxu1 %v5584_v46  ;;  %5017 = vmatprep.subr.bf16.mxu0 %v5607_v30 }
 0x60f   :  { %5031 = vmatprep.mubr.msk.bf16.mxu0 %vm5609_vm7, %v5607_v30 }
 0x611   :  { %4900 = vmatpush3.bf16.msra.mxu1 %v5585_v36  ;;  %5018 = vmatpush3.bf16.msra.mxu0 %v5591_v23  ;;  %v4781_v36 = vld [vmem:[%s7257_s17] ss:$0 sm:$0xff] }
 0x612   :  { %4901 = vmatprep.subr.bf16.mxu1 %v5586_v38  ;;  %v3559_v0 = vld [vmem:[#allocation3 + $0x30] sm:$0x3f]  ;;  %5019 = vmatprep.subr.bf16.mxu0 %v5607_v30  ;;  %v4783_v38 = vld [vmem:[%s7258_s19] ss:$0 sm:$0xff] }
 0x613   :  { %v3560_v1 = vld [vmem:[#allocation3 + $0x38] sm:$0x3f]  ;;  %v3968_v59 = vrot.slane %v3559_v0, 6  ;;  %v4784_v0 = vld [vmem:[%s7259_s20] ss:$0 sm:$0xff] }
 0x614   :  { %v3969_v6 = vrot.slane %v3560_v1, 6 }
 0x615   :  { %4902 = vmatpush3.bf16.msra.mxu1 %v5587_v47  ;;  %v3972_v14 = vsel %vm3595_vm4, %v3557_v53, %v3968_v59  ;;  %5020 = vmatpush3.bf16.msra.mxu0 %v5592_v18 }
 0x616   :  { %4903 = vmatprep.subr.bf16.mxu1 %v5588_v56  ;;  %v3973_v31 = vsel %vm3595_vm4, %v3558_v57, %v3969_v6  ;;  %v3974_v58 = vpack.c.bf16 %v3972_v14, %v3972_v14  ;;  %5021 = vmatprep.subr.bf16.mxu0 %v5607_v30  ;;  %v4782_v6 = vld [vmem:[%s7260_s18] ss:$0 sm:$0xff] }
 0x617   :  { %v3975_v9 = vpack.c.bf16 %v3973_v31, %v3973_v31 }
 0x619   :  { %4904 = vmatpush3.bf16.msra.mxu1 %v5589_v5  ;;  %4143 = vmatprep.mubr.bf16.mxu1 %v3975_v9 }
 0x61a   :  { %5035 = vmatprep.subr.bf16.mxu1 %v5607_v30  ;;  %5022 = vmatpush3.bf16.msra.mxu0 %v5593_v20 }
 0x61b   :  { %5023 = vmatprep.subr.bf16.mxu0 %v5607_v30 }
 0x61c   :  { %4144 = vmatmul.mubr.bf16.vlgmr.msra.gmra.mrb[112].mxu1 %v3974_v58 }
 0x61d   :  { %5036 = vmatpush3.bf16.msra.mxu1 %v5594_v60  ;;  %5051 = vmatprep.mubr.msk.bf16.mxu1 %vm5609_vm7, %v5607_v30 }
 0x61e   :  { %5037 = vmatprep.subr.bf16.mxu1 %v5607_v30  ;;  %5024 = vmatpush3.bf16.msra.mxu0 %v5595_v21 }
 0x61f   :  { %5025 = vmatprep.subr.bf16.mxu0 %v5607_v30 }
 0x621   :  { %5038 = vmatpush3.bf16.msra.mxu1 %v5596_v2 }
 0x622   :  { %5039 = vmatprep.subr.bf16.mxu1 %v5607_v30  ;;  %5026 = vmatpush3.bf16.msra.mxu0 %v5597_v3 }
 0x623   :  { %5027 = vmatprep.subr.bf16.mxu0 %v5607_v30 }
 0x625   :  { %5040 = vmatpush3.bf16.msra.mxu1 %v5598_v4 }
 0x626   :  { %5041 = vmatprep.subr.bf16.mxu1 %v5607_v30  ;;  %5028 = vmatpush3.bf16.msra.mxu0 %v5599_v19 }
 0x627   :  { %5029 = vmatprep.subr.bf16.mxu0 %v5607_v30 }
 0x629   :  { %5042 = vmatpush3.bf16.msra.mxu1 %v5600_v45 }
 0x62a   :  { %5043 = vmatprep.subr.bf16.mxu1 %v5607_v30  ;;  %5030 = vmatpush3.bf16.msra.mxu0 %v5601_v48 }
 0x62d   :  { %5044 = vmatpush3.bf16.msra.mxu1 %v5602_v63 }
 0x62e   :  { %5045 = vmatprep.subr.bf16.mxu1 %v5607_v30 }
 0x631   :  { %5046 = vmatpush3.bf16.msra.mxu1 %v5603_v49 }
 0x632   :  { %5047 = vmatprep.subr.bf16.mxu1 %v5607_v30 }
 0x635   :  { %5048 = vmatpush3.bf16.msra.mxu1 %v5604_v41 }
 0x636   :  { %5049 = vmatprep.subr.bf16.mxu1 %v5607_v30  ;;  %v4763_v30 = vld [vmem:[%s7254_s14] ss:$0 sm:$0xff] }
 0x639   :  { %5050 = vmatpush3.bf16.msra.mxu1 %v5605_v43 }
 0x6cf   :  { %v4861_v44 = vpop.f32.mrb[108].mxu1 }
 0x6d0   :  { %v4862_v51 = vpop.f32.mrb[109].mxu1 }
 0x6d1   :  { %v4863_v40 = vadd.f32 %v4862_v51, %v4861_v44  ;;  %v4864_v50 = vpop.f32.mrb[110].mxu1 }
 0x6d2   :  { %v4865_v35 = vpop.f32.mrb[111].mxu1 }
 0x6df   :  { %v4883_v37 = vpop.f32.mrb[108].mxu0 }
 0x6e0   :  { %v4884_v33 = vpop.f32.mrb[109].mxu0 }
 0x6e1   :  { %v4885_v34 = vadd.f32 %v4884_v33, %v4883_v37  ;;  %v4886_v10 = vpop.f32.mrb[110].mxu0 }
 0x6e2   :  { %v4887_v27 = vpop.f32.mrb[111].mxu0 }
 0x6e3   :  { %v3945_v29 = vadd.f32 %v4885_v34, %v4863_v40 }
 0x6e5   :  { %v3957_v54 = vmul.f32 %v4762_v26, %v3945_v29  ;;  %v4420_v13 = vrot.slane %v3945_v29, 6 }
 0x6e7   :  { %v3965_v62 = vadd.f32 %v4763_v30, %v3957_v54  ;;  %v4425_v22 = vsel %vm3595_vm4, %v3945_v29, %v4420_v13 }
 0x6e8   :  { %v4426_v16 = vsel %vm3600_vm5, %v4425_v22, %v4420_v13 }
 0x6e9   :  { %v4185_v17 = vrot.slane %v3965_v62, 2  ;;  %4428 = vst [vmem:[%s7255_s23] sm:$0xff] %v4426_v16  ;;  %v4188_v12 = vrot.slane %v3965_v62, 4  ;;  %v4200_v11 = vrot.slane %v3965_v62, 6 }
 0x6eb   :  { %v4187_v39 = vadd.f32 %v4185_v17, %v3965_v62 }
 0x6ed   :  { %v4190_v28 = vadd.f32 %v4188_v12, %v4187_v39 }
 0x6ef   :  { %v4905_v61 = vpop.f32.mrb[112].mxu1  ;;  %v4191_v15 = vmul.f32 0.33333334, %v4190_v28 }
 0x6f0   :  { %v4906_v42 = vpop.f32.mrb[113].mxu1 }
 0x6f1   :  { %v4907_v52 = vadd.f32 %v4906_v42, %v4905_v61  ;;  %v4908_v25 = vpop.f32.mrb[114].mxu1  ;;  %v4198_v8 = vrot.slane %v4191_v15, 2 }
 0x6f2   :  { %v4909_v32 = vpop.f32.mrb[115].mxu1 }
 0x6f3   :  { %v4146_v7 = vadd.f32 %v4907_v52, %v4764_v24  ;;  %v4202_v46 = vsel %vm3595_vm4, %v4198_v8, %v4200_v11 }
 0x6f4   :  { %v4203_v47 = vpack.c.bf16 %v4202_v46, %v4202_v46 }
 0x6f5   :  { %v4151_v56 = vmax.f32 %v4146_v7, 0.0 }
 0x6f6   :  { %5032 = vmatmul.mubr.bf16.vlgmr.msra.gmra.mrb[112].mxu0 %v4203_v47 }
 0x6f7   :  { %v4159_v57 = vmul.f32 %v4781_v36, %v4151_v56  ;;  %v4175_v1 = vmul.f32 %v4783_v38, %v4151_v56  ;;  %v4423_v59 = vrot.slane %v4151_v56, 6 }
 0x6f9   :  { %v4183_v53 = vadd.f32 %v4784_v0, %v4175_v1  ;;  %v4427_v5 = vsel %vm3595_vm4, %v4420_v13, %v4423_v59  ;;  %v4167_v31 = vadd.f32 %v4782_v6, %v4159_v57 }
 0x6fa   :  { %4429 = vst [vmem:[%s7255_s23 + $0x8] sm:$0x3f] %v4427_v5 }
 0x6fb   :  { %v4193_v9 = vrot.slane %v4183_v53, 2 }
 0x6fd   :  { %v4195_v14 = vadd.f32 %v4193_v9, %v4167_v31 }
 0x6ff   :  { %v4196_v58 = vmul.f32 0.5, %v4195_v14 }
 0x701   :  { %v4308_v55 = vpack.c.bf16 %v4196_v58, %v4196_v58 }
 0x703   :  { %5052 = vmatmul.mubr.bf16.vlgmr.msra.gmra.mrb[116].mxu1 %v4308_v55 }
 0x7c9   :  { %v4302_v23 = vpop.f32.mrb[112].mxu0 }
 0x7ca   :  { %v5033_v18 = vpop.f32.mrb[113].mxu0 }
 0x7cb   :  { %v4305_v20 = vpop.f32.mrb[114].mxu0 }
 0x7cc   :  { %v5034_v60 = vpop.f32.mrb[115].mxu0 }
 0x7d6   :  { %v4407_v21 = vpop.f32.mrb[116].mxu1 }
 0x7d7   :  { %v4414_v2 = vrot.slane %v4407_v21, 4  ;;  %v5053_v3 = vpop.f32.mrb[117].mxu1 }
 0x7d8   :  { %v4410_v4 = vpop.f32.mrb[118].mxu1 }
 0x7d9   :  { %v4416_v19 = vsel %vm3600_vm5, %v4302_v23, %v4414_v2  ;;  %v5054_v45 = vpop.f32.mrb[119].mxu1 }
 0x7da   :  { %4418 = vst.msk [vmem:[%s7261_s24] sm:$0x3f] %vm4417_vm8, %v4416_v19 }

</bundles_post_ra>
